<compile_context>
chip_gen: v7x
topology: tpu7x:2x2x1
jax: 0.10.0
libtpu: 0.0.40
codegen_flags: <defaults>
</compile_context>

<pallas_src>
import functools

import jax
import jax.numpy as jnp
from jax import lax
from jax.experimental import pallas as pl
from jax.experimental.pallas import tpu as pltpu


def _conv3x3_im2col(hp, w_flat, b, out_h, out_w, cpad):
    """3x3 'same' conv via a single im2col matmul.

    hp:     (out_h + 2, out_w + 2, cpad) zero-padded activations (MXU dtype)
    w_flat: (9 * cpad, cpad) weights, rows ordered (ky, kx, cin)  (MXU dtype)
    b:      (1, cpad) bias, f32
    returns (out_h, out_w, cpad) f32
    """
    cols = [hp[dy:dy + out_h, dx:dx + out_w, :]
            for dy in range(3) for dx in range(3)]
    slab = jnp.concatenate(cols, axis=-1).reshape(out_h * out_w, 9 * cpad)
    out = jnp.dot(slab, w_flat, preferred_element_type=jnp.float32)
    return (out + b).reshape(out_h, out_w, cpad)


def _residual3x3_kernel(x_hbm, w1_ref, b1_ref, w2_ref, b2_ref, g_ref, bt_ref,
                        o_ref, xs_ref, p2_ref, sem,
                        *, th, w, c, cpad, eps, mxu_dtype):
    n = pl.program_id(0)
    i = pl.program_id(1)

    # ---- fetch the (th+4)-row halo'd window of the pre-padded input ---------
    row0 = pl.multiple_of(i * th, th)
    dma = pltpu.make_async_copy(
        x_hbm.at[pl.ds(n, 1), pl.ds(row0, th + 4), :, :], xs_ref, sem.at[0])
    dma.start()
    dma.wait()
    # TODO(synk): double-buffer this DMA (prefetch row tile i+1) to fully hide
    # the HBM fetch behind the two matmuls.

    xw = xs_ref[0]                                      # (th+4, w+2, cpad) f32

    # ---- relu -> conv1 over th+2 rows (1-row halo each side for conv2) ------
    a1 = jnp.maximum(xw, 0.0).astype(mxu_dtype)
    h1 = _conv3x3_im2col(a1, w1_ref[...], b1_ref[...], th + 2, w, cpad)
    h1 = jnp.maximum(h1, 0.0)                           # relu, f32

    # ---- conv2 input: persistent VMEM scratch with zeroed border ------------
    p2_ref[:, 0:1, :] = jnp.zeros((th + 2, 1, cpad), mxu_dtype)
    p2_ref[:, w + 1:w + 2, :] = jnp.zeros((th + 2, 1, cpad), mxu_dtype)
    p2_ref[:, 1:w + 1, :] = h1.astype(mxu_dtype)

    # Halo rows that fall outside the image are conv2's zero padding.
    @pl.when(i == 0)
    def _zero_top():
        p2_ref[0:1, :, :] = jnp.zeros((1, w + 2, cpad), mxu_dtype)

    @pl.when(i == pl.num_programs(1) - 1)
    def _zero_bottom():
        p2_ref[th + 1:th + 2, :, :] = jnp.zeros((1, w + 2, cpad), mxu_dtype)

    h2 = _conv3x3_im2col(p2_ref[...], w2_ref[...], b2_ref[...], th, w, cpad)

    # ---- ChannelNorm over the real C channels (padded channels are zero) ----
    chan = lax.broadcasted_iota(jnp.int32, (1, 1, cpad), 2)
    real = chan < c
    inv_c = 1.0 / c
    mu = jnp.sum(h2, axis=-1, keepdims=True) * inv_c
    d = jnp.where(real, h2 - mu, 0.0)
    var = jnp.sum(d * d, axis=-1, keepdims=True) * inv_c
    hn = (h2 - mu) * lax.rsqrt(var + eps)
    hn = hn * g_ref[...].reshape(1, 1, cpad) + bt_ref[...].reshape(1, 1, cpad)

    # ---- residual add in f32, lane-dense store -------------------------------
    x_int = xw[2:th + 2, 1:w + 1, :]
    o_ref[0] = (x_int + hn).astype(o_ref.dtype)


def residual3x3_nhwc(x_nhwc, w1, b1, w2, b2, gamma, beta, *,
                     eps=1e-5, row_tile=8, mxu_dtype=jnp.bfloat16):
    """x_nhwc: (N,H,W,C) f32.  w1/w2: (C,C,3,3) OIHW.  Returns NHWC f32."""
    n, h, w, c = x_nhwc.shape
    cpad = ((c + 127) // 128) * 128        # lane-dense channel padding
    th = min(row_tile, h)
    while h % th:                          # keep row tiles uniform
        th -= 1
    n_tiles = h // th

    # Pre-pad once: +-2 rows (conv1 halo needed by conv2), +-1 col, C -> cpad.
    x_pad = jnp.pad(x_nhwc.astype(jnp.float32),
                    ((0, 0), (2, 2), (1, 1), (0, cpad - c)))

    def pack_w(wk):
        wp = jnp.zeros((cpad, cpad, 3, 3), jnp.float32).at[:c, :c].set(
            wk.astype(jnp.float32))
        # (O,I,ky,kx) -> (ky,kx,I,O) -> (9*cpad, cpad): rows ordered (ky,kx,cin)
        return jnp.transpose(wp, (2, 3, 1, 0)).reshape(
            9 * cpad, cpad).astype(mxu_dtype)

    def pack_v(v):
        return jnp.pad(v.astype(jnp.float32), (0, cpad - c)).reshape(1, cpad)

    w1f, w2f = pack_w(w1), pack_w(w2)
    b1r, b2r, gr, br = pack_v(b1), pack_v(b2), pack_v(gamma), pack_v(beta)

    kernel = functools.partial(_residual3x3_kernel, th=th, w=w, c=c,
                               cpad=cpad, eps=eps, mxu_dtype=mxu_dtype)

    mb = jnp.dtype(mxu_dtype).itemsize
    vmem_est = (
        (th + 4) * (w + 2) * cpad * 4              # x window scratch (f32)
        + (th + 2) * (w + 2) * cpad * mb           # conv2 input scratch
        + 2 * (th + 2) * w * 9 * cpad * mb         # im2col slabs (transient)
        + 4 * (th + 2) * w * cpad * 4              # f32 temporaries
        + 2 * 2 * 9 * cpad * cpad * mb             # conv weights, dbl-buffered
        + 2 * th * w * cpad * 4                    # output block, dbl-buffered
    )
    vmem_limit = min(2 * vmem_est + (4 << 20), 64 << 20)

    out = pl.pallas_call(
        kernel,
        out_shape=jax.ShapeDtypeStruct((n, h, w, cpad), jnp.float32),
        grid_spec=pltpu.PrefetchScalarGridSpec(
            num_scalar_prefetch=0,
            grid=(n, n_tiles),
            in_specs=[
                pl.BlockSpec(memory_space=pl.ANY),                  # x (HBM)
                pl.BlockSpec((9 * cpad, cpad), lambda b, i: (0, 0)),  # w1
                pl.BlockSpec((1, cpad), lambda b, i: (0, 0)),         # b1
                pl.BlockSpec((9 * cpad, cpad), lambda b, i: (0, 0)),  # w2
                pl.BlockSpec((1, cpad), lambda b, i: (0, 0)),         # b2
                pl.BlockSpec((1, cpad), lambda b, i: (0, 0)),         # gamma
                pl.BlockSpec((1, cpad), lambda b, i: (0, 0)),         # beta
            ],
            out_specs=pl.BlockSpec((1, th, w, cpad), lambda b, i: (b, i, 0, 0)),
            scratch_shapes=[
                pltpu.VMEM((1, th + 4, w + 2, cpad), jnp.float32),  # x window
                pltpu.VMEM((th + 2, w + 2, cpad), mxu_dtype),       # conv2 in
                pltpu.SemaphoreType.DMA((1,)),
            ],
        ),
        compiler_params=pltpu.CompilerParams(
            dimension_semantics=("parallel", "parallel"),
            vmem_limit_bytes=int(vmem_limit),
        ),
    )(x_pad, w1f, b1r, w2f, b2r, gr, br)

    return out[..., :c]


def residual3x3(x_nchw, w1, b1, w2, b2, gamma, beta, *,
                eps=1e-5, row_tile=8, mxu_dtype=jnp.bfloat16):
    """PyTorch-layout entry point (NCHW in / NCHW out).

    Keep the surrounding model NHWC and call residual3x3_nhwc directly to
    avoid the two layout transposes (each is a full HBM round trip of x).
    """
    x = jnp.transpose(x_nchw, (0, 2, 3, 1))
    y = residual3x3_nhwc(x, w1, b1, w2, b2, gamma, beta, eps=eps,
                         row_tile=row_tile, mxu_dtype=mxu_dtype)
    return jnp.transpose(y, (0, 3, 1, 2))


def residual3x3_reference(x, w1, b1, w2, b2, gamma, beta, eps=1e-5,
                          operand_dtype=jnp.float32):
    """Pure-JAX NCHW reference (mirrors the PyTorch module).

    operand_dtype lets the reference apply the same conv-operand rounding as
    the mixed-precision kernel (bf16 operands, f32 accumulation)."""
    def conv(hh, wk, bk):
        hq = hh.astype(operand_dtype).astype(jnp.float32)
        wq = wk.astype(operand_dtype).astype(jnp.float32)
        y = lax.conv_general_dilated(
            hq, wq, window_strides=(1, 1), padding=((1, 1), (1, 1)),
            dimension_numbers=("NCHW", "OIHW", "NCHW"),
            precision=lax.Precision.HIGHEST)
        return y + bk.reshape(1, -1, 1, 1)

    hh = jax.nn.relu(x)
    hh = conv(hh, w1, b1)
    hh = jax.nn.relu(hh)
    hh = conv(hh, w2, b2)
    mu = jnp.mean(hh, axis=1, keepdims=True)
    var = jnp.mean((hh - mu) ** 2, axis=1, keepdims=True)
    hn = (hh - mu) * lax.rsqrt(var + eps)
    hn = hn * gamma.reshape(1, -1, 1, 1) + beta.reshape(1, -1, 1, 1)
    return x + hn


if __name__ == "__main__":
    N, C, H, W = 2, 4, 16, 16
    key = jax.random.PRNGKey(0)
    kx, kw1, kb1, kw2, kb2, kg, kb = jax.random.split(key, 7)

    x = jax.random.normal(kx, (N, C, H, W), jnp.float32)
    fan_in = C * 9
    w1 = jax.random.normal(kw1, (C, C, 3, 3), jnp.float32) / jnp.sqrt(fan_in)
    b1 = 0.1 * jax.random.normal(kb1, (C,), jnp.float32)
    w2 = jax.random.normal(kw2, (C, C, 3, 3), jnp.float32) / jnp.sqrt(fan_in)
    b2 = 0.1 * jax.random.normal(kb2, (C,), jnp.float32)
    gamma = 1.0 + 0.1 * jax.random.normal(kg, (C,), jnp.float32)
    beta = 0.1 * jax.random.normal(kb, (C,), jnp.float32)

    # Exact-semantics check: f32 MXU operands vs the f32 reference.
    out_f32 = residual3x3(x, w1, b1, w2, b2, gamma, beta,
                          mxu_dtype=jnp.float32)
    out_f32 = jax.block_until_ready(out_f32)
    ref_f32 = jax.block_until_ready(
        residual3x3_reference(x, w1, b1, w2, b2, gamma, beta))
    assert out_f32.shape == (N, C, H, W), out_f32.shape
    assert jnp.allclose(out_f32, ref_f32, atol=3e-4, rtol=3e-4), \
        float(jnp.max(jnp.abs(out_f32 - ref_f32)))

    # Mixed-precision path (default: bf16 MXU operands, f32 accumulate/norm)
    # vs a reference that applies the same operand rounding.
    out_bf16 = residual3x3(x, w1, b1, w2, b2, gamma, beta)
    out_bf16 = jax.block_until_ready(out_bf16)
    ref_bf16 = jax.block_until_ready(
        residual3x3_reference(x, w1, b1, w2, b2, gamma, beta,
                              operand_dtype=jnp.bfloat16))
    assert jnp.allclose(out_bf16, ref_bf16, atol=2e-2, rtol=2e-2), \
        float(jnp.max(jnp.abs(out_bf16 - ref_bf16)))

    print("KERNEL_OK")
</pallas_src>

<mosaic_0001>
module attributes {stable_mosaic.version = 11 : i64} {
  func.func @_residual3x3_kernel(%arg0: i32, %arg1: i32, %arg2: memref<2x20x18x128xf32, #tpu.memory_space<any>>, %arg3: memref<1152x128xf32, #tpu.memory_space<vmem>>, %arg4: memref<1x128xf32, #tpu.memory_space<vmem>>, %arg5: memref<1152x128xf32, #tpu.memory_space<vmem>>, %arg6: memref<1x128xf32, #tpu.memory_space<vmem>>, %arg7: memref<1x128xf32, #tpu.memory_space<vmem>>, %arg8: memref<1x128xf32, #tpu.memory_space<vmem>>, %arg9: memref<1x8x16x128xf32, #tpu.memory_space<vmem>>, %arg10: memref<1x12x18x128xf32, #tpu.memory_space<vmem>>, %arg11: memref<10x18x128xf32, #tpu.memory_space<vmem>>, %arg12: memref<1x!tpu.dma_semaphore, #tpu.memory_space<semaphore_mem>>) attributes {dimension_semantics = [#tpu.dimension_semantics<parallel>, #tpu.dimension_semantics<parallel>], iteration_bounds = array<i64: 2, 2>, scalar_prefetch = 0 : i64, scratch_operands = 3 : i64, tpu.core_type = #tpu.core_type<tc>, window_params = [{}, {pipeline_mode = #tpu.pipeline_mode<synchronous>, transform_indices = @transform_1, window_bounds = array<i64: 1152, 128>}, {pipeline_mode = #tpu.pipeline_mode<synchronous>, transform_indices = @transform_2, window_bounds = array<i64: 1, 128>}, {pipeline_mode = #tpu.pipeline_mode<synchronous>, transform_indices = @transform_3, window_bounds = array<i64: 1152, 128>}, {pipeline_mode = #tpu.pipeline_mode<synchronous>, transform_indices = @transform_4, window_bounds = array<i64: 1, 128>}, {pipeline_mode = #tpu.pipeline_mode<synchronous>, transform_indices = @transform_5, window_bounds = array<i64: 1, 128>}, {pipeline_mode = #tpu.pipeline_mode<synchronous>, transform_indices = @transform_6, window_bounds = array<i64: 1, 128>}, {transform_indices = @transform_7, window_bounds = array<i64: 1, 8, 16, 128>}]} {
    %c8_i32 = arith.constant 8 : i32
    %0 = arith.muli %arg1, %c8_i32 : i32
    %1 = tpu.assume_multiple %0, 8 : i32
    %c0_i32 = arith.constant 0 : i32
    %c0_i32_0 = arith.constant 0 : i32
    %c0_i32_1 = arith.constant 0 : i32
    %2 = tpu.memref_slice %arg2[%arg0, %1, %c0_i32_0, %c0_i32_1] : memref<2x20x18x128xf32, #tpu.memory_space<any>> -> memref<1x12x18x128xf32, #tpu.memory_space<any>>
    %3 = tpu.memref_slice %arg12[%c0_i32] : memref<1x!tpu.dma_semaphore, #tpu.memory_space<semaphore_mem>> -> memref<1x!tpu.dma_semaphore, #tpu.memory_space<semaphore_mem>>
    %4 = tpu.memref_squeeze %3 : memref<1x!tpu.dma_semaphore, #tpu.memory_space<semaphore_mem>> -> memref<!tpu.dma_semaphore, #tpu.memory_space<semaphore_mem>>
    tpu.enqueue_dma source(%2 : memref<1x12x18x128xf32, #tpu.memory_space<any>>) target(%arg10 : memref<1x12x18x128xf32, #tpu.memory_space<vmem>>) target_semaphore(%4 : memref<!tpu.dma_semaphore, #tpu.memory_space<semaphore_mem>>)
    %c0_i32_2 = arith.constant 0 : i32
    %c0_i32_3 = arith.constant 0 : i32
    %c0_i32_4 = arith.constant 0 : i32
    %5 = tpu.memref_slice %arg2[%arg0, %1, %c0_i32_3, %c0_i32_4] : memref<2x20x18x128xf32, #tpu.memory_space<any>> -> memref<1x12x18x128xf32, #tpu.memory_space<any>>
    %6 = tpu.memref_slice %arg12[%c0_i32_2] : memref<1x!tpu.dma_semaphore, #tpu.memory_space<semaphore_mem>> -> memref<1x!tpu.dma_semaphore, #tpu.memory_space<semaphore_mem>>
    %7 = tpu.memref_squeeze %6 : memref<1x!tpu.dma_semaphore, #tpu.memory_space<semaphore_mem>> -> memref<!tpu.dma_semaphore, #tpu.memory_space<semaphore_mem>>
    tpu.wait_dma2 semaphore(%7 : memref<!tpu.dma_semaphore, #tpu.memory_space<semaphore_mem>>) src(%5 : memref<1x12x18x128xf32, #tpu.memory_space<any>>) dst(%arg10 : memref<1x12x18x128xf32, #tpu.memory_space<vmem>>)
    %c0 = arith.constant 0 : index
    %c0_5 = arith.constant 0 : index
    %c0_6 = arith.constant 0 : index
    %c0_7 = arith.constant 0 : index
    %8 = vector.load %arg10[%c0, %c0_5, %c0_6, %c0_7] : memref<1x12x18x128xf32, #tpu.memory_space<vmem>>, vector<1x12x18x128xf32>
    %9 = vector.shape_cast %8 : vector<1x12x18x128xf32> to vector<12x18x128xf32>
    %cst = arith.constant 0.000000e+00 : f32
    %10 = vector.broadcast %cst : f32 to vector<12x18x128xf32>
    %11 = arith.maximumf %9, %10 : vector<12x18x128xf32>
    %c0_8 = arith.constant 0 : index
    %c0_9 = arith.constant 0 : index
    %12 = vector.load %arg3[%c0_8, %c0_9] : memref<1152x128xf32, #tpu.memory_space<vmem>>, vector<1152x128xf32>
    %c0_10 = arith.constant 0 : index
    %c0_11 = arith.constant 0 : index
    %13 = vector.load %arg4[%c0_10, %c0_11] : memref<1x128xf32, #tpu.memory_space<vmem>>, vector<1x128xf32>
    %14 = vector.extract_strided_slice %11 {offsets = [0, 0, 0], sizes = [10, 16, 128], strides = [1, 1, 1]} : vector<12x18x128xf32> to vector<10x16x128xf32>
    %15 = vector.extract_strided_slice %11 {offsets = [0, 1, 0], sizes = [10, 16, 128], strides = [1, 1, 1]} : vector<12x18x128xf32> to vector<10x16x128xf32>
    %16 = vector.extract_strided_slice %11 {offsets = [0, 2, 0], sizes = [10, 16, 128], strides = [1, 1, 1]} : vector<12x18x128xf32> to vector<10x16x128xf32>
    %17 = vector.extract_strided_slice %11 {offsets = [1, 0, 0], sizes = [10, 16, 128], strides = [1, 1, 1]} : vector<12x18x128xf32> to vector<10x16x128xf32>
    %18 = vector.extract_strided_slice %11 {offsets = [1, 1, 0], sizes = [10, 16, 128], strides = [1, 1, 1]} : vector<12x18x128xf32> to vector<10x16x128xf32>
    %19 = vector.extract_strided_slice %11 {offsets = [1, 2, 0], sizes = [10, 16, 128], strides = [1, 1, 1]} : vector<12x18x128xf32> to vector<10x16x128xf32>
    %20 = vector.extract_strided_slice %11 {offsets = [2, 0, 0], sizes = [10, 16, 128], strides = [1, 1, 1]} : vector<12x18x128xf32> to vector<10x16x128xf32>
    %21 = vector.extract_strided_slice %11 {offsets = [2, 1, 0], sizes = [10, 16, 128], strides = [1, 1, 1]} : vector<12x18x128xf32> to vector<10x16x128xf32>
    %22 = vector.extract_strided_slice %11 {offsets = [2, 2, 0], sizes = [10, 16, 128], strides = [1, 1, 1]} : vector<12x18x128xf32> to vector<10x16x128xf32>
    %23 = tpu.concatenate %14, %15, %16, %17, %18, %19, %20, %21, %22 in 2 : vector<10x16x128xf32>, vector<10x16x128xf32>, vector<10x16x128xf32>, vector<10x16x128xf32>, vector<10x16x128xf32>, vector<10x16x128xf32>, vector<10x16x128xf32>, vector<10x16x128xf32>, vector<10x16x128xf32> -> vector<10x16x1152xf32>
    %24 = vector.shape_cast %23 : vector<10x16x1152xf32> to vector<160x1152xf32>
    %cst_12 = arith.constant dense<0.000000e+00> : vector<160x128xf32>
    %25 = tpu.matmul %24, %12, %cst_12 {dimension_numbers = #tpu.dot_dimension_numbers<[1], [0], [0], [1], [0, 0, 1, 1], [], []>} : vector<160x1152xf32>, vector<1152x128xf32>, vector<160x128xf32> -> vector<160x128xf32>
    %26 = vector.broadcast %13 : vector<1x128xf32> to vector<160x128xf32>
    %27 = arith.addf %25, %26 : vector<160x128xf32>
    %28 = vector.shape_cast %27 : vector<160x128xf32> to vector<10x16x128xf32>
    %cst_13 = arith.constant 0.000000e+00 : f32
    %29 = vector.broadcast %cst_13 : f32 to vector<10x16x128xf32>
    %30 = arith.maximumf %28, %29 : vector<10x16x128xf32>
    %cst_14 = arith.constant 0.000000e+00 : f32
    %31 = vector.broadcast %cst_14 : f32 to vector<10x1x128xf32>
    %c0_15 = arith.constant 0 : index
    %c0_16 = arith.constant 0 : index
    %c0_17 = arith.constant 0 : index
    %32 = vector.load %arg11[%c0_15, %c0_16, %c0_17] : memref<10x18x128xf32, #tpu.memory_space<vmem>>, vector<10x1x128xf32>
    tpu.vector_store %arg11[%c0_15, %c0_16, %c0_17], %31 {strides = array<i32>} : memref<10x18x128xf32, #tpu.memory_space<vmem>>, vector<10x1x128xf32>,
    %cst_18 = arith.constant 0.000000e+00 : f32
    %33 = vector.broadcast %cst_18 : f32 to vector<10x1x128xf32>
    %c0_19 = arith.constant 0 : index
    %c17 = arith.constant 17 : index
    %c0_20 = arith.constant 0 : index
    %34 = vector.load %arg11[%c0_19, %c17, %c0_20] : memref<10x18x128xf32, #tpu.memory_space<vmem>>, vector<10x1x128xf32>
    tpu.vector_store %arg11[%c0_19, %c17, %c0_20], %33 {strides = array<i32>} : memref<10x18x128xf32, #tpu.memory_space<vmem>>, vector<10x1x128xf32>,
    %c0_21 = arith.constant 0 : index
    %c1 = arith.constant 1 : index
    %c0_22 = arith.constant 0 : index
    %35 = vector.load %arg11[%c0_21, %c1, %c0_22] : memref<10x18x128xf32, #tpu.memory_space<vmem>>, vector<10x16x128xf32>
    tpu.vector_store %arg11[%c0_21, %c1, %c0_22], %30 {strides = array<i32>} : memref<10x18x128xf32, #tpu.memory_space<vmem>>, vector<10x16x128xf32>,
    %c0_i32_23 = arith.constant 0 : i32
    %36 = arith.cmpi eq, %arg1, %c0_i32_23 : i32
    %37 = arith.extui %36 : i1 to i32
    %c0_i32_24 = arith.constant 0 : i32
    %38 = arith.cmpi ne, %37, %c0_i32_24 : i32
    scf.if %38 {
      %cst_48 = arith.constant 0.000000e+00 : f32
      %98 = vector.broadcast %cst_48 : f32 to vector<1x18x128xf32>
      %c0_49 = arith.constant 0 : index
      %c0_50 = arith.constant 0 : index
      %c0_51 = arith.constant 0 : index
      %99 = vector.load %arg11[%c0_49, %c0_50, %c0_51] : memref<10x18x128xf32, #tpu.memory_space<vmem>>, vector<1x18x128xf32>
      tpu.vector_store %arg11[%c0_49, %c0_50, %c0_51], %98 {strides = array<i32>} : memref<10x18x128xf32, #tpu.memory_space<vmem>>, vector<1x18x128xf32>,
    } else {
    }
    %c1_i32 = arith.constant 1 : i32
    %39 = arith.cmpi eq, %arg1, %c1_i32 : i32
    %40 = arith.extui %39 : i1 to i32
    %c0_i32_25 = arith.constant 0 : i32
    %41 = arith.cmpi ne, %40, %c0_i32_25 : i32
    scf.if %41 {
      %cst_48 = arith.constant 0.000000e+00 : f32
      %98 = vector.broadcast %cst_48 : f32 to vector<1x18x128xf32>
      %c9 = arith.constant 9 : index
      %c0_49 = arith.constant 0 : index
      %c0_50 = arith.constant 0 : index
      %99 = vector.load %arg11[%c9, %c0_49, %c0_50] : memref<10x18x128xf32, #tpu.memory_space<vmem>>, vector<1x18x128xf32>
      tpu.vector_store %arg11[%c9, %c0_49, %c0_50], %98 {strides = array<i32>} : memref<10x18x128xf32, #tpu.memory_space<vmem>>, vector<1x18x128xf32>,
    } else {
    }
    %c0_26 = arith.constant 0 : index
    %c0_27 = arith.constant 0 : index
    %c0_28 = arith.constant 0 : index
    %42 = vector.load %arg11[%c0_26, %c0_27, %c0_28] : memref<10x18x128xf32, #tpu.memory_space<vmem>>, vector<10x18x128xf32>
    %c0_29 = arith.constant 0 : index
    %c0_30 = arith.constant 0 : index
    %43 = vector.load %arg5[%c0_29, %c0_30] : memref<1152x128xf32, #tpu.memory_space<vmem>>, vector<1152x128xf32>
    %c0_31 = arith.constant 0 : index
    %c0_32 = arith.constant 0 : index
    %44 = vector.load %arg6[%c0_31, %c0_32] : memref<1x128xf32, #tpu.memory_space<vmem>>, vector<1x128xf32>
    %45 = vector.extract_strided_slice %42 {offsets = [0, 0, 0], sizes = [8, 16, 128], strides = [1, 1, 1]} : vector<10x18x128xf32> to vector<8x16x128xf32>
    %46 = vector.extract_strided_slice %42 {offsets = [0, 1, 0], sizes = [8, 16, 128], strides = [1, 1, 1]} : vector<10x18x128xf32> to vector<8x16x128xf32>
    %47 = vector.extract_strided_slice %42 {offsets = [0, 2, 0], sizes = [8, 16, 128], strides = [1, 1, 1]} : vector<10x18x128xf32> to vector<8x16x128xf32>
    %48 = vector.extract_strided_slice %42 {offsets = [1, 0, 0], sizes = [8, 16, 128], strides = [1, 1, 1]} : vector<10x18x128xf32> to vector<8x16x128xf32>
    %49 = vector.extract_strided_slice %42 {offsets = [1, 1, 0], sizes = [8, 16, 128], strides = [1, 1, 1]} : vector<10x18x128xf32> to vector<8x16x128xf32>
    %50 = vector.extract_strided_slice %42 {offsets = [1, 2, 0], sizes = [8, 16, 128], strides = [1, 1, 1]} : vector<10x18x128xf32> to vector<8x16x128xf32>
    %51 = vector.extract_strided_slice %42 {offsets = [2, 0, 0], sizes = [8, 16, 128], strides = [1, 1, 1]} : vector<10x18x128xf32> to vector<8x16x128xf32>
    %52 = vector.extract_strided_slice %42 {offsets = [2, 1, 0], sizes = [8, 16, 128], strides = [1, 1, 1]} : vector<10x18x128xf32> to vector<8x16x128xf32>
    %53 = vector.extract_strided_slice %42 {offsets = [2, 2, 0], sizes = [8, 16, 128], strides = [1, 1, 1]} : vector<10x18x128xf32> to vector<8x16x128xf32>
    %54 = tpu.concatenate %45, %46, %47, %48, %49, %50, %51, %52, %53 in 2 : vector<8x16x128xf32>, vector<8x16x128xf32>, vector<8x16x128xf32>, vector<8x16x128xf32>, vector<8x16x128xf32>, vector<8x16x128xf32>, vector<8x16x128xf32>, vector<8x16x128xf32>, vector<8x16x128xf32> -> vector<8x16x1152xf32>
    %55 = vector.shape_cast %54 : vector<8x16x1152xf32> to vector<128x1152xf32>
    %cst_33 = arith.constant dense<0.000000e+00> : vector<128x128xf32>
    %56 = tpu.matmul %55, %43, %cst_33 {dimension_numbers = #tpu.dot_dimension_numbers<[1], [0], [0], [1], [0, 0, 1, 1], [], []>} : vector<128x1152xf32>, vector<1152x128xf32>, vector<128x128xf32> -> vector<128x128xf32>
    %57 = vector.broadcast %44 : vector<1x128xf32> to vector<128x128xf32>
    %58 = arith.addf %56, %57 : vector<128x128xf32>
    %59 = vector.shape_cast %58 : vector<128x128xf32> to vector<8x16x128xf32>
    %60 = tpu.iota {dimensions = array<i32: 2>} : vector<1x1x128xi32>
    %c4_i32 = arith.constant 4 : i32
    %61 = vector.broadcast %c4_i32 : i32 to vector<1x1x128xi32>
    %62 = arith.cmpi slt, %60, %61 : vector<1x1x128xi32>
    %cst_34 = arith.constant dense<0.000000e+00> : vector<8x16xf32>
    %63 = vector.multi_reduction <add>, %59, %cst_34 [2] : vector<8x16x128xf32> to vector<8x16xf32>
    %64 = vector.shape_cast %63 : vector<8x16xf32> to vector<8x16x1xf32>
    %cst_35 = arith.constant 2.500000e-01 : f32
    %65 = vector.broadcast %cst_35 : f32 to vector<8x16x1xf32>
    %66 = arith.mulf %64, %65 : vector<8x16x1xf32>
    %67 = vector.broadcast %66 : vector<8x16x1xf32> to vector<8x16x128xf32>
    %68 = arith.subf %59, %67 : vector<8x16x128xf32>
    %cst_36 = arith.constant 0.000000e+00 : f32
    %69 = vector.shape_cast %62 : vector<1x1x128xi1> to vector<1x1x128xi1>
    %70 = vector.broadcast %69 : vector<1x1x128xi1> to vector<8x16x128xi1>
    %71 = vector.broadcast %cst_36 : f32 to vector<8x16x128xf32>
    %72 = arith.select %70, %68, %71 : vector<8x16x128xi1>, vector<8x16x128xf32>
    %73 = arith.mulf %72, %72 : vector<8x16x128xf32>
    %cst_37 = arith.constant dense<0.000000e+00> : vector<8x16xf32>
    %74 = vector.multi_reduction <add>, %73, %cst_37 [2] : vector<8x16x128xf32> to vector<8x16xf32>
    %75 = vector.shape_cast %74 : vector<8x16xf32> to vector<8x16x1xf32>
    %cst_38 = arith.constant 2.500000e-01 : f32
    %76 = vector.broadcast %cst_38 : f32 to vector<8x16x1xf32>
    %77 = arith.mulf %75, %76 : vector<8x16x1xf32>
    %78 = vector.broadcast %66 : vector<8x16x1xf32> to vector<8x16x128xf32>
    %79 = arith.subf %59, %78 : vector<8x16x128xf32>
    %cst_39 = arith.constant 9.99999974E-6 : f32
    %80 = vector.broadcast %cst_39 : f32 to vector<8x16x1xf32>
    %81 = arith.addf %77, %80 : vector<8x16x1xf32>
    %82 = math.rsqrt %81 : vector<8x16x1xf32>
    %83 = vector.broadcast %82 : vector<8x16x1xf32> to vector<8x16x128xf32>
    %84 = arith.mulf %79, %83 : vector<8x16x128xf32>
    %c0_40 = arith.constant 0 : index
    %c0_41 = arith.constant 0 : index
    %85 = vector.load %arg7[%c0_40, %c0_41] : memref<1x128xf32, #tpu.memory_space<vmem>>, vector<1x128xf32>
    %86 = vector.shape_cast %85 : vector<1x128xf32> to vector<1x1x128xf32>
    %87 = vector.broadcast %86 : vector<1x1x128xf32> to vector<8x16x128xf32>
    %88 = arith.mulf %84, %87 : vector<8x16x128xf32>
    %c0_42 = arith.constant 0 : index
    %c0_43 = arith.constant 0 : index
    %89 = vector.load %arg8[%c0_42, %c0_43] : memref<1x128xf32, #tpu.memory_space<vmem>>, vector<1x128xf32>
    %90 = vector.shape_cast %89 : vector<1x128xf32> to vector<1x1x128xf32>
    %91 = vector.broadcast %90 : vector<1x1x128xf32> to vector<8x16x128xf32>
    %92 = arith.addf %88, %91 : vector<8x16x128xf32>
    %93 = vector.extract_strided_slice %9 {offsets = [2, 1, 0], sizes = [8, 16, 128], strides = [1, 1, 1]} : vector<12x18x128xf32> to vector<8x16x128xf32>
    %94 = arith.addf %93, %92 : vector<8x16x128xf32>
    %c0_44 = arith.constant 0 : index
    %c0_45 = arith.constant 0 : index
    %c0_46 = arith.constant 0 : index
    %c0_47 = arith.constant 0 : index
    %95 = vector.load %arg9[%c0_44, %c0_45, %c0_46, %c0_47] : memref<1x8x16x128xf32, #tpu.memory_space<vmem>>, vector<1x8x16x128xf32>
    %96 = vector.shape_cast %95 : vector<1x8x16x128xf32> to vector<8x16x128xf32>
    %97 = vector.shape_cast %94 : vector<8x16x128xf32> to vector<1x8x16x128xf32>
    tpu.vector_store %arg9[%c0_44, %c0_45, %c0_46, %c0_47], %97 {strides = array<i32>} : memref<1x8x16x128xf32, #tpu.memory_space<vmem>>, vector<1x8x16x128xf32>,
    return
  }
  func.func @transform_1(%arg0: i32, %arg1: i32) -> (i32, i32) {
    %c0_i32 = arith.constant 0 : i32
    %c0_i32_0 = arith.constant 0 : i32
    %c0_i32_1 = arith.constant 0 : i32
    return %c0_i32, %c0_i32_0 : i32, i32
  }
  func.func @transform_2(%arg0: i32, %arg1: i32) -> (i32, i32) {
    %c0_i32 = arith.constant 0 : i32
    %c0_i32_0 = arith.constant 0 : i32
    %c0_i32_1 = arith.constant 0 : i32
    return %c0_i32, %c0_i32_0 : i32, i32
  }
  func.func @transform_3(%arg0: i32, %arg1: i32) -> (i32, i32) {
    %c0_i32 = arith.constant 0 : i32
    %c0_i32_0 = arith.constant 0 : i32
    %c0_i32_1 = arith.constant 0 : i32
    return %c0_i32, %c0_i32_0 : i32, i32
  }
  func.func @transform_4(%arg0: i32, %arg1: i32) -> (i32, i32) {
    %c0_i32 = arith.constant 0 : i32
    %c0_i32_0 = arith.constant 0 : i32
    %c0_i32_1 = arith.constant 0 : i32
    return %c0_i32, %c0_i32_0 : i32, i32
  }
  func.func @transform_5(%arg0: i32, %arg1: i32) -> (i32, i32) {
    %c0_i32 = arith.constant 0 : i32
    %c0_i32_0 = arith.constant 0 : i32
    %c0_i32_1 = arith.constant 0 : i32
    return %c0_i32, %c0_i32_0 : i32, i32
  }
  func.func @transform_6(%arg0: i32, %arg1: i32) -> (i32, i32) {
    %c0_i32 = arith.constant 0 : i32
    %c0_i32_0 = arith.constant 0 : i32
    %c0_i32_1 = arith.constant 0 : i32
    return %c0_i32, %c0_i32_0 : i32, i32
  }
  func.func @transform_7(%arg0: i32, %arg1: i32) -> (i32, i32, i32, i32) {
    %c0_i32 = arith.constant 0 : i32
    %c0_i32_0 = arith.constant 0 : i32
    %c0_i32_1 = arith.constant 0 : i32
    return %arg0, %arg1, %c0_i32, %c0_i32_0 : i32, i32, i32, i32
  }
}

</mosaic_0001>

<bundles_post_ra>
// kernel: tpu_custom_call.1
= control target key start
LH: loop header
LB: loop body
LE: loop exit
PB: predicated region body
PF: predicated region fallthrough
CT: control target
= control target key end

     0   :  { %12 = vsyncpa [#allocation6], 0  ;;  %s6738_s0 = inlined_call_operand.vmem [shape: f32[2,20,18,128], index: 0, kind: input, shape index: {}]   ;;  %s6739_s1 = inlined_call_operand.vmem [shape: f32[1152,128], index: 1, kind: input, shape index: {}]   ;;  %s6740_s2 = inlined_call_operand.vmem [shape: f32[1,128], index: 2, kind: input, shape index: {}]   ;;  %s6741_s3 = inlined_call_operand.hbm [shape: f32[1152,128], index: 3, kind: input, shape index: {}]   ;;  %s6742_s4 = inlined_call_operand.vmem [shape: f32[1,128], index: 4, kind: input, shape index: {}]   ;;  %s6743_s5 = inlined_call_operand.vmem [shape: f32[1,128], index: 5, kind: input, shape index: {}]   ;;  %s6744_s6 = inlined_call_operand.vmem [shape: f32[1,128], index: 6, kind: input, shape index: {}]   ;;  %s6745_s7 = inlined_call_operand.hbm [shape: f32[2,16,16,128], index: 7, kind: output, shape index: {}]  }
   0x1   :  { %13 = vsyncpa [#allocation7], 0 }
   0x2   :  { %15 = vsyncpa [#allocation7 + $0x1], 0  ;;  %s4661_s24 = smov 0   ;;  %s4663_s25 = smov 0  }
   0x3   :  { %s4665_s26 = smov 0   ;;  %s4667_s27 = smov 0  }
   0x4   :  { %s4669_s28 = smov 0   ;;  %s4671_s29 = smov 0  }
   0x5   :  { %s4673_s30 = smov 0   ;;  %s4675_s8 = smov 0  }
   0x6 LB: > { %s3293_s9 = sadd.s32 4294967295, %s4609_s8   ;;  %s3294_s10 = sadd.s32 4294967294, %s4609_s8   ;;  %s4609_s8 = sphi %s4675_s8, %s21_s8   ;;  %s4605_s30 = sphi %s4673_s30, %s6874_s30   ;;  %s4601_s29 = sphi %s4671_s29, %s6873_s29   ;;  %s4597_s28 = sphi %s4669_s28, %s6872_s28   ;;  %s4593_s27 = sphi %s4667_s27, %s6871_s27   ;;  %s4589_s26 = sphi %s4665_s26, %s6870_s26   ;;  %s4585_s25 = sphi %s4663_s25, %s6869_s25   ;;  %s4581_s24 = sphi %s4661_s24, %s6868_s24  }
   0x7   : > { %s30_s11 = sadd.s32 1, %s4601_s29  ;;  %s33_s12 = sadd.s32 1, %s4605_s30 }
   0x8   : > { %p31_p0 = scmp.ge.s32.totalorder %s30_s11, 2  ;;  %s168_s13 = sadd.s32 1, %s4589_s26 }
   0x9   : > { %p178_p1 = scmp.ne.s32.totalorder %s4589_s26, %s4585_s25  ;;  %p179_p2 = scmp.eq.s32.totalorder %s3293_s9, 3 }
   0xa   : > { %s6876_s11 = smov (%p31_p0, %s30_s11), 0  ;;  %s6878_s12 = smov (!%p31_p0, %s33_s12), %s4605_s30 }
   0xb   : > { %6790 = sst [smem:[#allocation13_spill]] %s6876_s11  ;;  %s164_s14 = ssub.s32 %s4601_s29, %s6876_s11 }
   0xc   : > { %p4713_p3 = por %p179_p2, %p178_p1  ;;  %p35_p4 = scmp.ge.s32.totalorder %s6878_s12, 2 }
   0xd   : > { %p184_p5 = scmp.ne.s32.totalorder %s4585_s25, %s4581_s24  ;;  %p185_p6 = scmp.eq.s32.totalorder %s3294_s10, 3 }
   0xe   : > { %s6791_s15 = scalar_select %p4713_p3, 1, 0 }
   0xf   : > { %p3295_p7 = scmp.ge.s32.totalorder %s4609_s8, 1  ;;  %s6880_s12 = smov (%p35_p4, %s6878_s12), 0 }
  0x10   : > { %6792 = sst [smem:[#allocation14_spill]] %s6880_s12  ;;  %p4722_p8 = por %p185_p6, %p184_p5 }
  0x11   : > { %p192_p9 = scmp.lt.s32.totalorder %s4609_s8, 5  ;;  %s163_s17 = ssub.s32 %s4605_s30, %s6880_s12 }
  0x12   : > { %s6793_s16 = scalar_select %p4722_p8, 1, 0 }
  0x13   : > { %s165_s18 = sor.u32 %s164_s14, %s163_s17  ;;  %p4729_p10 = pnand %p3295_p7, %p192_p9 }
  0x14   : > { %p166_p11 = scmp.eq.s32.totalorder %s165_s18, 0  ;;  %p4733_p12 = scmp.eq.s32.totalorder %s3293_s9, 0 }
  0x15   : > { %s6794_s19 = scalar_select %p4729_p10, 1, 0 }
  0x16   : > { %s6795_s20 = scalar_select %p4733_p12, 1, 0 }
  0x17   : > { %p4365_p13 = pneg %p4729_p10  ;;  %s4611_s22 = smov [#allocation5]  }
  0x18   : > { %s4740_s21 = scalar_select %p166_p11, %s4589_s26, %s168_s13  }
  0x19   : > { %s210_s23 = sshll.u32 %s4611_s22, 4  ;;  %p4744_p0 = pnand %p4733_p12, %p4365_p13  ;;  %s211_s23 = int_to_ptr.vmem [resolvable:$true] %s210_s23 }
  0x1a   : > { %s4481_s9 = scalar_lea.hbm %s6741_s3, 18432 }
  0x1b   : > { %p4482_p1 = scmp.ne.s32.totalorder %s6741_s3, %s4481_s9  ;;  %p4483_p2 = pneg %p4744_p0 }
  0x1c   : > { %p4488_p6 = scmp.lt.u32.totalorder %s4481_s9, %s6741_s3 }
  0x1d   : > { %p4484_p4 = pnand %p4483_p2, %p4482_p1 }
  0x1f   : > { %p4485_p5 = pneg %p4484_p4 }
  0x21   : > { %p4490_p7 = pnand %p4488_p6, %p4485_p5 }
  0x23   : > { %4493 = shalt.err (!%p4490_p7)
}
  0x24   : > { %s4494_s11 = scalar_lea.vmem %s211_s23, 18432  ;;  %p4502_p8 = scmp.lt.s32.totalorder %s211_s23, %s211_s23 }
  0x25   : > { %p4495_p9 = scmp.ne.s32.totalorder %s211_s23, %s4494_s11  ;;  %p4503_p3 = scmp.lt.s32.totalorder %s4494_s11, %s4494_s11 }
  0x27   : > { %p4497_p11 = pnand %p4495_p9, %p4483_p2  ;;  %p4504_p12 = por %p4503_p3, %p4502_p8 }
  0x29   : > { %p4498_p13 = pneg %p4497_p11 }
  0x2b   : > { %p4505_p10 = pnand %p4504_p12, %p4498_p13 }
  0x2d   : > { %4508 = shalt.err (!%p4505_p10)
}
  0x2e   : > { %s4612_s12 = smov 128   ;;  %s4613_s14 = smov 8  }
  0x2f   : > { %4368 = dma.hbm_to_vmem [thread:$0]  (!%p4744_p0), %s6741_s3, 18432, %s211_s23, [#allocation6], %s4612_s12, %s4612_s12, %s4613_s14  }
  0x30   : > { %p6797_p1 = scmp.ne.s32.totalorder %s6794_s19, 0 }
  0x32   : > { %235 = sbr.rel (%p6797_p1) target bundleno = 1572 (0x624), region = 44 }
  0x39   : > { %p6798_p4 = scmp.ne.s32.totalorder %s6795_s20, 0 }
  0x3b   : > { %4570 = dma.done.wait (%p6798_p4), [#allocation6], 18432  }
  0x3c   : > { %4572 = vsyncadd (%p6798_p4), [#allocation6], 4294948864  ;;  %s257_s11 = sand.u32 1, %s4585_s25   ;;  %s3301_s9 = smul.u32 192, %s4593_s27 }
  0x3d   : > { %s4774_s10 = sshll.u32 %s257_s11, 7  ;;  %s263_s13 = smul.u32 480, %s4597_s28 }
  0x3e   : > { %s4819_s20 = scalar_lea.vmem [#allocation8], %s4774_s10 }
  0x3f   : > { %s264_s23 = sadd.s32 %s3301_s9, %s263_s13 }
  0x40   : > { %s4780_s12 = scalar_lea.vmem %s6738_s0, %s264_s23 }
  0x41   : > { %v325_v0 = vld [vmem:[%s4780_s12] sm:$0xff]  ;;  %v327_v1 = vld [vmem:[%s4780_s12 + $0x8] sm:$0xff]  ;;  %v329_v2 = vld [vmem:[%s4780_s12 + $0x18] sm:$0xff] }
  0x42   : > { %326 = vst [vmem:[#allocation2] sm:$0xff] %v325_v0  ;;  %328 = vst [vmem:[#allocation2 + $0x8] sm:$0xff] %v327_v1  ;;  %v331_v3 = vld [vmem:[%s4780_s12 + $0x20] sm:$0xff]  ;;  %v333_v4 = vld [vmem:[%s4780_s12 + $0x30] sm:$0xff] }
  0x43   : > { %330 = vst [vmem:[#allocation2 + $0x18] sm:$0xff] %v329_v2  ;;  %v335_v5 = vld [vmem:[%s4780_s12 + $0x38] sm:$0xff]  ;;  %332 = vst [vmem:[#allocation2 + $0x20] sm:$0xff] %v331_v3  ;;  %v337_v6 = vld [vmem:[%s4780_s12 + $0x48] sm:$0xff] }
  0x44   : > { %334 = vst [vmem:[#allocation2 + $0x30] sm:$0xff] %v333_v4  ;;  %336 = vst [vmem:[#allocation2 + $0x38] sm:$0xff] %v335_v5  ;;  %v339_v7 = vld [vmem:[%s4780_s12 + $0x50] sm:$0xff]  ;;  %v341_v8 = vld [vmem:[%s4780_s12 + $0x60] sm:$0xff] }
  0x45   : > { %338 = vst [vmem:[#allocation2 + $0x48] sm:$0xff] %v337_v6  ;;  %340 = vst [vmem:[#allocation2 + $0x50] sm:$0xff] %v339_v7  ;;  %v343_v9 = vld [vmem:[%s4780_s12 + $0x68] sm:$0xff]  ;;  %v345_v10 = vld [vmem:[%s4780_s12 + $0x78] sm:$0xff] }
  0x46   : > { %342 = vst [vmem:[#allocation2 + $0x60] sm:$0xff] %v341_v8  ;;  %v347_v11 = vld [vmem:[%s4780_s12 + $0x80] sm:$0xff]  ;;  %344 = vst [vmem:[#allocation2 + $0x68] sm:$0xff] %v343_v9  ;;  %v349_v12 = vld [vmem:[%s4780_s12 + $0x90] sm:$0xff] }
  0x47   : > { %346 = vst [vmem:[#allocation2 + $0x78] sm:$0xff] %v345_v10  ;;  %348 = vst [vmem:[#allocation2 + $0x80] sm:$0xff] %v347_v11  ;;  %v351_v13 = vld [vmem:[%s4780_s12 + $0x98] sm:$0xff]  ;;  %v353_v14 = vld [vmem:[%s4780_s12 + $0xa8] sm:$0xff] }
  0x48   : > { %350 = vst [vmem:[#allocation2 + $0x90] sm:$0xff] %v349_v12  ;;  %352 = vst [vmem:[#allocation2 + $0x98] sm:$0xff] %v351_v13  ;;  %v355_v15 = vld [vmem:[%s4780_s12 + $0xb0] sm:$0xff]  ;;  %v357_v16 = vld [vmem:[%s4780_s12 + $0xc0] sm:$0xff] }
  0x49   : > { %354 = vst [vmem:[#allocation2 + $0xa8] sm:$0xff] %v353_v14  ;;  %v359_v17 = vld [vmem:[%s4780_s12 + $0xc8] sm:$0xff]  ;;  %356 = vst [vmem:[#allocation2 + $0xb0] sm:$0xff] %v355_v15  ;;  %v361_v18 = vld [vmem:[%s4780_s12 + $0xd8] sm:$0xff] }
  0x4a   : > { %358 = vst [vmem:[#allocation2 + $0xc0] sm:$0xff] %v357_v16  ;;  %360 = vst [vmem:[#allocation2 + $0xc8] sm:$0xff] %v359_v17  ;;  %v363_v19 = vld [vmem:[%s4780_s12 + $0xe0] sm:$0xff]  ;;  %v365_v20 = vld [vmem:[%s4780_s12 + $0xf0] sm:$0xff] }
  0x4b   : > { %362 = vst [vmem:[#allocation2 + $0xd8] sm:$0xff] %v361_v18  ;;  %364 = vst [vmem:[#allocation2 + $0xe0] sm:$0xff] %v363_v19  ;;  %v367_v21 = vld [vmem:[%s4780_s12 + $0xf8] sm:$0xff]  ;;  %v369_v22 = vld [vmem:[%s4780_s12 + $0x108] sm:$0xff] }
  0x4c   : > { %366 = vst [vmem:[#allocation2 + $0xf0] sm:$0xff] %v365_v20  ;;  %v371_v23 = vld [vmem:[%s4780_s12 + $0x110] sm:$0xff]  ;;  %368 = vst [vmem:[#allocation2 + $0xf8] sm:$0xff] %v367_v21  ;;  %v3303_v25 = vld [vmem:[%s4780_s12 + $0x28] sm:$0x3] }
  0x4d   : > { %370 = vst [vmem:[#allocation2 + $0x108] sm:$0xff] %v369_v22  ;;  %372 = vst [vmem:[#allocation2 + $0x110] sm:$0xff] %v371_v23  ;;  %v3302_v24 = vld [vmem:[%s4780_s12 + $0x10] sm:$0x3]  ;;  %v3304_v26 = vld [vmem:[%s4780_s12 + $0x40] sm:$0x3] }
  0x4e   : > { %383 = vst [vmem:[#allocation2 + $0x10] sm:$0x3] %v3302_v24  ;;  %385 = vst [vmem:[#allocation2 + $0x28] sm:$0x3] %v3303_v25  ;;  %v3305_v27 = vld [vmem:[%s4780_s12 + $0x58] sm:$0x3] }
  0x4f   : > { %387 = vst [vmem:[#allocation2 + $0x40] sm:$0x3] %v3304_v26  ;;  %v3306_v28 = vld [vmem:[%s4780_s12 + $0x70] sm:$0x3]  ;;  %v3307_v29 = vld [vmem:[%s4780_s12 + $0x88] sm:$0x3] }
  0x50   : > { %389 = vst [vmem:[#allocation2 + $0x58] sm:$0x3] %v3305_v27  ;;  %391 = vst [vmem:[#allocation2 + $0x70] sm:$0x3] %v3306_v28  ;;  %v3308_v30 = vld [vmem:[%s4780_s12 + $0xa0] sm:$0x3] }
  0x51   : > { %393 = vst [vmem:[#allocation2 + $0x88] sm:$0x3] %v3307_v29  ;;  %v3309_v31 = vld [vmem:[%s4780_s12 + $0xb8] sm:$0x3]  ;;  %v3310_v32 = vld [vmem:[%s4780_s12 + $0xd0] sm:$0x3] }
  0x52   : > { %395 = vst [vmem:[#allocation2 + $0xa0] sm:$0x3] %v3308_v30  ;;  %397 = vst [vmem:[#allocation2 + $0xb8] sm:$0x3] %v3309_v31  ;;  %v3311_v33 = vld [vmem:[%s4780_s12 + $0xe8] sm:$0x3] }
  0x53   : > { %399 = vst [vmem:[#allocation2 + $0xd0] sm:$0x3] %v3310_v32  ;;  %v3312_v34 = vld [vmem:[%s4780_s12 + $0x100] sm:$0x3]  ;;  %v3313_v35 = vld [vmem:[%s4780_s12 + $0x118] sm:$0x3] }
  0x54   : > { %401 = vst [vmem:[#allocation2 + $0xe8] sm:$0x3] %v3311_v33  ;;  %403 = vst [vmem:[#allocation2 + $0x100] sm:$0x3] %v3312_v34 }
  0x55   : > { %405 = vst [vmem:[#allocation2 + $0x118] sm:$0x3] %v3313_v35 }
  0x56   : > { %409 = vsyncadd [#allocation4], 3456 }
  0x57   : > { %4573 = dma.done.wait [#allocation4], 3456 }
  0x58   : > { %4574 = vsyncadd [#allocation4], 4294963840  ;;  %v4614_v36 = vmov 0.0   ;;  %v6758_v37 = vmov 0.0|0.0   ;;  %v487_v38 = vld [vmem:[%s6739_s1] sm:$0xff]  ;;  %v488_v39 = vld [vmem:[%s6739_s1 + $0x8] sm:$0xff] }
  0x59   : > { %1689 = vst [vmem:[#allocation3] sm:$0x1] %v4614_v36  ;;  %1690 = vst [vmem:[#allocation3 + $0x18] sm:$0x1] %v4614_v36  ;;  %3835 = vmatprep.subr.bf16.mxu0 %v6758_v37  ;;  %v489_v40 = vld [vmem:[%s6739_s1 + $0x10] sm:$0xff]  ;;  %v3836_v41 = vpack.c.bf16 %v488_v39, %v487_v38  ;;  %v490_v42 = vld [vmem:[%s6739_s1 + $0x18] sm:$0xff] }
  0x5a   : > { %1691 = vst [vmem:[#allocation3 + $0x30] sm:$0x1] %v4614_v36  ;;  %1692 = vst [vmem:[#allocation3 + $0x48] sm:$0x1] %v4614_v36  ;;  %v3839_v43 = vpack.c.bf16 %v490_v42, %v489_v40  ;;  %v491_v44 = vld [vmem:[%s6739_s1 + $0x20] sm:$0xff]  ;;  %v492_v45 = vld [vmem:[%s6739_s1 + $0x28] sm:$0xff] }
  0x5b   : > { %1693 = vst [vmem:[#allocation3 + $0x60] sm:$0x1] %v4614_v36  ;;  %1694 = vst [vmem:[#allocation3 + $0x78] sm:$0x1] %v4614_v36  ;;  %3837 = vmatpush1.bf16.msra.mxu0 %v3836_v41  ;;  %v3842_v46 = vpack.c.bf16 %v492_v45, %v491_v44  ;;  %v493_v47 = vld [vmem:[%s6739_s1 + $0x30] sm:$0xff]  ;;  %v494_v48 = vld [vmem:[%s6739_s1 + $0x38] sm:$0xff] }
  0x5c   : > { %1695 = vst [vmem:[#allocation3 + $0x90] sm:$0x1] %v4614_v36  ;;  %1696 = vst [vmem:[#allocation3 + $0xa8] sm:$0x1] %v4614_v36  ;;  %3838 = vmatprep.subr.bf16.mxu0 %v6758_v37  ;;  %v415_v49 = vld [vmem:[#allocation2] sm:$0xff]  ;;  %v3845_v50 = vpack.c.bf16 %v494_v48, %v493_v47  ;;  %v416_v51 = vld [vmem:[#allocation2 + $0x8] sm:$0xff] }
  0x5d   : > { %1697 = vst [vmem:[#allocation3 + $0xc0] sm:$0x1] %v4614_v36  ;;  %1698 = vst [vmem:[#allocation3 + $0xd8] sm:$0x1] %v4614_v36  ;;  %v4848_v52 = vmax.f32 %v415_v49, 0.0  ;;  %v495_v53 = vld [vmem:[%s6739_s1 + $0x40] sm:$0xff] }
  0x5e   : > { %1699 = vst [vmem:[#allocation3 + $0x11] sm:$0x1] %v4614_v36  ;;  %1700 = vst [vmem:[#allocation3 + $0x29] sm:$0x1] %v4614_v36  ;;  %v496_v54 = vld [vmem:[%s6739_s1 + $0x48] sm:$0xff]  ;;  %v4857_v55 = vmax.f32 %v416_v51, 0.0 }
  0x5f   : > { %1701 = vst [vmem:[#allocation3 + $0x41] sm:$0x1] %v4614_v36  ;;  %1702 = vst [vmem:[#allocation3 + $0x59] sm:$0x1] %v4614_v36  ;;  %3840 = vmatpush1.bf16.msra.mxu0 %v3839_v43  ;;  %vm662_vm0 = vcmask 1046528   ;;  %v663_v56 = vrot.slane %v4848_v52, 1  ;;  %v3848_v58 = vpack.c.bf16 %v496_v54, %v495_v53 }
  0x60   : > { %1703 = vst [vmem:[#allocation3 + $0x71] sm:$0x1] %v4614_v36  ;;  %1704 = vst [vmem:[#allocation3 + $0x89] sm:$0x1] %v4614_v36  ;;  %3841 = vmatprep.subr.bf16.mxu0 %v6758_v37  ;;  %v664_v57 = vrot.slane %v4857_v55, 1  ;;  %v497_v59 = vld [vmem:[%s6739_s1 + $0x50] sm:$0xff] }
  0x61   : > { %1705 = vst [vmem:[#allocation3 + $0xa1] sm:$0x1] %v4614_v36  ;;  %1706 = vst [vmem:[#allocation3 + $0xb9] sm:$0x1] %v4614_v36  ;;  %v498_v60 = vld [vmem:[%s6739_s1 + $0x58] sm:$0xff]  ;;  %v499_v63 = vld [vmem:[%s6739_s1 + $0x60] sm:$0xff] }
  0x62   : > { %1707 = vst [vmem:[#allocation3 + $0xd1] sm:$0x1] %v4614_v36  ;;  %1708 = vst [vmem:[#allocation3 + $0xe9] sm:$0x1] %v4614_v36  ;;  %v665_v61 = vsel %vm662_vm0, %v663_v56, %v664_v57  ;;  %v3851_v62 = vpack.c.bf16 %v498_v60, %v497_v59  ;;  %v500_v0 = vld [vmem:[%s6739_s1 + $0x68] sm:$0xff]  ;;  %v734_v1 = vrot.slane %v4848_v52, 2 }
  0x63   : > { %3843 = vmatpush1.bf16.msra.mxu0 %v3842_v46  ;;  %908 = vmatprep.mubr.f32.mxu0 %v665_v61  ;;  %v735_v2 = vrot.slane %v4857_v55, 2  ;;  %vm733_vm1 = vcmask 1045504   ;;  %v3854_v3 = vpack.c.bf16 %v500_v0, %v499_v63  ;;  %v501_v4 = vld [vmem:[%s6739_s1 + $0x70] sm:$0xff]  ;;  %v502_v5 = vld [vmem:[%s6739_s1 + $0x78] sm:$0xff]  ;;  %v503_v8 = vld [vmem:[%s6739_s1 + $0x80] sm:$0xff]  ;;  %p3315_p3 = scmp.ne.s32.totalorder %s4593_s27, 0 }
  0x64   : > { %3844 = vmatprep.subr.bf16.mxu0 %v6758_v37  ;;  %v3857_v7 = vpack.c.bf16 %v502_v5, %v501_v4  ;;  %v504_v9 = vld [vmem:[%s6739_s1 + $0x88] sm:$0xff]  ;;  %v417_v11 = vld [vmem:[#allocation2 + $0x10] sm:$0x3]  ;;  %v506_v13 = vld [vmem:[%s6739_s1 + $0x98] sm:$0xff] }
  0x65   : > { %v4888_v6 = vsel %vm733_vm1, %v734_v1, %v735_v2  ;;  %v3860_v10 = vpack.c.bf16 %v504_v9, %v503_v8  ;;  %v505_v12 = vld [vmem:[%s6739_s1 + $0x90] sm:$0xff]  ;;  %v453_v14 = vmax.f32 %v417_v11, 0.0  ;;  %v4906_v16 = vld [vmem:[#allocation2 + $0x38] sm:$0xff]  ;;  %v4908_v18 = vld [vmem:[#allocation2 + $0x40] sm:$0x3] }
  0x66   : > { %v4904_v15 = vld [vmem:[#allocation2 + $0x30] sm:$0xff]  ;;  %6800 = vst [vmem:[#allocation16_spill] sm:$0xff] %v4906_v16  ;;  %v3863_v17 = vpack.c.bf16 %v506_v13, %v505_v12  ;;  %6801 = vst [vmem:[#allocation17_spill] sm:$0xff] %v4908_v18  ;;  %v507_v19 = vld [vmem:[%s6739_s1 + $0xa0] sm:$0xff]  ;;  %v4921_v23 = vmax.f32 %v4906_v16, 0.0  ;;  %v459_v24 = vmax.f32 %v4908_v18, 0.0 }
  0x67   : > { %3846 = vmatpush1.bf16.msra.mxu0 %v3845_v50  ;;  %6799 = vst [vmem:[#allocation15_spill] sm:$0xff] %v4904_v15  ;;  %v508_v20 = vld [vmem:[%s6739_s1 + $0xa8] sm:$0xff]  ;;  %v737_v21 = vrot.slane %v453_v14, 2  ;;  %v4918_v22 = vmax.f32 %v4904_v15, 0.0  ;;  %v509_v29 = vld [vmem:[%s6739_s1 + $0xb0] sm:$0xff]  ;;  %v510_v30 = vld [vmem:[%s6739_s1 + $0xb8] sm:$0xff] }
  0x68   : > { %3847 = vmatprep.subr.bf16.mxu0 %v6758_v37  ;;  %v3866_v26 = vpack.c.bf16 %v508_v20, %v507_v19  ;;  %v745_v28 = vrot.slane %v4921_v23, 2  ;;  %v747_v31 = vrot.slane %v459_v24, 2  ;;  %v3869_v34 = vpack.c.bf16 %v510_v30, %v509_v29  ;;  %v511_v35 = vld [vmem:[%s6739_s1 + $0xc0] sm:$0xff]  ;;  %v512_v36 = vld [vmem:[%s6739_s1 + $0xc8] sm:$0xff]  ;;  %v513_v39 = vld [vmem:[%s6739_s1 + $0xd0] sm:$0xff] }
  0x69   : > { %v4925_v25 = vsel %vm733_vm1, %v735_v2, %v737_v21  ;;  %v744_v27 = vrot.slane %v4918_v22, 2  ;;  %v3872_v38 = vpack.c.bf16 %v512_v36, %v511_v35  ;;  %v514_v40 = vld [vmem:[%s6739_s1 + $0xd8] sm:$0xff]  ;;  %v515_v42 = vld [vmem:[%s6739_s1 + $0xe0] sm:$0xff]  ;;  %v516_v43 = vld [vmem:[%s6739_s1 + $0xe8] sm:$0xff]  ;;  %v666_v53 = vrot.slane %v453_v14, 1 }
  0x6a   : > { %v4942_v33 = vsel %vm733_vm1, %v745_v28, %v747_v31  ;;  %v3875_v41 = vpack.c.bf16 %v514_v40, %v513_v39  ;;  %v3878_v44 = vpack.c.bf16 %v516_v43, %v515_v42  ;;  %v517_v45 = vld [vmem:[%s6739_s1 + $0xf0] sm:$0xff]  ;;  %v518_v46 = vld [vmem:[%s6739_s1 + $0xf8] sm:$0xff]  ;;  %v419_v48 = vld [vmem:[#allocation2 + $0x20] sm:$0xff]  ;;  %v673_v8 = vrot.slane %v4918_v22, 1 }
  0x6b   : > { %3849 = vmatpush1.bf16.msra.mxu0 %v3848_v58  ;;  %v4939_v32 = vsel %vm733_vm1, %v744_v27, %v745_v28  ;;  %v418_v47 = vld [vmem:[#allocation2 + $0x18] sm:$0xff]  ;;  %v3881_v49 = vpack.c.bf16 %v518_v46, %v517_v45  ;;  %v519_v50 = vld [vmem:[%s6739_s1 + $0x100] sm:$0xff]  ;;  %v520_v51 = vld [vmem:[%s6739_s1 + $0x108] sm:$0xff]  ;;  %v4982_v56 = vmax.f32 %v419_v48, 0.0  ;;  %v667_v60 = vsel %vm662_vm0, %v664_v57, %v666_v53 }
  0x6c   : > { %3850 = vmatprep.subr.bf16.mxu0 %v6758_v37  ;;  %3749 = vmatprep.mubr.f32.mxu1 %v4939_v32  ;;  %v4980_v54 = vmax.f32 %v418_v47, 0.0  ;;  %v4984_v58 = vld [vmem:[#allocation2 + $0x28] sm:$0x3]  ;;  %v3884_v59 = vpack.c.bf16 %v520_v51, %v519_v50  ;;  %v521_v61 = vld [vmem:[%s6739_s1 + $0x110] sm:$0xff]  ;;  %v523_v4 = vld [vmem:[%s6739_s1 + $0x120] sm:$0xff]  ;;  %v674_v9 = vrot.slane %v4921_v23, 1 }
  0x6d   : > { %v669_v0 = vrot.slane %v4982_v56, 1  ;;  %v6756_v1 = vmax.f32 %v4984_v58, 0.0  ;;  %v524_v5 = vld [vmem:[%s6739_s1 + $0x128] sm:$0xff]  ;;  %v5028_v12 = vld [vmem:[#allocation2 + $0x50] sm:$0xff]  ;;  %v527_v19 = vld [vmem:[%s6739_s1 + $0x140] sm:$0xff] }
  0x6e   : > { %v668_v63 = vrot.slane %v4980_v54, 1  ;;  %v5026_v11 = vld [vmem:[#allocation2 + $0x48] sm:$0xff]  ;;  %6803 = vst [vmem:[#allocation19_spill] sm:$0xff] %v5028_v12  ;;  %v5033_v14 = vsel %vm662_vm0, %v673_v8, %v674_v9  ;;  %v5050_v27 = vld [vmem:[#allocation2 + $0x58] sm:$0x3]  ;;  %v529_v31 = vld [vmem:[%s6739_s1 + $0x150] sm:$0xff] }
  0x6f   : > { %3852 = vmatpush1.bf16.msra.mxu0 %v3851_v62  ;;  %v522_v62 = vld [vmem:[%s6739_s1 + $0x118] sm:$0xff]  ;;  %6802 = vst [vmem:[#allocation18_spill] sm:$0xff] %v5026_v11  ;;  %v528_v20 = vld [vmem:[%s6739_s1 + $0x148] sm:$0xff]  ;;  %v5045_v21 = vmax.f32 %v5026_v11, 0.0  ;;  %6804 = vst [vmem:[#allocation20_spill] sm:$0xff] %v5050_v27  ;;  %v6755_v35 = vmax.f32 %v5050_v27, 0.0 }
  0x70   : > { %3853 = vmatprep.subr.bf16.mxu0 %v6758_v37  ;;  %v3887_v2 = vpack.c.bf16 %v522_v62, %v521_v61  ;;  %v5002_v57 = vsel %vm662_vm0, %v668_v63, %v669_v0  ;;  %v5067_v36 = vld [vmem:[#allocation2 + $0x60] sm:$0xff]  ;;  %v532_v45 = vld [vmem:[%s6739_s1 + $0x168] sm:$0xff]  ;;  %v5091_v46 = vld [vmem:[#allocation2 + $0x70] sm:$0x3] }
  0x71   : > { %v678_v29 = vrot.slane %v5045_v21, 1  ;;  %6805 = vst [vmem:[#allocation21_spill] sm:$0xff] %v5067_v36  ;;  %v5080_v42 = vmax.f32 %v5067_v36, 0.0  ;;  %6807 = vst [vmem:[#allocation23_spill] sm:$0xff] %v5091_v46  ;;  %v6754_v51 = vmax.f32 %v5091_v46, 0.0  ;;  %v533_v53 = vld [vmem:[%s6739_s1 + $0x170] sm:$0xff] }
  0x72   : > { %v5110_v61 = vld [vmem:[#allocation2 + $0x80] sm:$0xff]  ;;  %v577_v16 = vld [vmem:[%s6739_s1 + $0x2d0] sm:$0xff] }
  0x73   : > { %3855 = vmatpush1.bf16.msra.mxu0 %v3854_v3  ;;  %v671_v3 = vrot.slane %v6756_v1, 1  ;;  %6809 = vst [vmem:[#allocation25_spill] sm:$0xff] %v5110_v61  ;;  %v547_v1 = vld [vmem:[%s6739_s1 + $0x1e0] sm:$0xff] }
  0x74   : > { %3856 = vmatprep.subr.bf16.mxu0 %v6758_v37  ;;  %v555_v36 = vld [vmem:[%s6739_s1 + $0x220] sm:$0xff] }
  0x75   : > { %v579_v18 = vld [vmem:[%s6739_s1 + $0x2e0] sm:$0xff] }
  0x77   : > { %3858 = vmatpush1.bf16.msra.mxu0 %v3857_v7  ;;  %v5016_v7 = vsel %vm662_vm0, %v669_v0, %v671_v3  ;;  %v686_v0 = vrot.slane %v6754_v51, 1  ;;  %v5124_v3 = vmax.f32 %v5110_v61, 0.0  ;;  %v5290_v61 = vld [vmem:[#allocation2 + $0xe8] sm:$0x3] }
  0x78   : > { %3859 = vmatprep.subr.bf16.mxu0 %v6758_v37 }
  0x7b   : > { %3861 = vmatpush1.bf16.msra.mxu0 %v3860_v10  ;;  %v525_v10 = vld [vmem:[%s6739_s1 + $0x130] sm:$0xff] }
  0x7c   : > { %3862 = vmatprep.subr.bf16.mxu0 %v6758_v37 }
  0x7f   : > { %3864 = vmatpush1.bf16.msra.mxu0 %v3863_v17  ;;  %v676_v17 = vrot.slane %v459_v24, 1  ;;  %v3896_v24 = vpack.c.bf16 %v528_v20, %v527_v19  ;;  %v538_v19 = vld [vmem:[%s6739_s1 + $0x198] sm:$0xff]  ;;  %v5149_v20 = vld [vmem:[#allocation2 + $0x90] sm:$0xff] }
  0x80   : > { %3865 = vmatprep.subr.bf16.mxu0 %v6758_v37  ;;  %6811 = vst [vmem:[#allocation27_spill] sm:$0xff] %v5149_v20 }
  0x81   : > { %v5055_v28 = vsel %vm662_vm0, %v674_v9, %v676_v17  ;;  %v537_v17 = vld [vmem:[%s6739_s1 + $0x190] sm:$0xff] }
  0x83   : > { %3867 = vmatpush1.bf16.msra.mxu0 %v3866_v26  ;;  %v5048_v26 = vmax.f32 %v5028_v12, 0.0  ;;  %v557_v12 = vld [vmem:[%s6739_s1 + $0x230] sm:$0xff] }
  0x84   : > { %3868 = vmatprep.subr.bf16.mxu0 %v6758_v37 }
  0x85   : > { %v679_v30 = vrot.slane %v5048_v26, 1 }
  0x87   : > { %3870 = vmatpush1.bf16.msra.mxu0 %v3869_v34  ;;  %v530_v34 = vld [vmem:[%s6739_s1 + $0x158] sm:$0xff]  ;;  %v5074_v40 = vsel %vm662_vm0, %v678_v29, %v679_v30  ;;  %v3911_v29 = vpack.c.bf16 %v538_v19, %v537_v17 }
  0x88   : > { %3871 = vmatprep.subr.bf16.mxu0 %v6758_v37  ;;  %v3899_v39 = vpack.c.bf16 %v530_v34, %v529_v31  ;;  %v5162_v34 = vmax.f32 %v5149_v20, 0.0 }
  0x8a   : > { %6813 = vst [vmem:[#allocation29_spill] sm:$0xff] %v5162_v34 }
  0x8b   : > { %3873 = vmatpush1.bf16.msra.mxu0 %v3872_v38  ;;  %v5069_v38 = vld [vmem:[#allocation2 + $0x68] sm:$0xff] }
  0x8c   : > { %3874 = vmatprep.subr.bf16.mxu0 %v6758_v37  ;;  %6806 = vst [vmem:[#allocation22_spill] sm:$0xff] %v5069_v38  ;;  %v5083_v43 = vmax.f32 %v5069_v38, 0.0  ;;  %v740_v38 = vrot.slane %v4982_v56, 2 }
  0x8e   : > { %v684_v50 = vrot.slane %v5083_v43, 1 }
  0x8f   : > { %3876 = vmatpush1.bf16.msra.mxu0 %v3875_v41  ;;  %v681_v41 = vrot.slane %v6755_v35, 1 }
  0x90   : > { %3877 = vmatprep.subr.bf16.mxu0 %v6758_v37  ;;  %v5137_v9 = vsel %vm662_vm0, %v684_v50, %v686_v0  ;;  %v542_v0 = vld [vmem:[%s6739_s1 + $0x1b8] sm:$0xff] }
  0x91   : > { %v5096_v48 = vsel %vm662_vm0, %v679_v30, %v681_v41  ;;  %v539_v41 = vld [vmem:[%s6739_s1 + $0x1a0] sm:$0xff] }
  0x93   : > { %3879 = vmatpush1.bf16.msra.mxu0 %v3878_v44  ;;  %v531_v44 = vld [vmem:[%s6739_s1 + $0x160] sm:$0xff] }
  0x94   : > { %3880 = vmatprep.subr.bf16.mxu0 %v6758_v37  ;;  %v3902_v47 = vpack.c.bf16 %v532_v45, %v531_v44  ;;  %v540_v44 = vld [vmem:[%s6739_s1 + $0x1a8] sm:$0xff]  ;;  %v5173_v45 = vld [vmem:[#allocation2 + $0xa0] sm:$0x3] }
  0x95   : > { %6815 = vst [vmem:[#allocation31_spill] sm:$0xff] %v5173_v45 }
  0x97   : > { %3882 = vmatpush1.bf16.msra.mxu0 %v3881_v49  ;;  %v683_v49 = vrot.slane %v5080_v42, 1 }
  0x98   : > { %3883 = vmatprep.subr.bf16.mxu0 %v6758_v37 }
  0x99   : > { %v5115_v63 = vsel %vm662_vm0, %v683_v49, %v684_v50  ;;  %v693_v50 = vrot.slane %v5162_v34, 1 }
  0x9a   : > { %909 = vmatmul.mubr.f32.vlgmr.msra.gmra.mrb[0].mxu0 %v4848_v52  ;;  %v3890_v52 = vpack.c.bf16 %v524_v5, %v523_v4  ;;  %v535_v4 = vld [vmem:[%s6739_s1 + $0x180] sm:$0xff]  ;;  %v536_v5 = vld [vmem:[%s6739_s1 + $0x188] sm:$0xff] }
  0x9b   : > { %3885 = vmatpush1.bf16.msra.mxu0 %v3884_v59  ;;  %913 = vmatprep.mubr.f32.mxu0 %v667_v60  ;;  %v534_v59 = vld [vmem:[%s6739_s1 + $0x178] sm:$0xff]  ;;  %v3908_v8 = vpack.c.bf16 %v536_v5, %v535_v4  ;;  %v5190_v4 = vld [vmem:[#allocation2 + $0xa8] sm:$0xff]  ;;  %v5192_v5 = vld [vmem:[#allocation2 + $0xb0] sm:$0xff] }
  0x9c   : > { %3886 = vmatprep.subr.bf16.mxu0 %v6758_v37  ;;  %v5108_v60 = vld [vmem:[#allocation2 + $0x78] sm:$0xff]  ;;  %v3905_v62 = vpack.c.bf16 %v534_v59, %v533_v53  ;;  %v6752_v59 = vmax.f32 %v5173_v45, 0.0  ;;  %6816 = vst [vmem:[#allocation32_spill] sm:$0xff] %v5190_v4  ;;  %6817 = vst [vmem:[#allocation33_spill] sm:$0xff] %v5192_v5  ;;  %v5202_v17 = vmax.f32 %v5190_v4, 0.0  ;;  %v5205_v19 = vmax.f32 %v5192_v5, 0.0 }
  0x9d   : > { %6808 = vst [vmem:[#allocation24_spill] sm:$0xff] %v5108_v60  ;;  %v549_v5 = vld [vmem:[%s6739_s1 + $0x1f0] sm:$0xff] }
  0x9e   : > { %914 = vmatmul.mubr.f32.gmra.mrb[2].mxu0 %v4857_v55  ;;  %v526_v55 = vld [vmem:[%s6739_s1 + $0x138] sm:$0xff]  ;;  %6818 = vst [vmem:[#allocation34_spill] sm:$0xff] %v5202_v17  ;;  %6819 = vst [vmem:[#allocation35_spill] sm:$0xff] %v5205_v19 }
  0x9f   : > { %3888 = vmatpush1.bf16.msra.mxu0 %v3887_v2  ;;  %918 = vmatprep.mubr.f32.mxu0 %v5002_v57  ;;  %v3893_v13 = vpack.c.bf16 %v526_v55, %v525_v10  ;;  %v5121_v2 = vmax.f32 %v5108_v60, 0.0  ;;  %v689_v55 = vrot.slane %v5124_v3, 1 }
  0xa0   : > { %3889 = vmatprep.subr.bf16.mxu0 %v6758_v37 }
  0xa1   : > { %v688_v10 = vrot.slane %v5121_v2, 1 }
  0xa2   : > { %919 = vmatmul.mubr.f32.gmra.mrb[4].mxu0 %v4980_v54 }
  0xa3   : > { %923 = vmatprep.mubr.f32.mxu0 %v5016_v7  ;;  %3891 = vmatpush1.bf16.msra.mxu0 %v3890_v52  ;;  %v5132_v52 = vld [vmem:[#allocation2 + $0x88] sm:$0x3]  ;;  %v5156_v30 = vsel %vm662_vm0, %v688_v10, %v689_v55 }
  0xa4   : > { %3892 = vmatprep.subr.bf16.mxu0 %v6758_v37  ;;  %6810 = vst [vmem:[#allocation26_spill] sm:$0xff] %v5132_v52 }
  0xa6   : > { %924 = vmatmul.mubr.f32.gmra.mrb[6].mxu0 %v4982_v56 }
  0xa7   : > { %928 = vmatprep.mubr.f32.mxu0 %v5033_v14  ;;  %3894 = vmatpush1.bf16.msra.mxu0 %v3893_v13  ;;  %v6753_v13 = vmax.f32 %v5132_v52, 0.0 }
  0xa8   : > { %3895 = vmatprep.subr.bf16.mxu0 %v6758_v37 }
  0xa9   : > { %v691_v31 = vrot.slane %v6753_v13, 1 }
  0xaa   : > { %929 = vmatmul.mubr.f32.gmra.mrb[8].mxu0 %v4918_v22 }
  0xab   : > { %933 = vmatprep.mubr.f32.mxu0 %v5055_v28  ;;  %3897 = vmatpush1.bf16.msra.mxu0 %v3896_v24  ;;  %v5151_v24 = vld [vmem:[#allocation2 + $0x98] sm:$0xff]  ;;  %v5178_v49 = vsel %vm662_vm0, %v689_v55, %v691_v31  ;;  %v696_v55 = vrot.slane %v6752_v59, 1  ;;  %v544_v31 = vld [vmem:[%s6739_s1 + $0x1c8] sm:$0xff]  ;;  %v545_v59 = vld [vmem:[%s6739_s1 + $0x1d0] sm:$0xff] }
  0xac   : > { %3898 = vmatprep.subr.bf16.mxu0 %v6758_v37  ;;  %6812 = vst [vmem:[#allocation28_spill] sm:$0xff] %v5151_v24 }
  0xae   : > { %934 = vmatmul.mubr.f32.gmra.mrb[10].mxu0 %v4921_v23 }
  0xaf   : > { %938 = vmatprep.mubr.f32.mxu0 %v5074_v40  ;;  %3900 = vmatpush1.bf16.msra.mxu0 %v3899_v39  ;;  %v5165_v39 = vmax.f32 %v5151_v24, 0.0 }
  0xb0   : > { %3901 = vmatprep.subr.bf16.mxu0 %v6758_v37 }
  0xb1   : > { %6814 = vst [vmem:[#allocation30_spill] sm:$0xff] %v5165_v39  ;;  %v694_v53 = vrot.slane %v5165_v39, 1 }
  0xb2   : > { %939 = vmatmul.mubr.f32.gmra.mrb[12].mxu0 %v5045_v21 }
  0xb3   : > { %943 = vmatprep.mubr.f32.mxu0 %v5096_v48  ;;  %3903 = vmatpush1.bf16.msra.mxu0 %v3902_v47  ;;  %v3914_v47 = vpack.c.bf16 %v540_v44, %v539_v41  ;;  %v5197_v10 = vsel %vm662_vm0, %v693_v50, %v694_v53  ;;  %v5214_v41 = vld [vmem:[#allocation2 + $0xb8] sm:$0x3]  ;;  %v698_v50 = vrot.slane %v5202_v17, 1 }
  0xb4   : > { %3904 = vmatprep.subr.bf16.mxu0 %v6758_v37  ;;  %6820 = vst [vmem:[#allocation36_spill] sm:$0xff] %v5214_v41 }
  0xb6   : > { %944 = vmatmul.mubr.f32.gmra.mrb[14].mxu0 %v5048_v26 }
  0xb7   : > { %948 = vmatprep.mubr.f32.mxu0 %v5115_v63  ;;  %3906 = vmatpush1.bf16.msra.mxu0 %v3905_v62  ;;  %v541_v62 = vld [vmem:[%s6739_s1 + $0x1b0] sm:$0xff] }
  0xb8   : > { %3907 = vmatprep.subr.bf16.mxu0 %v6758_v37 }
  0xba   : > { %949 = vmatmul.mubr.f32.gmra.mrb[16].mxu0 %v5080_v42 }
  0xbb   : > { %953 = vmatprep.mubr.f32.mxu0 %v5137_v9  ;;  %3909 = vmatpush1.bf16.msra.mxu0 %v3908_v8  ;;  %v3917_v8 = vpack.c.bf16 %v542_v0, %v541_v62  ;;  %v699_v62 = vrot.slane %v5205_v19, 1  ;;  %v6757_v0 = vmax.f32 %v5214_v41, 0.0 }
  0xbc   : > { %3910 = vmatprep.subr.bf16.mxu0 %v6758_v37 }
  0xbd   : > { %v701_v13 = vrot.slane %v6757_v0, 1 }
  0xbe   : > { %954 = vmatmul.mubr.f32.gmra.mrb[18].mxu0 %v5083_v43 }
  0xbf   : > { %958 = vmatprep.mubr.f32.mxu0 %v5156_v30  ;;  %3912 = vmatpush1.bf16.msra.mxu0 %v3911_v29  ;;  %v543_v29 = vld [vmem:[%s6739_s1 + $0x1c0] sm:$0xff] }
  0xc0   : > { %3913 = vmatprep.subr.bf16.mxu0 %v6758_v37  ;;  %v3920_v44 = vpack.c.bf16 %v544_v31, %v543_v29  ;;  %v5231_v29 = vld [vmem:[#allocation2 + $0xc0] sm:$0xff]  ;;  %v5238_v31 = vsel %vm662_vm0, %v698_v50, %v699_v62 }
  0xc1   : > { %6821 = vst [vmem:[#allocation37_spill] sm:$0xff] %v5231_v29  ;;  %v5243_v51 = vmax.f32 %v5231_v29, 0.0  ;;  %v6825_v29 = vmov 0.0|0.0  }
  0xc2   : > { %959 = vmatmul.mubr.f32.gmra.mrb[20].mxu0 %v5121_v2 }
  0xc3   : > { %963 = vmatprep.mubr.f32.mxu0 %v5178_v49  ;;  %3915 = vmatpush1.bf16.msra.mxu0 %v3914_v47  ;;  %v5219_v47 = vsel %vm662_vm0, %v694_v53, %v696_v55  ;;  %v5233_v53 = vld [vmem:[#allocation2 + $0xc8] sm:$0xff]  ;;  %6823 = vst [vmem:[#allocation39_spill] sm:$0xff] %v5243_v51  ;;  %v703_v0 = vrot.slane %v5243_v51, 1  ;;  %v774_v15 = vrot.slane %v5243_v51, 2 }
  0xc4   : > { %3916 = vmatprep.subr.bf16.mxu0 %v6758_v37  ;;  %6822 = vst [vmem:[#allocation38_spill] sm:$0xff] %v5233_v53  ;;  %v5246_v35 = vmax.f32 %v5233_v53, 0.0 }
  0xc6   : > { %964 = vmatmul.mubr.f32.gmra.mrb[22].mxu0 %v5124_v3 }
  0xc7   : > { %968 = vmatprep.mubr.f32.mxu0 %v5197_v10  ;;  %3918 = vmatpush1.bf16.msra.mxu0 %v3917_v8  ;;  %v546_v8 = vld [vmem:[%s6739_s1 + $0x1d8] sm:$0xff] }
  0xc8   : > { %3919 = vmatprep.subr.bf16.mxu0 %v6758_v37  ;;  %v3923_v55 = vpack.c.bf16 %v546_v8, %v545_v59  ;;  %v548_v59 = vld [vmem:[%s6739_s1 + $0x1e8] sm:$0xff]  ;;  %v5260_v8 = vsel %vm662_vm0, %v699_v62, %v701_v13  ;;  %v5274_v13 = vld [vmem:[#allocation2 + $0xe0] sm:$0xff] }
  0xc9   : > { %v3926_v50 = vpack.c.bf16 %v548_v59, %v547_v1  ;;  %v5272_v1 = vld [vmem:[#allocation2 + $0xd8] sm:$0xff]  ;;  %6827 = vst [vmem:[#allocation42_spill] sm:$0xff] %v5274_v13  ;;  %v5287_v20 = vmax.f32 %v5274_v13, 0.0  ;;  %v615_v13 = vld [vmem:[%s6739_s1 + $0x400] sm:$0xff] }
  0xca   : > { %969 = vmatmul.mubr.f32.gmra.mrb[24].mxu0 %v5162_v34  ;;  %6826 = vst [vmem:[#allocation41_spill] sm:$0xff] %v5272_v1  ;;  %v5284_v24 = vmax.f32 %v5272_v1, 0.0  ;;  %v616_v1 = vld [vmem:[%s6739_s1 + $0x408] sm:$0xff] }
  0xcb   : > { %973 = vmatprep.mubr.f32.mxu0 %v5219_v47  ;;  %3921 = vmatpush1.bf16.msra.mxu0 %v3920_v44  ;;  %v5255_v44 = vld [vmem:[#allocation2 + $0xd0] sm:$0x3]  ;;  %v4027_v60 = vpack.c.bf16 %v616_v1, %v615_v13  ;;  %v556_v1 = vld [vmem:[%s6739_s1 + $0x228] sm:$0xff] }
  0xcc   : > { %3922 = vmatprep.subr.bf16.mxu0 %v6758_v37  ;;  %6824 = vst [vmem:[#allocation40_spill] sm:$0xff] %v5255_v44  ;;  %v704_v37 = vrot.slane %v5246_v35, 1  ;;  %v6767_v53 = vmax.f32 %v5255_v44, 0.0 }
  0xcd   : > { %4028 = vmatprep.subr.bf16.mxu1 %v4027_v60 }
  0xce   : > { %974 = vmatmul.mubr.f32.gmra.mrb[26].mxu0 %v5165_v39  ;;  %v5279_v59 = vsel %vm662_vm0, %v703_v0, %v704_v37  ;;  %v706_v4 = vrot.slane %v6767_v53, 1  ;;  %v708_v0 = vrot.slane %v5284_v24, 1  ;;  %4030 = vmatpush3.bf16.msra.mxu1 %v4027_v60  ;;  %v619_v60 = vld [vmem:[%s6739_s1 + $0x420] sm:$0xff] }
  0xcf   : > { %978 = vmatprep.mubr.f32.mxu0 %v5238_v31  ;;  %3924 = vmatpush1.bf16.msra.mxu0 %v3923_v55  ;;  %v550_v55 = vld [vmem:[%s6739_s1 + $0x1f8] sm:$0xff] }
  0xd0   : > { %3925 = vmatprep.subr.bf16.mxu0 %v6825_v29  ;;  %v3929_v62 = vpack.c.bf16 %v550_v55, %v549_v5  ;;  %v5295_v5 = vsel %vm662_vm0, %v704_v37, %v706_v4  ;;  %v6768_v55 = vmax.f32 %v5290_v61, 0.0  ;;  %v551_v4 = vld [vmem:[%s6739_s1 + $0x200] sm:$0xff] }
  0xd2   : > { %979 = vmatmul.mubr.f32.gmra.mrb[28].mxu0 %v5202_v17 }
  0xd3   : > { %983 = vmatprep.mubr.f32.mxu0 %v5260_v8  ;;  %3927 = vmatpush1.bf16.msra.mxu0 %v3926_v50  ;;  %v709_v50 = vrot.slane %v5287_v20, 1 }
  0xd4   : > { %3928 = vmatprep.subr.bf16.mxu0 %v6825_v29 }
  0xd5   : > { %v5304_v53 = vsel %vm662_vm0, %v708_v0, %v709_v50  ;;  %v552_v0 = vld [vmem:[%s6739_s1 + $0x208] sm:$0xff] }
  0xd6   : > { %984 = vmatmul.mubr.f32.gmra.mrb[30].mxu0 %v5205_v19 }
  0xd7   : > { %988 = vmatprep.mubr.f32.mxu0 %v5279_v59  ;;  %3930 = vmatpush1.bf16.msra.mxu0 %v3929_v62  ;;  %v711_v62 = vrot.slane %v6768_v55, 1  ;;  %v3932_v55 = vpack.c.bf16 %v552_v0, %v551_v4  ;;  %v739_v0 = vrot.slane %v4980_v54, 2 }
  0xd8   : > { %3931 = vmatprep.subr.bf16.mxu0 %v6825_v29 }
  0xd9   : > { %v5311_v37 = vsel %vm662_vm0, %v709_v50, %v711_v62  ;;  %v553_v50 = vld [vmem:[%s6739_s1 + $0x210] sm:$0xff]  ;;  %v554_v62 = vld [vmem:[%s6739_s1 + $0x218] sm:$0xff]  ;;  %v5355_v13 = vsel %vm733_vm1, %v739_v0, %v740_v38 }
  0xda   : > { %989 = vmatmul.mubr.f32.gmra.mrb[32].mxu0 %v5243_v51  ;;  %v3935_v4 = vpack.c.bf16 %v554_v62, %v553_v50  ;;  %v6828_v50 = vmax.f32 %v4984_v58, 0.0  ;;  %v620_v58 = vld [vmem:[%s6739_s1 + $0x428] sm:$0xff] }
  0xdb   : > { %993 = vmatprep.mubr.f32.mxu0 %v5295_v5 }
  0xdc   : > { %v742_v62 = vrot.slane %v6828_v50, 2  ;;  %v562_v50 = vld [vmem:[%s6739_s1 + $0x258] sm:$0xff] }
  0xde   : > { %994 = vmatmul.mubr.f32.gmra.mrb[34].mxu0 %v5246_v35 }
  0xdf   : > { %998 = vmatprep.mubr.f32.mxu0 %v5304_v53 }
  0xe2   : > { %999 = vmatmul.mubr.f32.gmra.mrb[36].mxu0 %v5284_v24 }
  0xe3   : > { %1003 = vmatprep.mubr.f32.mxu0 %v5311_v37 }
  0xe6   : > { %1004 = vmatmul.mubr.f32.gmra.mrb[38].mxu0 %v5287_v20 }
  0xe7   : > { %1073 = vmatprep.mubr.f32.mxu0 %v4980_v54  ;;  %v618_v54 = vld [vmem:[%s6739_s1 + $0x418] sm:$0xff] }
  0xea   : > { %1074 = vmatmul.mubr.f32.vlgmr.msra.gmra.mrb[0].mxu0 %v4888_v6  ;;  %v617_v6 = vld [vmem:[%s6739_s1 + $0x410] sm:$0xff] }
  0xeb   : > { %3933 = vmatpush1.bf16.msra.mxu0 %v3932_v55  ;;  %1078 = vmatprep.mubr.f32.mxu0 %v4982_v56  ;;  %v4031_v56 = vpack.c.bf16 %v618_v54, %v617_v6  ;;  %v3938_v55 = vpack.c.bf16 %v556_v1, %v555_v36  ;;  %v4035_v36 = vpack.c.bf16 %v620_v58, %v619_v60  ;;  %v559_v1 = vld [vmem:[%s6739_s1 + $0x240] sm:$0xff]  ;;  %v560_v6 = vld [vmem:[%s6739_s1 + $0x248] sm:$0xff]  ;;  %v621_v54 = vld [vmem:[%s6739_s1 + $0x430] sm:$0xff]  ;;  %v749_v58 = vrot.slane %v5045_v21, 2 }
  0xec   : > { %3934 = vmatprep.subr.bf16.mxu0 %v6825_v29 }
  0xed   : > { %4032 = vmatprep.subr.bf16.mxu1 %v4031_v56 }
  0xee   : > { %1079 = vmatmul.mubr.f32.gmra.mrb[2].mxu0 %v4925_v25  ;;  %v558_v25 = vld [vmem:[%s6739_s1 + $0x238] sm:$0xff]  ;;  %4034 = vmatpush3.bf16.msra.mxu1 %v4031_v56  ;;  %v3944_v56 = vpack.c.bf16 %v560_v6, %v559_v1  ;;  %v563_v1 = vld [vmem:[%s6739_s1 + $0x260] sm:$0xff]  ;;  %v564_v6 = vld [vmem:[%s6739_s1 + $0x268] sm:$0xff] }
  0xef   : > { %3936 = vmatpush1.bf16.msra.mxu0 %v3935_v4  ;;  %1083 = vmatprep.mubr.f32.mxu0 %v4918_v22  ;;  %v5375_v4 = vsel %vm733_vm1, %v740_v38, %v742_v62  ;;  %v3941_v0 = vpack.c.bf16 %v558_v25, %v557_v12  ;;  %v622_v38 = vld [vmem:[%s6739_s1 + $0x438] sm:$0xff]  ;;  %v623_v62 = vld [vmem:[%s6739_s1 + $0x440] sm:$0xff]  ;;  %v624_v25 = vld [vmem:[%s6739_s1 + $0x448] sm:$0xff] }
  0xf0   : > { %3937 = vmatprep.subr.bf16.mxu0 %v6825_v29  ;;  %4036 = vmatprep.subr.bf16.mxu1 %v4035_v36  ;;  %v4039_v12 = vpack.c.bf16 %v622_v38, %v621_v54  ;;  %v4043_v60 = vpack.c.bf16 %v624_v25, %v623_v62  ;;  %v625_v54 = vld [vmem:[%s6739_s1 + $0x450] sm:$0xff]  ;;  %v626_v38 = vld [vmem:[%s6739_s1 + $0x458] sm:$0xff]  ;;  %v3950_v62 = vpack.c.bf16 %v564_v6, %v563_v1 }
  0xf1   : > { %v565_v25 = vld [vmem:[%s6739_s1 + $0x270] sm:$0xff] }
  0xf2   : > { %1084 = vmatmul.mubr.f32.gmra.mrb[4].mxu0 %v5355_v13  ;;  %4038 = vmatpush3.bf16.msra.mxu1 %v4035_v36  ;;  %v750_v36 = vrot.slane %v5048_v26, 2 }
  0xf3   : > { %1088 = vmatprep.mubr.f32.mxu0 %v4921_v23  ;;  %3939 = vmatpush1.bf16.msra.mxu0 %v3938_v55  ;;  %v561_v55 = vld [vmem:[%s6739_s1 + $0x250] sm:$0xff] }
  0xf4   : > { %3940 = vmatprep.subr.bf16.mxu0 %v6825_v29  ;;  %4040 = vmatprep.subr.bf16.mxu1 %v4039_v12 }
  0xf6   : > { %1089 = vmatmul.mubr.f32.gmra.mrb[6].mxu0 %v5375_v4  ;;  %4042 = vmatpush3.bf16.msra.mxu1 %v4039_v12  ;;  %v4047_v12 = vpack.c.bf16 %v626_v38, %v625_v54  ;;  %v754_v54 = vrot.slane %v5080_v42, 2  ;;  %v755_v38 = vrot.slane %v5083_v43, 2 }
  0xf7   : > { %1093 = vmatprep.mubr.f32.mxu0 %v5045_v21  ;;  %3942 = vmatpush1.bf16.msra.mxu0 %v3941_v0  ;;  %v3947_v0 = vpack.c.bf16 %v562_v50, %v561_v55  ;;  %v6829_v55 = vmax.f32 %v5050_v27, 0.0  ;;  %v775_v27 = vrot.slane %v5246_v35, 2 }
  0xf8   : > { %3943 = vmatprep.subr.bf16.mxu0 %v6825_v29  ;;  %4044 = vmatprep.subr.bf16.mxu1 %v4043_v60 }
  0xf9   : > { %v752_v50 = vrot.slane %v6829_v55, 2 }
  0xfa   : > { %1094 = vmatmul.mubr.f32.gmra.mrb[8].mxu0 %v4939_v32  ;;  %4046 = vmatpush3.bf16.msra.mxu1 %v4043_v60  ;;  %v566_v60 = vld [vmem:[%s6739_s1 + $0x278] sm:$0xff] }
  0xfb   : > { %1098 = vmatprep.mubr.f32.mxu0 %v5048_v26  ;;  %3945 = vmatpush1.bf16.msra.mxu0 %v3944_v56  ;;  %v5425_v56 = vsel %vm733_vm1, %v749_v58, %v750_v36  ;;  %v627_v58 = vld [vmem:[%s6739_s1 + $0x460] sm:$0xff]  ;;  %v5445_v6 = vsel %vm733_vm1, %v750_v36, %v752_v50  ;;  %v3953_v55 = vpack.c.bf16 %v566_v60, %v565_v25  ;;  %v629_v36 = vld [vmem:[%s6739_s1 + $0x470] sm:$0xff]  ;;  %v630_v50 = vld [vmem:[%s6739_s1 + $0x478] sm:$0xff]  ;;  %v6830_v60 = vmax.f32 %v5091_v46, 0.0 }
  0xfc   : > { %3946 = vmatprep.subr.bf16.mxu0 %v6825_v29  ;;  %4048 = vmatprep.subr.bf16.mxu1 %v4047_v12  ;;  %v5465_v25 = vsel %vm733_vm1, %v754_v54, %v755_v38  ;;  %v770_v46 = vrot.slane %v5205_v19, 2 }
  0xfe   : > { %1099 = vmatmul.mubr.f32.gmra.mrb[10].mxu0 %v4942_v33  ;;  %4050 = vmatpush3.bf16.msra.mxu1 %v4047_v12  ;;  %v567_v12 = vld [vmem:[%s6739_s1 + $0x280] sm:$0xff] }
  0xff   : > { %1103 = vmatprep.mubr.f32.mxu0 %v5080_v42  ;;  %3948 = vmatpush1.bf16.msra.mxu0 %v3947_v0  ;;  %v628_v0 = vld [vmem:[%s6739_s1 + $0x468] sm:$0xff] }
 0x100   : > { %3949 = vmatprep.subr.bf16.mxu0 %v6825_v29  ;;  %v4051_v1 = vpack.c.bf16 %v628_v0, %v627_v58  ;;  %v568_v58 = vld [vmem:[%s6739_s1 + $0x288] sm:$0xff]  ;;  %v757_v0 = vrot.slane %v6830_v60, 2 }
 0x101   : > { %v3956_v11 = vpack.c.bf16 %v568_v58, %v567_v12  ;;  %v760_v12 = vrot.slane %v5124_v3, 2 }
 0x102   : > { %1104 = vmatmul.mubr.f32.gmra.mrb[12].mxu0 %v5425_v56  ;;  %4052 = vmatprep.subr.bf16.mxu1 %v4051_v1  ;;  %v5479_v54 = vsel %vm733_vm1, %v755_v38, %v757_v0  ;;  %v6831_v38 = vmax.f32 %v5132_v52, 0.0  ;;  %v576_v52 = vld [vmem:[%s6739_s1 + $0x2c8] sm:$0xff] }
 0x103   : > { %1108 = vmatprep.mubr.f32.mxu0 %v5083_v43  ;;  %3951 = vmatpush1.bf16.msra.mxu0 %v3950_v62  ;;  %v4055_v62 = vpack.c.bf16 %v630_v50, %v629_v36  ;;  %v570_v36 = vld [vmem:[%s6739_s1 + $0x298] sm:$0xff]  ;;  %v571_v50 = vld [vmem:[%s6739_s1 + $0x2a0] sm:$0xff] }
 0x104   : > { %3952 = vmatprep.subr.bf16.mxu0 %v6825_v29  ;;  %4054 = vmatpush3.bf16.msra.mxu1 %v4051_v1  ;;  %v569_v1 = vld [vmem:[%s6739_s1 + $0x290] sm:$0xff]  ;;  %v762_v60 = vrot.slane %v6831_v38, 2  ;;  %v575_v38 = vld [vmem:[%s6739_s1 + $0x2c0] sm:$0xff] }
 0x105   : > { %4056 = vmatprep.subr.bf16.mxu1 %v4055_v62  ;;  %v3959_v58 = vpack.c.bf16 %v570_v36, %v569_v1  ;;  %v573_v1 = vld [vmem:[%s6739_s1 + $0x2b0] sm:$0xff]  ;;  %v574_v36 = vld [vmem:[%s6739_s1 + $0x2b8] sm:$0xff] }
 0x106   : > { %1109 = vmatmul.mubr.f32.gmra.mrb[14].mxu0 %v5445_v6 }
 0x107   : > { %1113 = vmatprep.mubr.f32.mxu0 %v5121_v2  ;;  %3954 = vmatpush1.bf16.msra.mxu0 %v3953_v55  ;;  %v759_v55 = vrot.slane %v5121_v2, 2 }
 0x108   : > { %3955 = vmatprep.subr.bf16.mxu0 %v6825_v29  ;;  %4058 = vmatpush3.bf16.msra.mxu1 %v4055_v62  ;;  %v572_v62 = vld [vmem:[%s6739_s1 + $0x2a8] sm:$0xff] }
 0x109   : > { %v3962_v0 = vpack.c.bf16 %v572_v62, %v571_v50  ;;  %v765_v50 = vrot.slane %v5165_v39, 2  ;;  %v3965_v62 = vpack.c.bf16 %v574_v36, %v573_v1  ;;  %v3968_v1 = vpack.c.bf16 %v576_v52, %v575_v38 }
 0x10a   : > { %1114 = vmatmul.mubr.f32.gmra.mrb[16].mxu0 %v5465_v25  ;;  %v769_v36 = vrot.slane %v5202_v17, 2 }
 0x10b   : > { %1118 = vmatprep.mubr.f32.mxu0 %v5124_v3  ;;  %3957 = vmatpush1.bf16.msra.mxu0 %v3956_v11  ;;  %v5495_v11 = vsel %vm733_vm1, %v759_v55, %v760_v12  ;;  %v5511_v55 = vsel %vm733_vm1, %v760_v12, %v762_v60  ;;  %v6832_v60 = vmax.f32 %v5173_v45, 0.0 }
 0x10c   : > { %3958 = vmatprep.subr.bf16.mxu0 %v6825_v29  ;;  %3750 = vmatmul.mubr.f32.vlgmr.msra.gmra.mrb[0].mxu1 %v4942_v33  ;;  %v5550_v45 = vsel %vm733_vm1, %v769_v36, %v770_v46  ;;  %v445_v36 = vld [vmem:[#allocation2 + $0xf0] sm:$0xff] }
 0x10d   : > { %3752 = vmatprep.mubr.f32.mxu1 %v5425_v56 }
 0x10e   : > { %1119 = vmatmul.mubr.f32.gmra.mrb[18].mxu0 %v5479_v54 }
 0x10f   : > { %1123 = vmatprep.mubr.f32.mxu0 %v5162_v34  ;;  %3960 = vmatpush1.bf16.msra.mxu0 %v3959_v58  ;;  %v764_v58 = vrot.slane %v5162_v34, 2 }
 0x110   : > { %3961 = vmatprep.subr.bf16.mxu0 %v6825_v29  ;;  %3753 = vmatmul.mubr.f32.gmra.mrb[2].mxu1 %v5445_v6 }
 0x111   : > { %3755 = vmatprep.mubr.f32.mxu1 %v5465_v25  ;;  %v5527_v12 = vsel %vm733_vm1, %v764_v58, %v765_v50  ;;  %v578_v58 = vld [vmem:[%s6739_s1 + $0x2d8] sm:$0xff] }
 0x112   : > { %1124 = vmatmul.mubr.f32.gmra.mrb[20].mxu0 %v5495_v11 }
 0x113   : > { %1128 = vmatprep.mubr.f32.mxu0 %v5165_v39  ;;  %3963 = vmatpush1.bf16.msra.mxu0 %v3962_v0  ;;  %v767_v0 = vrot.slane %v6832_v60, 2  ;;  %v3971_v60 = vpack.c.bf16 %v578_v58, %v577_v16 }
 0x114   : > { %3964 = vmatprep.subr.bf16.mxu0 %v6825_v29  ;;  %3756 = vmatmul.mubr.f32.gmra.mrb[4].mxu1 %v5479_v54 }
 0x115   : > { %3758 = vmatprep.mubr.f32.mxu1 %v5495_v11  ;;  %v5545_v52 = vsel %vm733_vm1, %v765_v50, %v767_v0  ;;  %v580_v50 = vld [vmem:[%s6739_s1 + $0x2e8] sm:$0xff]  ;;  %v6834_v0 = vmax.f32 %v5255_v44, 0.0 }
 0x116   : > { %1129 = vmatmul.mubr.f32.gmra.mrb[22].mxu0 %v5511_v55  ;;  %v3974_v58 = vpack.c.bf16 %v580_v50, %v579_v18 }
 0x117   : > { %1133 = vmatprep.mubr.f32.mxu0 %v5202_v17  ;;  %3966 = vmatpush1.bf16.msra.mxu0 %v3965_v62  ;;  %v6833_v62 = vmax.f32 %v5214_v41, 0.0  ;;  %v5571_v41 = vsel %vm733_vm1, %v774_v15, %v775_v27  ;;  %v780_v17 = vrot.slane %v5287_v20, 2  ;;  %v5587_v15 = vmax.f32 %v445_v36, 0.0 }
 0x118   : > { %3967 = vmatprep.subr.bf16.mxu0 %v6825_v29  ;;  %3759 = vmatmul.mubr.f32.gmra.mrb[6].mxu1 %v5511_v55 }
 0x119   : > { %3761 = vmatprep.mubr.f32.mxu1 %v5527_v12  ;;  %v772_v38 = vrot.slane %v6833_v62, 2  ;;  %v446_v62 = vld [vmem:[#allocation2 + $0xf8] sm:$0xff]  ;;  %v814_v36 = vrot.slane %v5587_v15, 2 }
 0x11a   : > { %1134 = vmatmul.mubr.f32.gmra.mrb[24].mxu0 %v5527_v12  ;;  %v5589_v18 = vmax.f32 %v446_v62, 0.0 }
 0x11b   : > { %1138 = vmatprep.mubr.f32.mxu0 %v5205_v19  ;;  %3969 = vmatpush1.bf16.msra.mxu0 %v3968_v1  ;;  %v5566_v16 = vsel %vm733_vm1, %v770_v46, %v772_v38  ;;  %v777_v1 = vrot.slane %v6834_v0, 2  ;;  %v779_v19 = vrot.slane %v5284_v24, 2  ;;  %v581_v46 = vld [vmem:[%s6739_s1 + $0x2f0] sm:$0xff]  ;;  %v582_v38 = vld [vmem:[%s6739_s1 + $0x2f8] sm:$0xff]  ;;  %v6835_v0 = vmax.f32 %v5290_v61, 0.0 }
 0x11c   : > { %3970 = vmatprep.subr.bf16.mxu0 %v6825_v29  ;;  %3762 = vmatmul.mubr.f32.gmra.mrb[8].mxu1 %v5545_v52  ;;  %v815_v62 = vrot.slane %v5589_v18, 2 }
 0x11d   : > { %3764 = vmatprep.mubr.f32.mxu1 %v5550_v45  ;;  %v5593_v50 = vsel %vm733_vm1, %v775_v27, %v777_v1  ;;  %v782_v44 = vrot.slane %v6835_v0, 2  ;;  %v5599_v34 = vsel %vm733_vm1, %v779_v19, %v780_v17 }
 0x11e   : > { %1139 = vmatmul.mubr.f32.gmra.mrb[26].mxu0 %v5545_v52  ;;  %v5615_v1 = vsel %vm733_vm1, %v814_v36, %v815_v62  ;;  %v588_v36 = vld [vmem:[%s6739_s1 + $0x328] sm:$0xff] }
 0x11f   : > { %1143 = vmatprep.mubr.f32.mxu0 %v5243_v51  ;;  %3972 = vmatpush1.bf16.msra.mxu0 %v3971_v60  ;;  %v5582_v60 = vld [vmem:[#allocation2 + $0x100] sm:$0x3]  ;;  %v3977_v51 = vpack.c.bf16 %v582_v38, %v581_v46  ;;  %v5609_v27 = vsel %vm733_vm1, %v780_v17, %v782_v44  ;;  %v584_v44 = vld [vmem:[%s6739_s1 + $0x308] sm:$0xff]  ;;  %v585_v46 = vld [vmem:[%s6739_s1 + $0x310] sm:$0xff] }
 0x120   : > { %3973 = vmatprep.subr.bf16.mxu0 %v6825_v29  ;;  %3765 = vmatmul.mubr.f32.gmra.mrb[10].mxu1 %v5566_v16  ;;  %v483_v39 = vmax.f32 %v5582_v60, 0.0  ;;  %v586_v38 = vld [vmem:[%s6739_s1 + $0x318] sm:$0xff] }
 0x121   : > { %3767 = vmatprep.mubr.f32.mxu1 %v5571_v41  ;;  %v3983_v0 = vpack.c.bf16 %v586_v38, %v585_v46  ;;  %v448_v46 = vld [vmem:[#allocation2 + $0x108] sm:$0xff]  ;;  %v595_v38 = vld [vmem:[%s6739_s1 + $0x360] sm:$0xff] }
 0x122   : > { %1144 = vmatmul.mubr.f32.gmra.mrb[28].mxu0 %v5550_v45  ;;  %v817_v19 = vrot.slane %v483_v39, 2 }
 0x123   : > { %1148 = vmatprep.mubr.f32.mxu0 %v5246_v35  ;;  %3975 = vmatpush1.bf16.msra.mxu0 %v3974_v58 }
 0x124   : > { %3976 = vmatprep.subr.bf16.mxu0 %v6825_v29  ;;  %3768 = vmatmul.mubr.f32.gmra.mrb[12].mxu1 %v5593_v50  ;;  %v5622_v17 = vsel %vm733_vm1, %v815_v62, %v817_v19  ;;  %v590_v62 = vld [vmem:[%s6739_s1 + $0x338] sm:$0xff]  ;;  %v592_v19 = vld [vmem:[%s6739_s1 + $0x348] sm:$0xff] }
 0x125   : > { %3770 = vmatprep.mubr.f32.mxu1 %v5599_v34 }
 0x126   : > { %1149 = vmatmul.mubr.f32.gmra.mrb[30].mxu0 %v5566_v16 }
 0x127   : > { %1153 = vmatprep.mubr.f32.mxu0 %v5284_v24  ;;  %3978 = vmatpush1.bf16.msra.mxu0 %v3977_v51  ;;  %v583_v51 = vld [vmem:[%s6739_s1 + $0x300] sm:$0xff] }
 0x128   : > { %3979 = vmatprep.subr.bf16.mxu0 %v6825_v29  ;;  %3771 = vmatmul.mubr.f32.gmra.mrb[14].mxu1 %v5609_v27  ;;  %v3980_v58 = vpack.c.bf16 %v584_v44, %v583_v51  ;;  %v594_v44 = vld [vmem:[%s6739_s1 + $0x358] sm:$0xff] }
 0x129   : > { %3773 = vmatprep.mubr.f32.mxu1 %v5615_v1 }
 0x12a   : > { %1154 = vmatmul.mubr.f32.gmra.mrb[32].mxu0 %v5571_v41 }
 0x12b   : > { %1158 = vmatprep.mubr.f32.mxu0 %v5287_v20 }
 0x12c   : > { %3774 = vmatmul.mubr.f32.gmra.mrb[16].mxu1 %v5622_v17 }
 0x12e   : > { %1159 = vmatmul.mubr.f32.gmra.mrb[34].mxu0 %v5593_v50 }
 0x12f   : > { %1163 = vmatprep.mubr.f32.mxu0 %v5587_v15 }
 0x132   : > { %1164 = vmatmul.mubr.f32.gmra.mrb[36].mxu0 %v5599_v34 }
 0x133   : > { %1168 = vmatprep.mubr.f32.mxu0 %v5589_v18 }
 0x136   : > { %1169 = vmatmul.mubr.f32.gmra.mrb[38].mxu0 %v5609_v27 }
 0x137   : > { %1238 = vmatprep.mubr.f32.mxu0 %v5355_v13  ;;  %v587_v13 = vld [vmem:[%s6739_s1 + $0x320] sm:$0xff] }
 0x13a   : > { %1239 = vmatmul.mubr.f32.vlgmr.msra.gmra.mrb[0].mxu0 %v5002_v57  ;;  %v3986_v57 = vpack.c.bf16 %v588_v36, %v587_v13  ;;  %v5688_v13 = vmax.f32 %v448_v46, 0.0  ;;  %v600_v46 = vld [vmem:[%s6739_s1 + $0x388] sm:$0xff] }
 0x13b   : > { %3981 = vmatpush1.bf16.msra.mxu0 %v3980_v58  ;;  %1243 = vmatprep.mubr.f32.mxu0 %v5375_v4  ;;  %v589_v4 = vld [vmem:[%s6739_s1 + $0x330] sm:$0xff] }
 0x13c   : > { %3982 = vmatprep.subr.bf16.mxu0 %v6825_v29 }
 0x13e   : > { %1244 = vmatmul.mubr.f32.gmra.mrb[2].mxu0 %v5016_v7  ;;  %v3989_v7 = vpack.c.bf16 %v590_v62, %v589_v4  ;;  %v831_v62 = vrot.slane %v5688_v13, 2 }
 0x13f   : > { %3984 = vmatpush1.bf16.msra.mxu0 %v3983_v0  ;;  %1248 = vmatprep.mubr.f32.mxu0 %v4939_v32  ;;  %v591_v32 = vld [vmem:[%s6739_s1 + $0x340] sm:$0xff]  ;;  %v596_v0 = vld [vmem:[%s6739_s1 + $0x368] sm:$0xff] }
 0x140   : > { %3985 = vmatprep.subr.bf16.mxu0 %v6825_v29  ;;  %v3992_v51 = vpack.c.bf16 %v592_v19, %v591_v32  ;;  %v3998_v4 = vpack.c.bf16 %v596_v0, %v595_v38  ;;  %v597_v32 = vld [vmem:[%s6739_s1 + $0x370] sm:$0xff]  ;;  %v598_v19 = vld [vmem:[%s6739_s1 + $0x378] sm:$0xff] }
 0x141   : > { %v602_v38 = vld [vmem:[%s6739_s1 + $0x398] sm:$0xff] }
 0x142   : > { %1249 = vmatmul.mubr.f32.gmra.mrb[4].mxu0 %v5033_v14 }
 0x143   : > { %1253 = vmatprep.mubr.f32.mxu0 %v4942_v33  ;;  %3987 = vmatpush1.bf16.msra.mxu0 %v3986_v57  ;;  %v593_v33 = vld [vmem:[%s6739_s1 + $0x350] sm:$0xff]  ;;  %v5692_v57 = vld [vmem:[#allocation2 + $0x118] sm:$0x3] }
 0x144   : > { %3988 = vmatprep.subr.bf16.mxu0 %v6825_v29  ;;  %v3995_v58 = vpack.c.bf16 %v594_v44, %v593_v33  ;;  %v4001_v44 = vpack.c.bf16 %v598_v19, %v597_v32  ;;  %v608_v19 = vld [vmem:[%s6739_s1 + $0x3c8] sm:$0xff] }
 0x146   : > { %1254 = vmatmul.mubr.f32.gmra.mrb[6].mxu0 %v5055_v28 }
 0x147   : > { %1258 = vmatprep.mubr.f32.mxu0 %v5425_v56  ;;  %3990 = vmatpush1.bf16.msra.mxu0 %v3989_v7  ;;  %v449_v56 = vld [vmem:[#allocation2 + $0x110] sm:$0xff] }
 0x148   : > { %3991 = vmatprep.subr.bf16.mxu0 %v6825_v29  ;;  %v5690_v36 = vmax.f32 %v449_v56, 0.0 }
 0x14a   : > { %1259 = vmatmul.mubr.f32.gmra.mrb[8].mxu0 %v5074_v40  ;;  %v832_v7 = vrot.slane %v5690_v36, 2 }
 0x14b   : > { %1263 = vmatprep.mubr.f32.mxu0 %v5445_v6  ;;  %3993 = vmatpush1.bf16.msra.mxu0 %v3992_v51  ;;  %v486_v6 = vmax.f32 %v5692_v57, 0.0 }
 0x14c   : > { %3994 = vmatprep.subr.bf16.mxu0 %v6825_v29 }
 0x14d   : > { %v834_v51 = vrot.slane %v486_v6, 2 }
 0x14e   : > { %1264 = vmatmul.mubr.f32.gmra.mrb[10].mxu0 %v5096_v48 }
 0x14f   : > { %1268 = vmatprep.mubr.f32.mxu0 %v5465_v25  ;;  %3996 = vmatpush1.bf16.msra.mxu0 %v3995_v58  ;;  %v833_v25 = vsel %vm733_vm1, %v831_v62, %v832_v7  ;;  %v835_v33 = vsel %vm733_vm1, %v832_v7, %v834_v51  ;;  %v599_v58 = vld [vmem:[%s6739_s1 + $0x380] sm:$0xff]  ;;  %v606_v7 = vld [vmem:[%s6739_s1 + $0x3b8] sm:$0xff] }
 0x150   : > { %3997 = vmatprep.subr.bf16.mxu0 %v6825_v29  ;;  %3776 = vmatprep.mubr.f32.mxu1 %v833_v25  ;;  %v4004_v56 = vpack.c.bf16 %v600_v46, %v599_v58  ;;  %v610_v25 = vld [vmem:[%s6739_s1 + $0x3d8] sm:$0xff] }
 0x151   : > { %3777 = vmatmul.mubr.f32.gmra.mrb[18].mxu1 %v835_v33  ;;  %v614_v46 = vld [vmem:[%s6739_s1 + $0x3f8] sm:$0xff] }
 0x152   : > { %1269 = vmatmul.mubr.f32.gmra.mrb[12].mxu0 %v5115_v63 }
 0x153   : > { %1273 = vmatprep.mubr.f32.mxu0 %v5479_v54  ;;  %3999 = vmatpush1.bf16.msra.mxu0 %v3998_v4  ;;  %v601_v54 = vld [vmem:[%s6739_s1 + $0x390] sm:$0xff]  ;;  %v604_v4 = vld [vmem:[%s6739_s1 + $0x3a8] sm:$0xff] }
 0x154   : > { %4000 = vmatprep.subr.bf16.mxu0 %v6825_v29  ;;  %v4007_v0 = vpack.c.bf16 %v602_v38, %v601_v54  ;;  %v808_v54 = vrot.slane %v5589_v18, 1 }
 0x156   : > { %1274 = vmatmul.mubr.f32.gmra.mrb[14].mxu0 %v5137_v9 }
 0x157   : > { %1278 = vmatprep.mubr.f32.mxu0 %v5495_v11  ;;  %4002 = vmatpush1.bf16.msra.mxu0 %v4001_v44  ;;  %v603_v11 = vld [vmem:[%s6739_s1 + $0x3a0] sm:$0xff]  ;;  %v612_v44 = vld [vmem:[%s6739_s1 + $0x3e8] sm:$0xff] }
 0x158   : > { %4003 = vmatprep.subr.bf16.mxu0 %v6825_v29  ;;  %v4010_v62 = vpack.c.bf16 %v604_v4, %v603_v11 }
 0x15a   : > { %1279 = vmatmul.mubr.f32.gmra.mrb[16].mxu0 %v5156_v30 }
 0x15b   : > { %1283 = vmatprep.mubr.f32.mxu0 %v5511_v55  ;;  %4005 = vmatpush1.bf16.msra.mxu0 %v4004_v56  ;;  %v605_v55 = vld [vmem:[%s6739_s1 + $0x3b0] sm:$0xff] }
 0x15c   : > { %4006 = vmatprep.subr.bf16.mxu0 %v6825_v29  ;;  %v4013_v32 = vpack.c.bf16 %v606_v7, %v605_v55 }
 0x15e   : > { %1284 = vmatmul.mubr.f32.gmra.mrb[18].mxu0 %v5178_v49 }
 0x15f   : > { %1288 = vmatprep.mubr.f32.mxu0 %v5527_v12  ;;  %4008 = vmatpush1.bf16.msra.mxu0 %v4007_v0  ;;  %v607_v12 = vld [vmem:[%s6739_s1 + $0x3c0] sm:$0xff] }
 0x160   : > { %4009 = vmatprep.subr.bf16.mxu0 %v6825_v29  ;;  %v4016_v51 = vpack.c.bf16 %v608_v19, %v607_v12 }
 0x162   : > { %1289 = vmatmul.mubr.f32.gmra.mrb[20].mxu0 %v5197_v10 }
 0x163   : > { %1293 = vmatprep.mubr.f32.mxu0 %v5545_v52  ;;  %4011 = vmatpush1.bf16.msra.mxu0 %v4010_v62  ;;  %v609_v52 = vld [vmem:[%s6739_s1 + $0x3d0] sm:$0xff] }
 0x164   : > { %4012 = vmatprep.subr.bf16.mxu0 %v6825_v29  ;;  %v4019_v33 = vpack.c.bf16 %v610_v25, %v609_v52 }
 0x166   : > { %1294 = vmatmul.mubr.f32.gmra.mrb[22].mxu0 %v5219_v47 }
 0x167   : > { %1298 = vmatprep.mubr.f32.mxu0 %v5550_v45  ;;  %4014 = vmatpush1.bf16.msra.mxu0 %v4013_v32  ;;  %v611_v45 = vld [vmem:[%s6739_s1 + $0x3e0] sm:$0xff] }
 0x168   : > { %4015 = vmatprep.subr.bf16.mxu0 %v6825_v29  ;;  %v4022_v58 = vpack.c.bf16 %v612_v44, %v611_v45 }
 0x16a   : > { %1299 = vmatmul.mubr.f32.gmra.mrb[24].mxu0 %v5238_v31 }
 0x16b   : > { %1303 = vmatprep.mubr.f32.mxu0 %v5566_v16  ;;  %4017 = vmatpush1.bf16.msra.mxu0 %v4016_v51  ;;  %v613_v16 = vld [vmem:[%s6739_s1 + $0x3f0] sm:$0xff] }
 0x16c   : > { %4018 = vmatprep.subr.bf16.mxu0 %v6825_v29  ;;  %v4025_v56 = vpack.c.bf16 %v614_v46, %v613_v16 }
 0x16e   : > { %1304 = vmatmul.mubr.f32.gmra.mrb[26].mxu0 %v5260_v8 }
 0x16f   : > { %1308 = vmatprep.mubr.f32.mxu0 %v5571_v41  ;;  %4020 = vmatpush1.bf16.msra.mxu0 %v4019_v33  ;;  %v807_v41 = vrot.slane %v5587_v15, 1 }
 0x170   : > { %4021 = vmatprep.subr.bf16.mxu0 %v6825_v29 }
 0x172   : > { %1309 = vmatmul.mubr.f32.gmra.mrb[28].mxu0 %v5279_v59 }
 0x173   : > { %1313 = vmatprep.mubr.f32.mxu0 %v5593_v50  ;;  %4023 = vmatpush1.bf16.msra.mxu0 %v4022_v58  ;;  %v809_v50 = vsel %vm662_vm0, %v807_v41, %v808_v54 }
 0x174   : > { %4024 = vmatprep.subr.bf16.mxu0 %v6825_v29  ;;  %v810_v29 = vrot.slane %v483_v39, 1 }
 0x176   : > { %1314 = vmatmul.mubr.f32.gmra.mrb[30].mxu0 %v5295_v5 }
 0x177   : > { %1318 = vmatprep.mubr.f32.mxu0 %v5599_v34  ;;  %4026 = vmatpush1.bf16.msra.mxu0 %v4025_v56  ;;  %v811_v34 = vsel %vm662_vm0, %v808_v54, %v810_v29 }
 0x17a   : > { %1319 = vmatmul.mubr.f32.gmra.mrb[32].mxu0 %v5304_v53 }
 0x17b   : > { %1323 = vmatprep.mubr.f32.mxu0 %v5609_v27 }
 0x17e   : > { %1324 = vmatmul.mubr.f32.gmra.mrb[34].mxu0 %v5311_v37 }
 0x17f   : > { %1328 = vmatprep.mubr.f32.mxu0 %v5615_v1 }
 0x182   : > { %1329 = vmatmul.mubr.f32.gmra.mrb[36].mxu0 %v809_v50 }
 0x183   : > { %1333 = vmatprep.mubr.f32.mxu0 %v5622_v17 }
 0x186   : > { %1334 = vmatmul.mubr.f32.gmra.mrb[38].mxu0 %v811_v34 }
 0x187   : > { %1403 = vmatprep.mubr.f32.mxu0 %v5033_v14  ;;  %v6838_v14 = vld [vmem:[#allocation34_spill] sm:$0xff] }
 0x18a   : > { %1404 = vmatmul.mubr.f32.vlgmr.msra.gmra.mrb[0].mxu0 %v4918_v22  ;;  %v6836_v22 = vld [vmem:[#allocation29_spill] sm:$0xff] }
 0x18b   : > { %1408 = vmatprep.mubr.f32.mxu0 %v5055_v28  ;;  %v824_v28 = vrot.slane %v5688_v13, 1 }
 0x18e   : > { %1409 = vmatmul.mubr.f32.gmra.mrb[2].mxu0 %v4921_v23  ;;  %v6837_v23 = vld [vmem:[#allocation30_spill] sm:$0xff] }
 0x18f   : > { %1413 = vmatprep.mubr.f32.mxu0 %v5074_v40  ;;  %v825_v40 = vrot.slane %v5690_v36, 1 }
 0x192   : > { %1414 = vmatmul.mubr.f32.gmra.mrb[4].mxu0 %v5045_v21  ;;  %v6839_v21 = vld [vmem:[#allocation35_spill] sm:$0xff] }
 0x193   : > { %1418 = vmatprep.mubr.f32.mxu0 %v5096_v48 }
 0x196   : > { %1419 = vmatmul.mubr.f32.gmra.mrb[6].mxu0 %v5048_v26  ;;  %v6840_v26 = vld [vmem:[#allocation39_spill] sm:$0xff] }
 0x197   : > { %1423 = vmatprep.mubr.f32.mxu0 %v5115_v63 }
 0x19a   : > { %1424 = vmatmul.mubr.f32.gmra.mrb[8].mxu0 %v5080_v42  ;;  %v826_v42 = vsel %vm662_vm0, %v824_v28, %v825_v40 }
 0x19b   : > { %1428 = vmatprep.mubr.f32.mxu0 %v5137_v9 }
 0x19e   : > { %1429 = vmatmul.mubr.f32.gmra.mrb[10].mxu0 %v5083_v43 }
 0x19f   : > { %1433 = vmatprep.mubr.f32.mxu0 %v5156_v30 }
 0x1a2   : > { %1434 = vmatmul.mubr.f32.gmra.mrb[12].mxu0 %v5121_v2 }
 0x1a3   : > { %1438 = vmatprep.mubr.f32.mxu0 %v5178_v49 }
 0x1a6   : > { %1439 = vmatmul.mubr.f32.gmra.mrb[14].mxu0 %v5124_v3 }
 0x1a7   : > { %1443 = vmatprep.mubr.f32.mxu0 %v5197_v10 }
 0x1aa   : > { %1444 = vmatmul.mubr.f32.gmra.mrb[16].mxu0 %v6836_v22 }
 0x1ab   : > { %1448 = vmatprep.mubr.f32.mxu0 %v5219_v47 }
 0x1ae   : > { %1449 = vmatmul.mubr.f32.gmra.mrb[18].mxu0 %v6837_v23 }
 0x1af   : > { %1453 = vmatprep.mubr.f32.mxu0 %v5238_v31 }
 0x1b2   : > { %1454 = vmatmul.mubr.f32.gmra.mrb[20].mxu0 %v6838_v14 }
 0x1b3   : > { %1458 = vmatprep.mubr.f32.mxu0 %v5260_v8 }
 0x1b6   : > { %1459 = vmatmul.mubr.f32.gmra.mrb[22].mxu0 %v6839_v21 }
 0x1b7   : > { %1463 = vmatprep.mubr.f32.mxu0 %v5279_v59 }
 0x1ba   : > { %1464 = vmatmul.mubr.f32.gmra.mrb[24].mxu0 %v6840_v26 }
 0x1bb   : > { %1468 = vmatprep.mubr.f32.mxu0 %v5295_v5 }
 0x1be   : > { %1469 = vmatmul.mubr.f32.gmra.mrb[26].mxu0 %v5246_v35  ;;  %v827_v35 = vrot.slane %v486_v6, 1 }
 0x1bf   : > { %1473 = vmatprep.mubr.f32.mxu0 %v5304_v53 }
 0x1c0   : > { %v828_v43 = vsel %vm662_vm0, %v825_v40, %v827_v35 }
 0x1c2   : > { %1474 = vmatmul.mubr.f32.gmra.mrb[28].mxu0 %v5284_v24 }
 0x1c3   : > { %1478 = vmatprep.mubr.f32.mxu0 %v5311_v37 }
 0x1c6   : > { %1479 = vmatmul.mubr.f32.gmra.mrb[30].mxu0 %v5287_v20 }
 0x1c7   : > { %1483 = vmatprep.mubr.f32.mxu0 %v809_v50 }
 0x1ca   : > { %1484 = vmatmul.mubr.f32.gmra.mrb[32].mxu0 %v5587_v15 }
 0x1cb   : > { %1488 = vmatprep.mubr.f32.mxu0 %v811_v34 }
 0x1ce   : > { %1489 = vmatmul.mubr.f32.gmra.mrb[34].mxu0 %v5589_v18  ;;  %v5867_v18 = vld [vmem:[%s6740_s2] ss:$0 sm:$0xff] }
 0x1cf   : > { %1493 = vmatprep.mubr.f32.mxu0 %v826_v42 }
 0x1d2   : > { %1494 = vmatmul.mubr.f32.gmra.mrb[36].mxu0 %v5688_v13 }
 0x1d3   : > { %1498 = vmatprep.mubr.f32.mxu0 %v828_v43 }
 0x1d6   : > { %1499 = vmatmul.mubr.f32.gmra.mrb[38].mxu0 %v5690_v36 }
 0x1df   : > { %v3751_v48 = vpop.f32.mrb[0].mxu1 }
 0x1e0   : > { %v1570_v63 = vpop.f32.mrb[1].mxu1 }
 0x1e3   : > { %v3754_v2 = vpop.f32.mrb[2].mxu1 }
 0x1e4   : > { %v1580_v3 = vpop.f32.mrb[3].mxu1 }
 0x1e7   : > { %v3757_v9 = vpop.f32.mrb[4].mxu1 }
 0x1e8   : > { %v1590_v20 = vpop.f32.mrb[5].mxu1 }
 0x1eb   : > { %v3760_v24 = vpop.f32.mrb[6].mxu1 }
 0x1ec   : > { %v1600_v30 = vpop.f32.mrb[7].mxu1 }
 0x1ef   : > { %v5840_v39 = vpop.f32.mrb[8].mxu1 }
 0x1f0   : > { %v5842_v49 = vpop.f32.mrb[9].mxu1 }
 0x1f3   : > { %v5844_v10 = vpop.f32.mrb[10].mxu1 }
 0x1f4   : > { %v5846_v47 = vpop.f32.mrb[11].mxu1 }
 0x1f7   : > { %v5848_v53 = vpop.f32.mrb[12].mxu1 }
 0x1f8   : > { %v5850_v31 = vpop.f32.mrb[13].mxu1 }
 0x1fb   : > { %v5852_v8 = vpop.f32.mrb[14].mxu1 }
 0x1fc   : > { %v5854_v59 = vpop.f32.mrb[15].mxu1 }
 0x1ff   : > { %v5856_v5 = vpop.f32.mrb[16].mxu1 }
 0x200   : > { %v5858_v37 = vpop.f32.mrb[17].mxu1 }
 0x224   : > { %v5860_v60 = vpop.f32.mrb[18].mxu1 }
 0x225   : > { %v5862_v15 = vpop.f32.mrb[19].mxu1 }
 0x25d   : > { %v1405_v27 = vpop.f32.mrb[0].mxu0 }
 0x25e   : > { %v4219_v1 = vadd.f32 %v5867_v18, %v1405_v27  ;;  %v1407_v17 = vpop.f32.mrb[1].mxu0 }
 0x260   : > { %v1571_v13 = vadd.f32 %v4219_v1, %v1570_v63 }
 0x261   : > { %v1410_v36 = vpop.f32.mrb[2].mxu0 }
 0x262   : > { %v1669_v57 = vmax.f32 %v1571_v13, 0.0  ;;  %v4220_v6 = vadd.f32 %v5867_v18, %v1410_v36  ;;  %v1412_v38 = vpop.f32.mrb[3].mxu0 }
 0x264   : > { %1709 = vst [vmem:[#allocation3 + $0x1] sm:$0xff] %v1669_v57  ;;  %v1576_v0 = vadd.f32 %v4220_v6, %v3751_v48 }
 0x265   : > { %v1415_v11 = vpop.f32.mrb[4].mxu0 }
 0x266   : > { %v1670_v4 = vmax.f32 %v1576_v0, 0.0  ;;  %v4221_v62 = vadd.f32 %v5867_v18, %v1415_v11  ;;  %v1417_v55 = vpop.f32.mrb[5].mxu0 }
 0x268   : > { %1710 = vst [vmem:[#allocation3 + $0x9] sm:$0xff] %v1670_v4  ;;  %v1581_v7 = vadd.f32 %v4221_v62, %v1580_v3 }
 0x269   : > { %v1420_v32 = vpop.f32.mrb[6].mxu0 }
 0x26a   : > { %v1671_v12 = vmax.f32 %v1581_v7, 0.0  ;;  %v4222_v19 = vadd.f32 %v5867_v18, %v1420_v32  ;;  %v1422_v51 = vpop.f32.mrb[7].mxu0 }
 0x26c   : > { %1711 = vst [vmem:[#allocation3 + $0x19] sm:$0xff] %v1671_v12  ;;  %v1586_v52 = vadd.f32 %v4222_v19, %v3754_v2 }
 0x26d   : > { %v1425_v25 = vpop.f32.mrb[8].mxu0 }
 0x26e   : > { %v1672_v33 = vmax.f32 %v1586_v52, 0.0  ;;  %v4223_v45 = vadd.f32 %v5867_v18, %v1425_v25  ;;  %v1427_v44 = vpop.f32.mrb[9].mxu0 }
 0x270   : > { %1712 = vst [vmem:[#allocation3 + $0x21] sm:$0xff] %v1672_v33  ;;  %v1591_v58 = vadd.f32 %v4223_v45, %v1590_v20 }
 0x271   : > { %v1430_v16 = vpop.f32.mrb[10].mxu0 }
 0x272   : > { %v1673_v46 = vmax.f32 %v1591_v58, 0.0  ;;  %v4224_v56 = vadd.f32 %v5867_v18, %v1430_v16  ;;  %v1432_v41 = vpop.f32.mrb[11].mxu0 }
 0x274   : > { %1713 = vst [vmem:[#allocation3 + $0x31] sm:$0xff] %v1673_v46  ;;  %v1596_v54 = vadd.f32 %v4224_v56, %v3757_v9 }
 0x275   : > { %v1435_v50 = vpop.f32.mrb[12].mxu0 }
 0x276   : > { %v1674_v29 = vmax.f32 %v1596_v54, 0.0  ;;  %v4225_v34 = vadd.f32 %v5867_v18, %v1435_v50  ;;  %v1437_v22 = vpop.f32.mrb[13].mxu0 }
 0x278   : > { %1714 = vst [vmem:[#allocation3 + $0x39] sm:$0xff] %v1674_v29  ;;  %v1601_v23 = vadd.f32 %v4225_v34, %v1600_v30 }
 0x279   : > { %v1440_v14 = vpop.f32.mrb[14].mxu0 }
 0x27a   : > { %v1675_v21 = vmax.f32 %v1601_v23, 0.0  ;;  %v4226_v26 = vadd.f32 %v5867_v18, %v1440_v14  ;;  %v1442_v28 = vpop.f32.mrb[15].mxu0 }
 0x27c   : > { %1715 = vst [vmem:[#allocation3 + $0x49] sm:$0xff] %v1675_v21  ;;  %v1606_v40 = vadd.f32 %v4226_v26, %v3760_v24 }
 0x27d   : > { %v1445_v42 = vpop.f32.mrb[16].mxu0 }
 0x27e   : > { %v1676_v35 = vmax.f32 %v1606_v40, 0.0  ;;  %v4227_v43 = vadd.f32 %v5867_v18, %v1445_v42  ;;  %v1447_v48 = vpop.f32.mrb[17].mxu0 }
 0x280   : > { %1716 = vst [vmem:[#allocation3 + $0x51] sm:$0xff] %v1676_v35  ;;  %v1611_v63 = vadd.f32 %v4227_v43, %v5842_v49 }
 0x281   : > { %v1450_v2 = vpop.f32.mrb[18].mxu0 }
 0x282   : > { %v1677_v3 = vmax.f32 %v1611_v63, 0.0  ;;  %v4228_v9 = vadd.f32 %v5867_v18, %v1450_v2  ;;  %v1452_v20 = vpop.f32.mrb[19].mxu0 }
 0x284   : > { %1717 = vst [vmem:[#allocation3 + $0x61] sm:$0xff] %v1677_v3  ;;  %v1616_v30 = vadd.f32 %v4228_v9, %v5840_v39 }
 0x285   : > { %v1455_v27 = vpop.f32.mrb[20].mxu0 }
 0x286   : > { %v1678_v1 = vmax.f32 %v1616_v30, 0.0  ;;  %v4229_v24 = vadd.f32 %v5867_v18, %v1455_v27  ;;  %v1457_v17 = vpop.f32.mrb[21].mxu0 }
 0x288   : > { %1718 = vst [vmem:[#allocation3 + $0x69] sm:$0xff] %v1678_v1  ;;  %v1621_v13 = vadd.f32 %v4229_v24, %v5846_v47 }
 0x289   : > { %v1460_v36 = vpop.f32.mrb[22].mxu0 }
 0x28a   : > { %v1679_v57 = vmax.f32 %v1621_v13, 0.0  ;;  %v4230_v49 = vadd.f32 %v5867_v18, %v1460_v36  ;;  %v1462_v6 = vpop.f32.mrb[23].mxu0 }
 0x28c   : > { %1719 = vst [vmem:[#allocation3 + $0x79] sm:$0xff] %v1679_v57  ;;  %v1626_v38 = vadd.f32 %v4230_v49, %v5844_v10 }
 0x28d   : > { %v1465_v0 = vpop.f32.mrb[24].mxu0 }
 0x28e   : > { %v1680_v11 = vmax.f32 %v1626_v38, 0.0  ;;  %v4231_v39 = vadd.f32 %v5867_v18, %v1465_v0  ;;  %v1467_v4 = vpop.f32.mrb[25].mxu0 }
 0x290   : > { %1720 = vst [vmem:[#allocation3 + $0x81] sm:$0xff] %v1680_v11  ;;  %v1631_v62 = vadd.f32 %v4231_v39, %v5850_v31 }
 0x291   : > { %v1470_v55 = vpop.f32.mrb[26].mxu0 }
 0x292   : > { %v1681_v7 = vmax.f32 %v1631_v62, 0.0  ;;  %v4232_v47 = vadd.f32 %v5867_v18, %v1470_v55  ;;  %v1472_v32 = vpop.f32.mrb[27].mxu0 }
 0x294   : > { %1721 = vst [vmem:[#allocation3 + $0x91] sm:$0xff] %v1681_v7  ;;  %v1636_v12 = vadd.f32 %v4232_v47, %v5848_v53 }
 0x295   : > { %v1475_v19 = vpop.f32.mrb[28].mxu0 }
 0x296   : > { %v1682_v51 = vmax.f32 %v1636_v12, 0.0  ;;  %v4233_v10 = vadd.f32 %v5867_v18, %v1475_v19  ;;  %v1477_v52 = vpop.f32.mrb[29].mxu0 }
 0x298   : > { %1722 = vst [vmem:[#allocation3 + $0x99] sm:$0xff] %v1682_v51  ;;  %v1641_v25 = vadd.f32 %v4233_v10, %v5854_v59 }
 0x299   : > { %v1480_v33 = vpop.f32.mrb[30].mxu0 }
 0x29a   : > { %v1683_v45 = vmax.f32 %v1641_v25, 0.0  ;;  %v4234_v31 = vadd.f32 %v5867_v18, %v1480_v33  ;;  %v1482_v44 = vpop.f32.mrb[31].mxu0 }
 0x29c   : > { %1723 = vst [vmem:[#allocation3 + $0xa9] sm:$0xff] %v1683_v45  ;;  %v1646_v58 = vadd.f32 %v4234_v31, %v5852_v8 }
 0x29d   : > { %v1485_v16 = vpop.f32.mrb[32].mxu0 }
 0x29e   : > { %v1684_v46 = vmax.f32 %v1646_v58, 0.0  ;;  %v4235_v53 = vadd.f32 %v5867_v18, %v1485_v16  ;;  %v1487_v56 = vpop.f32.mrb[33].mxu0 }
 0x2a0   : > { %1724 = vst [vmem:[#allocation3 + $0xb1] sm:$0xff] %v1684_v46  ;;  %v1651_v41 = vadd.f32 %v4235_v53, %v5858_v37 }
 0x2a1   : > { %v1490_v54 = vpop.f32.mrb[34].mxu0 }
 0x2a2   : > { %v1685_v50 = vmax.f32 %v1651_v41, 0.0  ;;  %v4236_v59 = vadd.f32 %v5867_v18, %v1490_v54  ;;  %v1492_v29 = vpop.f32.mrb[35].mxu0 }
 0x2a4   : > { %1725 = vst [vmem:[#allocation3 + $0xc1] sm:$0xff] %v1685_v50  ;;  %v1656_v34 = vadd.f32 %v4236_v59, %v5856_v5  ;;  %v4616_v5 = vmov (!%p3315_p3), 0.0  }
 0x2a5   : > { %v1495_v22 = vpop.f32.mrb[36].mxu0  ;;  %1733 = vst [vmem:[#allocation3] sm:$0xff] (!%p3315_p3), %v4616_v5  ;;  %1734 = vst [vmem:[#allocation3 + $0x8] sm:$0xff] (!%p3315_p3), %v4616_v5 }
 0x2a6   : > { %v1686_v23 = vmax.f32 %v1656_v34, 0.0  ;;  %v4237_v8 = vadd.f32 %v5867_v18, %v1495_v22  ;;  %v1497_v14 = vpop.f32.mrb[37].mxu0  ;;  %1735 = vst [vmem:[#allocation3 + $0x10] sm:$0x3] (!%p3315_p3), %v4616_v5 }
 0x2a8   : > { %1726 = vst [vmem:[#allocation3 + $0xc9] sm:$0xff] %v1686_v23  ;;  %v1661_v21 = vadd.f32 %v4237_v8, %v5862_v15 }
 0x2a9   : > { %v1500_v26 = vpop.f32.mrb[38].mxu0 }
 0x2aa   : > { %v1687_v28 = vmax.f32 %v1661_v21, 0.0  ;;  %v4238_v37 = vadd.f32 %v5867_v18, %v1500_v26  ;;  %v1502_v40 = vpop.f32.mrb[39].mxu0  ;;  %1732 = sbr.rel (%p3315_p3) target bundleno = 689 (0x2b1), region = 89 }
 0x2ac   : > { %1727 = vst [vmem:[#allocation3 + $0xd9] sm:$0xff] %v1687_v28  ;;  %v1666_v42 = vadd.f32 %v4238_v37, %v5860_v60 }
 0x2ae   : > { %v1688_v35 = vmax.f32 %v1666_v42, 0.0 }
 0x2b0   : > { %1728 = vst [vmem:[#allocation3 + $0xe1] sm:$0xff] %v1688_v35 }
 0x2b1 PF: > { %p3316_p8 = scmp.ne.s32.totalorder %s4593_s27, 1 }
 0x2b2   : > { %v4617_v15 = vmov (!%p3316_p8), 0.0  }
 0x2b3   : > { %1739 = sbr.rel (%p3316_p8) target bundleno = 698 (0x2ba), region = 93  ;;  %1741 = vst [vmem:[#allocation3 + $0xd8] sm:$0xff] (!%p3316_p8), %v4617_v15  ;;  %1742 = vst [vmem:[#allocation3 + $0xe0] sm:$0xff] (!%p3316_p8), %v4617_v15 }
 0x2b4   : > { %1743 = vst [vmem:[#allocation3 + $0xe8] sm:$0x3] (!%p3316_p8), %v4617_v15 }
 0x2ba PF: > { %v1790_v18 = vld [vmem:[#allocation5 + $0x80] sm:$0xff]  ;;  %v1791_v60 = vld [vmem:[#allocation5 + $0x88] sm:$0xff]  ;;  %v1792_v2 = vld [vmem:[#allocation5 + $0x90] sm:$0xff]  ;;  %vm3079_vm3 = vcmask 1040384   ;;  %s3328_s23 = sshll.u32 %s4593_s27, 4  ;;  %s3323_s22 = sshll.u32 %s4597_s28, 5 }
 0x2bb   : > { %v1774_v43 = vld [vmem:[#allocation5] sm:$0xff]  ;;  %v4059_v48 = vpack.c.bf16 %v1791_v60, %v1790_v18  ;;  %v1775_v63 = vld [vmem:[#allocation5 + $0x8] sm:$0xff]  ;;  %v1793_v3 = vld [vmem:[#allocation5 + $0x98] sm:$0xff]  ;;  %s3190_s27 = sadd.s32 %s3328_s23, %s3323_s22  ;;  %s3193_s19 = sshll.u32 %s4819_s20, 4  ;;  %s6679_s19 = int_to_ptr.vmem [resolvable:$true] %s3193_s19 }
 0x2bc   : > { %v4061_v9 = vpack.c.bf16 %v1775_v63, %v1774_v43  ;;  %v4063_v20 = vpack.c.bf16 %v1793_v3, %v1792_v2  ;;  %v1776_v30 = vld [vmem:[#allocation5 + $0x10] sm:$0xff]  ;;  %v1777_v27 = vld [vmem:[#allocation5 + $0x18] sm:$0xff]  ;;  %v1794_v1 = vld [vmem:[#allocation5 + $0xa0] sm:$0xff]  ;;  %s3324_s28 = sshll.u32 %s3190_s27, 7  ;;  %s6686_s18 = scalar_lea.sflag [#allocation7], %s257_s11 }
 0x2bd   : > { %4060 = vmatprep.subr.bf16.mxu1 %v4059_v48  ;;  %v1795_v24 = vld [vmem:[#allocation5 + $0xa8] sm:$0xff]  ;;  %v4065_v17 = vpack.c.bf16 %v1777_v27, %v1776_v30  ;;  %v1778_v36 = vld [vmem:[#allocation5 + $0x20] sm:$0xff]  ;;  %v1796_v49 = vld [vmem:[#allocation5 + $0xb0] sm:$0xff]  ;;  %s6677_s17 = scalar_lea.hbm %s6745_s7, %s3324_s28  ;;  %s4509_s9 = scalar_lea.vmem %s6679_s19, 2048 }
 0x2be   : > { %4062 = vmatpush3.bf16.msra.mxu1 %v4061_v9  ;;  %v4067_v13 = vpack.c.bf16 %v1795_v24, %v1794_v1  ;;  %v1779_v57 = vld [vmem:[#allocation5 + $0x28] sm:$0xff]  ;;  %v1797_v6 = vld [vmem:[#allocation5 + $0xb8] sm:$0xff]  ;;  %v1780_v11 = vld [vmem:[#allocation5 + $0x30] sm:$0xff]  ;;  %p4510_p10 = scmp.ne.s32.totalorder %s6679_s19, %s4509_s9  ;;  %p6864_p12 = scmp.ne.s32.totalorder %s6791_s15, 0 }
 0x2bf   : > { %4064 = vmatprep.subr.bf16.mxu1 %v4063_v20  ;;  %v4069_v38 = vpack.c.bf16 %v1779_v57, %v1778_v36  ;;  %v4071_v0 = vpack.c.bf16 %v1797_v6, %v1796_v49  ;;  %v1781_v39 = vld [vmem:[#allocation5 + $0x38] sm:$0xff]  ;;  %v1798_v4 = vld [vmem:[#allocation5 + $0xc0] sm:$0xff]  ;;  %v1799_v62 = vld [vmem:[#allocation5 + $0xc8] sm:$0xff]  ;;  %s4618_s10 = smov [#allocation8]  }
 0x2c0   : > { %v5903_v55 = vld [vmem:[#allocation3] sm:$0xff]  ;;  %v5905_v7 = vld [vmem:[#allocation3 + $0x8] sm:$0xff]  ;;  %v4073_v12 = vpack.c.bf16 %v1781_v39, %v1780_v11  ;;  %v1746_v10 = vld [vmem:[#allocation3 + $0x10] sm:$0x3]  ;;  %v4075_v52 = vpack.c.bf16 %v1799_v62, %v1798_v4  ;;  %p4511_p0 = pnand %p4510_p10, %p6864_p12  ;;  %s4513_s13 = sshll.u32 %s4618_s10, 4  ;;  %s4514_s13 = int_to_ptr.vmem [resolvable:$false] %s4513_s13 }
 0x2c1   : > { %v1943_v47 = vrot.slane %v5903_v55, 1  ;;  %v1999_v32 = vrot.slane %v5903_v55, 2  ;;  %v1944_v19 = vrot.slane %v5905_v7, 1  ;;  %v2000_v51 = vrot.slane %v5905_v7, 2  ;;  %v1782_v25 = vld [vmem:[#allocation5 + $0x40] sm:$0xff]  ;;  %v1783_v33 = vld [vmem:[#allocation5 + $0x48] sm:$0xff]  ;;  %p4516_p5 = scmp.lt.s32.totalorder %s6679_s19, %s4514_s13 }
 0x2c2   : > { %4066 = vmatpush3.bf16.msra.mxu1 %v4065_v17  ;;  %v2002_v45 = vrot.slane %v1746_v10, 2  ;;  %v1800_v31 = vld [vmem:[#allocation5 + $0xd0] sm:$0xff]  ;;  %v1801_v44 = vld [vmem:[#allocation5 + $0xd8] sm:$0xff]  ;;  %v4077_v53 = vpack.c.bf16 %v1783_v33, %v1782_v25  ;;  %v1802_v50 = vld [vmem:[#allocation5 + $0xe0] sm:$0xff]  ;;  %v1946_v60 = vrot.slane %v1746_v10, 1  ;;  %p4512_p2 = pneg %p4511_p0  ;;  %s4515_s23 = scalar_lea.vmem %s4514_s13, 4096 }
 0x2c3   : > { %4068 = vmatprep.subr.bf16.mxu1 %v4067_v13  ;;  %v1945_v58 = vsel %vm662_vm0, %v1943_v47, %v1944_v19  ;;  %v5913_v16 = vsel %vm733_vm1, %v1999_v32, %v2000_v51  ;;  %v4079_v56 = vpack.c.bf16 %v1801_v44, %v1800_v31  ;;  %v1784_v41 = vld [vmem:[#allocation5 + $0x50] sm:$0xff]  ;;  %v1785_v54 = vld [vmem:[#allocation5 + $0x58] sm:$0xff]  ;;  %v1803_v59 = vld [vmem:[#allocation5 + $0xe8] sm:$0xff]  ;;  %p4517_p6 = scmp.lt.s32.totalorder %s4515_s23, %s4509_s9 }
 0x2c4   : > { %2159 = vmatprep.mubr.f32.mxu1 %v1945_v58  ;;  %v5916_v46 = vsel %vm733_vm1, %v2000_v51, %v2002_v45  ;;  %v4081_v29 = vpack.c.bf16 %v1785_v54, %v1784_v41  ;;  %v4083_v34 = vpack.c.bf16 %v1803_v59, %v1802_v50  ;;  %v1786_v22 = vld [vmem:[#allocation5 + $0x60] sm:$0xff]  ;;  %v1787_v23 = vld [vmem:[#allocation5 + $0x68] sm:$0xff]  ;;  %v1804_v8 = vld [vmem:[#allocation5 + $0xf0] sm:$0xff]  ;;  %v1947_v9 = vsel %vm662_vm0, %v1944_v19, %v1946_v60 }
 0x2c5   : > { %v1805_v14 = vld [vmem:[#allocation5 + $0xf8] sm:$0xff]  ;;  %v4085_v21 = vpack.c.bf16 %v1787_v23, %v1786_v22  ;;  %v1788_v28 = vld [vmem:[#allocation5 + $0x70] sm:$0xff]  ;;  %v1822_v40 = vld [vmem:[#allocation5 + $0x180] sm:$0xff]  ;;  %p4518_p7 = por %p4517_p6, %p4516_p5 }
 0x2c6   : > { %4070 = vmatpush3.bf16.msra.mxu1 %v4069_v38  ;;  %v4087_v26 = vpack.c.bf16 %v1805_v14, %v1804_v8  ;;  %v1789_v37 = vld [vmem:[#allocation5 + $0x78] sm:$0xff]  ;;  %v1823_v42 = vld [vmem:[#allocation5 + $0x188] sm:$0xff]  ;;  %v1806_v15 = vld [vmem:[#allocation5 + $0x100] sm:$0xff] }
 0x2c7   : > { %4072 = vmatprep.subr.bf16.mxu1 %v4071_v0  ;;  %v4089_v35 = vpack.c.bf16 %v1789_v37, %v1788_v28  ;;  %v4091_v5 = vpack.c.bf16 %v1823_v42, %v1822_v40  ;;  %v1807_v18 = vld [vmem:[#allocation5 + $0x108] sm:$0xff]  ;;  %v5920_v48 = vld [vmem:[#allocation3 + $0x20] sm:$0xff]  ;;  %v1825_v2 = vld [vmem:[#allocation5 + $0x198] sm:$0xff]  ;;  %p4519_p9 = pnand %p4518_p7, %p4512_p2 }
 0x2c8   : > { %v5918_v43 = vld [vmem:[#allocation3 + $0x18] sm:$0xff]  ;;  %v1824_v63 = vld [vmem:[#allocation5 + $0x190] sm:$0xff]  ;;  %v4093_v3 = vpack.c.bf16 %v1807_v18, %v1806_v15  ;;  %v1949_v30 = vrot.slane %v5920_v48, 1  ;;  %v1809_v24 = vld [vmem:[#allocation5 + $0x118] sm:$0xff] }
 0x2c9   : > { %v1948_v20 = vrot.slane %v5918_v43, 1  ;;  %v4095_v27 = vpack.c.bf16 %v1825_v2, %v1824_v63  ;;  %v1808_v1 = vld [vmem:[#allocation5 + $0x110] sm:$0xff]  ;;  %v5925_v17 = vld [vmem:[#allocation3 + $0x28] sm:$0x3]  ;;  %v1826_v13 = vld [vmem:[#allocation5 + $0x1a0] sm:$0xff] }
 0x2ca   : > { %4074 = vmatpush3.bf16.msra.mxu1 %v4073_v12  ;;  %v1827_v36 = vld [vmem:[#allocation5 + $0x1a8] sm:$0xff]  ;;  %v4097_v57 = vpack.c.bf16 %v1809_v24, %v1808_v1  ;;  %v1951_v6 = vrot.slane %v5925_v17, 1  ;;  %v5932_v38 = vld [vmem:[#allocation3 + $0x30] sm:$0xff]  ;;  %v1828_v62 = vld [vmem:[#allocation5 + $0x1b0] sm:$0xff] }
 0x2cb   : > { %4076 = vmatprep.subr.bf16.mxu1 %v4075_v52  ;;  %v5929_v49 = vsel %vm662_vm0, %v1948_v20, %v1949_v30  ;;  %v4099_v0 = vpack.c.bf16 %v1827_v36, %v1826_v13  ;;  %v1810_v11 = vld [vmem:[#allocation5 + $0x120] sm:$0xff]  ;;  %v1811_v39 = vld [vmem:[#allocation5 + $0x128] sm:$0xff]  ;;  %v1829_v47 = vld [vmem:[#allocation5 + $0x1b8] sm:$0xff]  ;;  %v1953_v12 = vrot.slane %v5932_v38, 1 }
 0x2cc   : > { %v5934_v4 = vld [vmem:[#allocation3 + $0x38] sm:$0xff]  ;;  %v5939_v32 = vsel %vm662_vm0, %v1949_v30, %v1951_v6  ;;  %v4103_v51 = vpack.c.bf16 %v1829_v47, %v1828_v62  ;;  %v1812_v10 = vld [vmem:[#allocation5 + $0x130] sm:$0xff]  ;;  %v1813_v52 = vld [vmem:[#allocation5 + $0x138] sm:$0xff] }
 0x2cd   : > { %v1954_v19 = vrot.slane %v5934_v4, 1  ;;  %v5943_v25 = vld [vmem:[#allocation3 + $0x40] sm:$0x3]  ;;  %v1830_v33 = vld [vmem:[#allocation5 + $0x1c0] sm:$0xff]  ;;  %v1831_v45 = vld [vmem:[#allocation5 + $0x1c8] sm:$0xff] }
 0x2ce   : > { %4078 = vmatpush3.bf16.msra.mxu1 %v4077_v53  ;;  %v1956_v44 = vrot.slane %v5943_v25, 1  ;;  %v5951_v58 = vld [vmem:[#allocation3 + $0x48] sm:$0xff]  ;;  %v4107_v53 = vpack.c.bf16 %v1831_v45, %v1830_v33  ;;  %v1815_v41 = vld [vmem:[#allocation5 + $0x148] sm:$0xff]  ;;  %v5953_v54 = vld [vmem:[#allocation3 + $0x50] sm:$0xff] }
 0x2cf   : > { %4080 = vmatprep.subr.bf16.mxu1 %v4079_v56  ;;  %v5948_v31 = vsel %vm662_vm0, %v1953_v12, %v1954_v19  ;;  %v1814_v56 = vld [vmem:[#allocation5 + $0x140] sm:$0xff]  ;;  %v1832_v50 = vld [vmem:[#allocation5 + $0x1d0] sm:$0xff]  ;;  %v1833_v59 = vld [vmem:[#allocation5 + $0x1d8] sm:$0xff]  ;;  %v1958_v22 = vrot.slane %v5951_v58, 1  ;;  %v1959_v23 = vrot.slane %v5953_v54, 1 }
 0x2d0   : > { %v4111_v8 = vpack.c.bf16 %v1833_v59, %v1832_v50  ;;  %v1816_v14 = vld [vmem:[#allocation5 + $0x150] sm:$0xff]  ;;  %v1834_v28 = vld [vmem:[#allocation5 + $0x1e0] sm:$0xff]  ;;  %v1835_v37 = vld [vmem:[#allocation5 + $0x1e8] sm:$0xff] }
 0x2d1   : > { %v5967_v42 = vsel %vm662_vm0, %v1958_v22, %v1959_v23  ;;  %v4115_v15 = vpack.c.bf16 %v1835_v37, %v1834_v28  ;;  %v1818_v18 = vld [vmem:[#allocation5 + $0x160] sm:$0xff]  ;;  %v1819_v60 = vld [vmem:[#allocation5 + $0x168] sm:$0xff]  ;;  %v5972_v63 = vld [vmem:[#allocation3 + $0x68] sm:$0xff] }
 0x2d2   : > { %4082 = vmatpush3.bf16.msra.mxu1 %v4081_v29  ;;  %v4109_v29 = vpack.c.bf16 %v1815_v41, %v1814_v56  ;;  %v1836_v2 = vld [vmem:[#allocation5 + $0x1f0] sm:$0xff]  ;;  %v1821_v13 = vld [vmem:[#allocation5 + $0x178] sm:$0xff]  ;;  %v5981_v36 = vld [vmem:[#allocation3 + $0x70] sm:$0x3] }
 0x2d3   : > { %4084 = vmatprep.subr.bf16.mxu1 %v4083_v34  ;;  %v5958_v34 = vsel %vm662_vm0, %v1954_v19, %v1956_v44  ;;  %v1820_v24 = vld [vmem:[#allocation5 + $0x170] sm:$0xff]  ;;  %v1855_v6 = vld [vmem:[#allocation5 + $0x288] sm:$0xff]  ;;  %v6008_v45 = vld [vmem:[#allocation3 + $0x90] sm:$0xff] }
 0x2d4   : > { %v5989_v47 = vld [vmem:[#allocation3 + $0x78] sm:$0xff]  ;;  %v6019_v41 = vld [vmem:[#allocation3 + $0xa0] sm:$0x3]  ;;  %v6029_v22 = vld [vmem:[#allocation3 + $0xb0] sm:$0xff] }
 0x2d5   : > { %v1968_v19 = vrot.slane %v5989_v47, 1  ;;  %v1976_v59 = vrot.slane %v6019_v41, 1 }
 0x2d6   : > { %4086 = vmatpush3.bf16.msra.mxu1 %v4085_v21  ;;  %v1817_v21 = vld [vmem:[#allocation5 + $0x158] sm:$0xff] }
 0x2d7   : > { %4088 = vmatprep.subr.bf16.mxu1 %v4087_v26  ;;  %v5962_v26 = vld [vmem:[#allocation3 + $0x58] sm:$0x3]  ;;  %v4113_v40 = vpack.c.bf16 %v1817_v21, %v1816_v14  ;;  %v1979_v14 = vrot.slane %v6029_v22, 1 }
 0x2d8   : > { %v6038_v21 = vld [vmem:[#allocation3 + $0xb8] sm:$0x3] }
 0x2d9   : > { %v1981_v37 = vrot.slane %v6038_v21, 1 }
 0x2da   : > { %4090 = vmatpush3.bf16.msra.mxu1 %v4089_v35  ;;  %v1961_v35 = vrot.slane %v5962_v26, 1 }
 0x2db   : > { %4092 = vmatprep.subr.bf16.mxu1 %v4091_v5  ;;  %v5970_v5 = vld [vmem:[#allocation3 + $0x60] sm:$0xff] }
 0x2dc   : > { %v5977_v20 = vsel %vm662_vm0, %v1959_v23, %v1961_v35  ;;  %v1963_v30 = vrot.slane %v5970_v5, 1  ;;  %v1838_v35 = vld [vmem:[#allocation5 + $0x200] sm:$0xff] }
 0x2dd   : > { %2160 = vmatmul.mubr.f32.vlgmr.msra.gmra.mrb[20].mxu1 %v5903_v55  ;;  %v4101_v55 = vpack.c.bf16 %v1811_v39, %v1810_v11  ;;  %v1966_v39 = vrot.slane %v5981_v36, 1 }
 0x2de   : > { %4094 = vmatpush3.bf16.msra.mxu1 %v4093_v3  ;;  %2164 = vmatprep.mubr.f32.mxu1 %v1947_v9  ;;  %v1837_v3 = vld [vmem:[#allocation5 + $0x1f8] sm:$0xff]  ;;  %v4117_v9 = vpack.c.bf16 %v1819_v60, %v1818_v18  ;;  %v1856_v18 = vld [vmem:[#allocation5 + $0x290] sm:$0xff] }
 0x2df   : > { %4096 = vmatprep.subr.bf16.mxu1 %v4095_v27  ;;  %v1964_v27 = vrot.slane %v5972_v63, 1  ;;  %v4119_v1 = vpack.c.bf16 %v1837_v3, %v1836_v2  ;;  %v1857_v60 = vld [vmem:[#allocation5 + $0x298] sm:$0xff] }
 0x2e0   : > { %v4127_v3 = vpack.c.bf16 %v1857_v60, %v1856_v18  ;;  %v1864_v18 = vld [vmem:[#allocation5 + $0x2d0] sm:$0xff]  ;;  %v1865_v60 = vld [vmem:[#allocation5 + $0x2d8] sm:$0xff] }
 0x2e1   : > { %2165 = vmatmul.mubr.f32.gmra.mrb[22].mxu1 %v5905_v7  ;;  %v4105_v7 = vpack.c.bf16 %v1813_v52, %v1812_v10  ;;  %v5986_v11 = vsel %vm662_vm0, %v1963_v30, %v1964_v27  ;;  %v5996_v12 = vsel %vm662_vm0, %v1964_v27, %v1966_v39  ;;  %v6000_v10 = vld [vmem:[#allocation3 + $0x88] sm:$0x3]  ;;  %v1858_v27 = vld [vmem:[#allocation5 + $0x2a0] sm:$0xff]  ;;  %v1843_v39 = vld [vmem:[#allocation5 + $0x228] sm:$0xff] }
 0x2e2   : > { %2169 = vmatprep.mubr.f32.mxu1 %v5929_v49  ;;  %4098 = vmatpush3.bf16.msra.mxu1 %v4097_v57  ;;  %v1854_v57 = vld [vmem:[#allocation5 + $0x280] sm:$0xff]  ;;  %v1971_v33 = vrot.slane %v6000_v10, 1  ;;  %v1841_v30 = vld [vmem:[#allocation5 + $0x218] sm:$0xff] }
 0x2e3   : > { %4100 = vmatprep.subr.bf16.mxu1 %v4099_v0  ;;  %v4121_v0 = vpack.c.bf16 %v1821_v13, %v1820_v24  ;;  %v4123_v62 = vpack.c.bf16 %v1855_v6, %v1854_v57  ;;  %v2004_v24 = vrot.slane %v5918_v43, 2  ;;  %v2005_v13 = vrot.slane %v5920_v48, 2 }
 0x2e5   : > { %2170 = vmatmul.mubr.f32.gmra.mrb[24].mxu1 %v5918_v43 }
 0x2e6   : > { %2174 = vmatprep.mubr.f32.mxu1 %v5939_v32  ;;  %4102 = vmatpush3.bf16.msra.mxu1 %v4101_v55  ;;  %v5991_v55 = vld [vmem:[#allocation3 + $0x80] sm:$0xff] }
 0x2e7   : > { %4104 = vmatprep.subr.bf16.mxu1 %v4103_v51  ;;  %v1969_v51 = vrot.slane %v5991_v55, 1 }
 0x2e9   : > { %2175 = vmatmul.mubr.f32.gmra.mrb[26].mxu1 %v5920_v48  ;;  %v6005_v52 = vsel %vm662_vm0, %v1968_v19, %v1969_v51  ;;  %v6015_v44 = vsel %vm662_vm0, %v1969_v51, %v1971_v33  ;;  %v1861_v19 = vld [vmem:[#allocation5 + $0x2b8] sm:$0xff]  ;;  %v2007_v51 = vrot.slane %v5925_v17, 2  ;;  %v1844_v33 = vld [vmem:[#allocation5 + $0x230] sm:$0xff] }
 0x2ea   : > { %2179 = vmatprep.mubr.f32.mxu1 %v5948_v31  ;;  %4106 = vmatpush3.bf16.msra.mxu1 %v4105_v7  ;;  %v6010_v7 = vld [vmem:[#allocation3 + $0x98] sm:$0xff] }
 0x2eb   : > { %4108 = vmatprep.subr.bf16.mxu1 %v4107_v53  ;;  %v1973_v53 = vrot.slane %v6008_v45, 1  ;;  %v1974_v56 = vrot.slane %v6010_v7, 1 }
 0x2ed   : > { %2180 = vmatmul.mubr.f32.gmra.mrb[28].mxu1 %v5932_v38  ;;  %v6024_v50 = vsel %vm662_vm0, %v1973_v53, %v1974_v56  ;;  %v6034_v23 = vsel %vm662_vm0, %v1974_v56, %v1976_v59  ;;  %v1845_v53 = vld [vmem:[#allocation5 + $0x238] sm:$0xff]  ;;  %v1862_v56 = vld [vmem:[#allocation5 + $0x2c0] sm:$0xff]  ;;  %v1863_v59 = vld [vmem:[#allocation5 + $0x2c8] sm:$0xff] }
 0x2ee   : > { %2184 = vmatprep.mubr.f32.mxu1 %v5958_v34  ;;  %4110 = vmatpush3.bf16.msra.mxu1 %v4109_v29  ;;  %v6027_v29 = vld [vmem:[#allocation3 + $0xa8] sm:$0xff]  ;;  %v4137_v17 = vpack.c.bf16 %v1845_v53, %v1844_v33  ;;  %v2017_v33 = vrot.slane %v5962_v26, 2 }
 0x2ef   : > { %4112 = vmatprep.subr.bf16.mxu1 %v4111_v8  ;;  %v1978_v8 = vrot.slane %v6027_v29, 1 }
 0x2f1   : > { %2185 = vmatmul.mubr.f32.gmra.mrb[30].mxu1 %v5934_v4  ;;  %v6043_v28 = vsel %vm662_vm0, %v1978_v8, %v1979_v14  ;;  %v2009_v8 = vrot.slane %v5932_v38, 2 }
 0x2f2   : > { %2189 = vmatprep.mubr.f32.mxu1 %v5967_v42  ;;  %4114 = vmatpush3.bf16.msra.mxu1 %v4113_v40  ;;  %v6049_v40 = vsel %vm662_vm0, %v1979_v14, %v1981_v37  ;;  %v2010_v14 = vrot.slane %v5934_v4, 2  ;;  %v4139_v37 = vpack.c.bf16 %v1863_v59, %v1862_v56  ;;  %v1852_v59 = vld [vmem:[#allocation5 + $0x270] sm:$0xff] }
 0x2f3   : > { %4116 = vmatprep.subr.bf16.mxu1 %v4115_v15  ;;  %v1839_v15 = vld [vmem:[#allocation5 + $0x208] sm:$0xff] }
 0x2f4   : > { %v4125_v2 = vpack.c.bf16 %v1839_v15, %v1838_v35  ;;  %v1846_v35 = vld [vmem:[#allocation5 + $0x240] sm:$0xff]  ;;  %v1847_v15 = vld [vmem:[#allocation5 + $0x248] sm:$0xff] }
 0x2f5   : > { %2190 = vmatmul.mubr.f32.gmra.mrb[32].mxu1 %v5951_v58 }
 0x2f6   : > { %2194 = vmatprep.mubr.f32.mxu1 %v5977_v20  ;;  %4118 = vmatpush3.bf16.msra.mxu1 %v4117_v9  ;;  %v1840_v9 = vld [vmem:[#allocation5 + $0x210] sm:$0xff] }
 0x2f7   : > { %4120 = vmatprep.subr.bf16.mxu1 %v4119_v1  ;;  %v1859_v1 = vld [vmem:[#allocation5 + $0x2a8] sm:$0xff]  ;;  %v4129_v57 = vpack.c.bf16 %v1841_v30, %v1840_v9  ;;  %v4141_v9 = vpack.c.bf16 %v1847_v15, %v1846_v35  ;;  %v4143_v30 = vpack.c.bf16 %v1865_v60, %v1864_v18  ;;  %v2019_v35 = vrot.slane %v5970_v5, 2 }
 0x2f8   : > { %v4131_v6 = vpack.c.bf16 %v1859_v1, %v1858_v27  ;;  %v1848_v27 = vld [vmem:[#allocation5 + $0x250] sm:$0xff]  ;;  %v1849_v1 = vld [vmem:[#allocation5 + $0x258] sm:$0xff]  ;;  %v2020_v15 = vrot.slane %v5972_v63, 2 }
 0x2f9   : > { %2195 = vmatmul.mubr.f32.gmra.mrb[34].mxu1 %v5953_v54 }
 0x2fa   : > { %2199 = vmatprep.mubr.f32.mxu1 %v5986_v11  ;;  %4122 = vmatpush3.bf16.msra.mxu1 %v4121_v0  ;;  %v1842_v0 = vld [vmem:[#allocation5 + $0x220] sm:$0xff]  ;;  %v6101_v60 = vsel %vm733_vm1, %v2019_v35, %v2020_v15  ;;  %v1873_v35 = vld [vmem:[#allocation5 + $0x318] sm:$0xff] }
 0x2fb   : > { %4124 = vmatprep.subr.bf16.mxu1 %v4123_v62  ;;  %v1860_v62 = vld [vmem:[#allocation5 + $0x2b0] sm:$0xff] }
 0x2fd   : > { %2200 = vmatmul.mubr.f32.gmra.mrb[36].mxu1 %v5970_v5 }
 0x2fe   : > { %2204 = vmatprep.mubr.f32.mxu1 %v5996_v12 }
 0x301   : > { %2205 = vmatmul.mubr.f32.gmra.mrb[38].mxu1 %v5972_v63 }
 0x302   : > { %2209 = vmatprep.mubr.f32.mxu1 %v6005_v52 }
 0x305   : > { %2210 = vmatmul.mubr.f32.gmra.mrb[40].mxu1 %v5989_v47 }
 0x306   : > { %2214 = vmatprep.mubr.f32.mxu1 %v6015_v44 }
 0x309   : > { %2215 = vmatmul.mubr.f32.gmra.mrb[42].mxu1 %v5991_v55 }
 0x30a   : > { %2219 = vmatprep.mubr.f32.mxu1 %v6024_v50 }
 0x30d   : > { %2220 = vmatmul.mubr.f32.gmra.mrb[44].mxu1 %v6008_v45 }
 0x30e   : > { %2224 = vmatprep.mubr.f32.mxu1 %v6034_v23 }
 0x311   : > { %2225 = vmatmul.mubr.f32.gmra.mrb[46].mxu1 %v6010_v7 }
 0x312   : > { %2229 = vmatprep.mubr.f32.mxu1 %v6043_v28 }
 0x315   : > { %2230 = vmatmul.mubr.f32.gmra.mrb[48].mxu1 %v6027_v29 }
 0x316   : > { %2234 = vmatprep.mubr.f32.mxu1 %v6049_v40 }
 0x319   : > { %2235 = vmatmul.mubr.f32.gmra.mrb[50].mxu1 %v6029_v22 }
 0x31a   : > { %2304 = vmatprep.mubr.f32.mxu1 %v5918_v43  ;;  %v4133_v43 = vpack.c.bf16 %v1843_v39, %v1842_v0  ;;  %v2015_v0 = vrot.slane %v5953_v54, 2 }
 0x31d   : > { %2305 = vmatmul.mubr.f32.vlgmr.msra.gmra.mrb[52].mxu1 %v5913_v16  ;;  %v6062_v16 = vsel %vm733_vm1, %v2004_v24, %v2005_v13  ;;  %v1866_v24 = vld [vmem:[#allocation5 + $0x2e0] sm:$0xff] }
 0x31e   : > { %4126 = vmatpush3.bf16.msra.mxu1 %v4125_v2  ;;  %2309 = vmatprep.mubr.f32.mxu1 %v5920_v48  ;;  %v4135_v48 = vpack.c.bf16 %v1861_v19, %v1860_v62  ;;  %v6075_v2 = vsel %vm733_vm1, %v2009_v8, %v2010_v14  ;;  %v1850_v62 = vld [vmem:[#allocation5 + $0x260] sm:$0xff]  ;;  %v1851_v19 = vld [vmem:[#allocation5 + $0x268] sm:$0xff]  ;;  %v1853_v8 = vld [vmem:[#allocation5 + $0x278] sm:$0xff] }
 0x31f   : > { %4128 = vmatprep.subr.bf16.mxu1 %v4127_v3  ;;  %v2012_v3 = vrot.slane %v5943_v25, 2  ;;  %v4145_v25 = vpack.c.bf16 %v1849_v1, %v1848_v27  ;;  %v4149_v53 = vpack.c.bf16 %v1851_v19, %v1850_v62  ;;  %v4153_v26 = vpack.c.bf16 %v1853_v8, %v1852_v59  ;;  %v6137_v19 = vld [vmem:[#allocation3 + $0xc0] sm:$0xff]  ;;  %v1889_v8 = vld [vmem:[#allocation5 + $0x398] sm:$0xff] }
 0x320   : > { %v2025_v27 = vrot.slane %v5991_v55, 2  ;;  %v2035_v62 = vrot.slane %v6029_v22, 2  ;;  %v1888_v59 = vld [vmem:[#allocation5 + $0x390] sm:$0xff] }
 0x321   : > { %2310 = vmatmul.mubr.f32.gmra.mrb[54].mxu1 %v5916_v46  ;;  %v6068_v46 = vsel %vm733_vm1, %v2005_v13, %v2007_v51  ;;  %v1867_v13 = vld [vmem:[#allocation5 + $0x2e8] sm:$0xff]  ;;  %v1868_v51 = vld [vmem:[#allocation5 + $0x2f0] sm:$0xff] }
 0x322   : > { %2314 = vmatprep.mubr.f32.mxu1 %v5932_v38  ;;  %4130 = vmatpush3.bf16.msra.mxu1 %v4129_v57  ;;  %v6081_v57 = vsel %vm733_vm1, %v2010_v14, %v2012_v3  ;;  %v4147_v39 = vpack.c.bf16 %v1867_v13, %v1866_v24  ;;  %v1886_v14 = vld [vmem:[#allocation5 + $0x380] sm:$0xff]  ;;  %v2022_v3 = vrot.slane %v5981_v36, 2  ;;  %v2027_v36 = vrot.slane %v6000_v10, 2 }
 0x323   : > { %4132 = vmatprep.subr.bf16.mxu1 %v4131_v6  ;;  %v2014_v6 = vrot.slane %v5951_v58, 2  ;;  %v2029_v13 = vrot.slane %v6008_v45, 2  ;;  %v2032_v10 = vrot.slane %v6019_v41, 2  ;;  %v2037_v41 = vrot.slane %v6038_v21, 2  ;;  %v1872_v21 = vld [vmem:[#allocation5 + $0x310] sm:$0xff] }
 0x324   : > { %v6120_v24 = vsel %vm733_vm1, %v2025_v27, %v2027_v36  ;;  %v1892_v36 = vld [vmem:[#allocation5 + $0x3b0] sm:$0xff] }
 0x325   : > { %2315 = vmatmul.mubr.f32.gmra.mrb[56].mxu1 %v6062_v16 }
 0x326   : > { %2319 = vmatprep.mubr.f32.mxu1 %v5934_v4  ;;  %4134 = vmatpush3.bf16.msra.mxu1 %v4133_v43  ;;  %v1869_v43 = vld [vmem:[#allocation5 + $0x2f8] sm:$0xff] }
 0x327   : > { %4136 = vmatprep.subr.bf16.mxu1 %v4135_v48  ;;  %v6088_v48 = vsel %vm733_vm1, %v2014_v6, %v2015_v0  ;;  %v4151_v56 = vpack.c.bf16 %v1869_v43, %v1868_v51  ;;  %v2030_v6 = vrot.slane %v6010_v7, 2  ;;  %v6145_v43 = vld [vmem:[#allocation3 + $0xc8] sm:$0xff] }
 0x329   : > { %2320 = vmatmul.mubr.f32.gmra.mrb[58].mxu1 %v6068_v46 }
 0x32a   : > { %2324 = vmatprep.mubr.f32.mxu1 %v5951_v58  ;;  %4138 = vmatpush3.bf16.msra.mxu1 %v4137_v17  ;;  %v1887_v17 = vld [vmem:[#allocation5 + $0x388] sm:$0xff] }
 0x32b   : > { %4140 = vmatprep.subr.bf16.mxu1 %v4139_v37  ;;  %v6094_v37 = vsel %vm733_vm1, %v2015_v0, %v2017_v33  ;;  %v4155_v18 = vpack.c.bf16 %v1887_v17, %v1886_v14  ;;  %v6127_v0 = vsel %vm733_vm1, %v2029_v13, %v2030_v6  ;;  %v6150_v33 = vsel %vm733_vm1, %v2035_v62, %v2037_v41  ;;  %v1893_v13 = vld [vmem:[#allocation5 + $0x3b8] sm:$0xff] }
 0x32c   : > { %v4159_v17 = vpack.c.bf16 %v1889_v8, %v1888_v59  ;;  %v1897_v59 = vld [vmem:[#allocation5 + $0x3d8] sm:$0xff] }
 0x32d   : > { %2325 = vmatmul.mubr.f32.gmra.mrb[60].mxu1 %v6075_v2 }
 0x32e   : > { %2329 = vmatprep.mubr.f32.mxu1 %v5953_v54  ;;  %4142 = vmatpush3.bf16.msra.mxu1 %v4141_v9  ;;  %v6107_v9 = vsel %vm733_vm1, %v2020_v15, %v2022_v3  ;;  %v1890_v15 = vld [vmem:[#allocation5 + $0x3a0] sm:$0xff] }
 0x32f   : > { %4144 = vmatprep.subr.bf16.mxu1 %v4143_v30  ;;  %v2024_v30 = vrot.slane %v5989_v47, 2 }
 0x331   : > { %2330 = vmatmul.mubr.f32.gmra.mrb[62].mxu1 %v6081_v57  ;;  %v6114_v1 = vsel %vm733_vm1, %v2024_v30, %v2025_v27  ;;  %v1874_v30 = vld [vmem:[#allocation5 + $0x320] sm:$0xff]  ;;  %v1875_v27 = vld [vmem:[#allocation5 + $0x328] sm:$0xff] }
 0x332   : > { %2334 = vmatprep.mubr.f32.mxu1 %v5970_v5  ;;  %4146 = vmatpush3.bf16.msra.mxu1 %v4145_v25  ;;  %v6133_v25 = vsel %vm733_vm1, %v2030_v6, %v2032_v10  ;;  %v4167_v6 = vpack.c.bf16 %v1893_v13, %v1892_v36  ;;  %v1876_v10 = vld [vmem:[#allocation5 + $0x330] sm:$0xff]  ;;  %v1901_v36 = vld [vmem:[#allocation5 + $0x3f8] sm:$0xff] }
 0x333   : > { %4148 = vmatprep.subr.bf16.mxu1 %v4147_v39  ;;  %v2034_v39 = vrot.slane %v6027_v29, 2 }
 0x335   : > { %2335 = vmatmul.mubr.f32.gmra.mrb[64].mxu1 %v6088_v48  ;;  %v6142_v51 = vsel %vm733_vm1, %v2034_v39, %v2035_v62  ;;  %v1894_v39 = vld [vmem:[#allocation5 + $0x3c0] sm:$0xff]  ;;  %v1895_v62 = vld [vmem:[#allocation5 + $0x3c8] sm:$0xff] }
 0x336   : > { %2339 = vmatprep.mubr.f32.mxu1 %v5972_v63  ;;  %4150 = vmatpush3.bf16.msra.mxu1 %v4149_v53  ;;  %v1870_v53 = vld [vmem:[#allocation5 + $0x300] sm:$0xff]  ;;  %v4171_v41 = vpack.c.bf16 %v1895_v62, %v1894_v39  ;;  %v1903_v39 = vld [vmem:[#allocation5 + $0x408] sm:$0xff] }
 0x337   : > { %4152 = vmatprep.subr.bf16.mxu1 %v4151_v56  ;;  %v1871_v56 = vld [vmem:[#allocation5 + $0x308] sm:$0xff] }
 0x338   : > { %v4157_v14 = vpack.c.bf16 %v1871_v56, %v1870_v53  ;;  %v1878_v53 = vld [vmem:[#allocation5 + $0x340] sm:$0xff]  ;;  %v1896_v56 = vld [vmem:[#allocation5 + $0x3d0] sm:$0xff] }
 0x339   : > { %2340 = vmatmul.mubr.f32.gmra.mrb[66].mxu1 %v6094_v37 }
 0x33a   : > { %2344 = vmatprep.mubr.f32.mxu1 %v5989_v47  ;;  %4154 = vmatpush3.bf16.msra.mxu1 %v4153_v26  ;;  %v1891_v26 = vld [vmem:[#allocation5 + $0x3a8] sm:$0xff] }
 0x33b   : > { %4156 = vmatprep.subr.bf16.mxu1 %v4155_v18  ;;  %v4161_v18 = vpack.c.bf16 %v1873_v35, %v1872_v21  ;;  %v4163_v3 = vpack.c.bf16 %v1891_v26, %v1890_v15  ;;  %v1881_v21 = vld [vmem:[#allocation5 + $0x358] sm:$0xff]  ;;  %v1898_v35 = vld [vmem:[#allocation5 + $0x3e0] sm:$0xff]  ;;  %v1899_v15 = vld [vmem:[#allocation5 + $0x3e8] sm:$0xff] }
 0x33d   : > { %2345 = vmatmul.mubr.f32.gmra.mrb[68].mxu1 %v6101_v60 }
 0x33e   : > { %2349 = vmatprep.mubr.f32.mxu1 %v5991_v55 }
 0x341   : > { %2350 = vmatmul.mubr.f32.gmra.mrb[70].mxu1 %v6107_v9 }
 0x342   : > { %2354 = vmatprep.mubr.f32.mxu1 %v6008_v45 }
 0x345   : > { %2355 = vmatmul.mubr.f32.gmra.mrb[72].mxu1 %v6114_v1 }
 0x346   : > { %2359 = vmatprep.mubr.f32.mxu1 %v6010_v7 }
 0x349   : > { %2360 = vmatmul.mubr.f32.gmra.mrb[74].mxu1 %v6120_v24 }
 0x34a   : > { %2364 = vmatprep.mubr.f32.mxu1 %v6027_v29 }
 0x34d   : > { %2365 = vmatmul.mubr.f32.gmra.mrb[76].mxu1 %v6127_v0 }
 0x34e   : > { %2369 = vmatprep.mubr.f32.mxu1 %v6029_v22 }
 0x351   : > { %2370 = vmatmul.mubr.f32.gmra.mrb[78].mxu1 %v6133_v25 }
 0x352   : > { %2374 = vmatprep.mubr.f32.mxu1 %v6137_v19 }
 0x355   : > { %2375 = vmatmul.mubr.f32.gmra.mrb[80].mxu1 %v6142_v51 }
 0x356   : > { %2379 = vmatprep.mubr.f32.mxu1 %v6145_v43 }
 0x359   : > { %2380 = vmatmul.mubr.f32.gmra.mrb[82].mxu1 %v6150_v33 }
 0x35a   : > { %2449 = vmatprep.mubr.f32.mxu1 %v6062_v16  ;;  %v4165_v16 = vpack.c.bf16 %v1875_v27, %v1874_v30  ;;  %v1883_v30 = vld [vmem:[#allocation5 + $0x368] sm:$0xff]  ;;  %v1900_v27 = vld [vmem:[#allocation5 + $0x3f0] sm:$0xff] }
 0x35d   : > { %2450 = vmatmul.mubr.f32.vlgmr.msra.gmra.mrb[84].mxu1 %v5929_v49  ;;  %v1877_v49 = vld [vmem:[#allocation5 + $0x338] sm:$0xff] }
 0x35e   : > { %4158 = vmatpush3.bf16.msra.mxu1 %v4157_v14  ;;  %2454 = vmatprep.mubr.f32.mxu1 %v6068_v46  ;;  %v4169_v46 = vpack.c.bf16 %v1877_v49, %v1876_v10  ;;  %v4175_v14 = vpack.c.bf16 %v1897_v59, %v1896_v56  ;;  %v1885_v10 = vld [vmem:[#allocation5 + $0x378] sm:$0xff]  ;;  %v1902_v49 = vld [vmem:[#allocation5 + $0x400] sm:$0xff]  ;;  %v2058_v56 = vrot.slane %v6137_v19, 1  ;;  %v2059_v59 = vrot.slane %v6145_v43, 1 }
 0x35f   : > { %4160 = vmatprep.subr.bf16.mxu1 %v4159_v17  ;;  %v1880_v17 = vld [vmem:[#allocation5 + $0x350] sm:$0xff] }
 0x360   : > { %v4177_v26 = vpack.c.bf16 %v1881_v21, %v1880_v17  ;;  %v6190_v17 = vsel %vm662_vm0, %v2058_v56, %v2059_v59 }
 0x361   : > { %2455 = vmatmul.mubr.f32.gmra.mrb[86].mxu1 %v5939_v32  ;;  %v1879_v32 = vld [vmem:[#allocation5 + $0x348] sm:$0xff] }
 0x362   : > { %2459 = vmatprep.mubr.f32.mxu1 %v6075_v2  ;;  %4162 = vmatpush3.bf16.msra.mxu1 %v4161_v18  ;;  %v4173_v8 = vpack.c.bf16 %v1879_v32, %v1878_v53  ;;  %v4179_v18 = vpack.c.bf16 %v1899_v15, %v1898_v35  ;;  %v2066_v53 = vrot.slane %v6145_v43, 2  ;;  %v1770_v32 = vld [vmem:[#allocation3 + $0xd0] sm:$0x3] }
 0x363   : > { %4164 = vmatprep.subr.bf16.mxu1 %v4163_v3  ;;  %v1882_v3 = vld [vmem:[#allocation5 + $0x360] sm:$0xff]  ;;  %v2061_v21 = vrot.slane %v1770_v32, 1 }
 0x364   : > { %v4181_v13 = vpack.c.bf16 %v1883_v30, %v1882_v3  ;;  %v1906_v30 = vld [vmem:[#allocation5 + $0x420] sm:$0xff] }
 0x365   : > { %2460 = vmatmul.mubr.f32.gmra.mrb[88].mxu1 %v5948_v31  ;;  %v6198_v15 = vsel %vm662_vm0, %v2059_v59, %v2061_v21 }
 0x366   : > { %2464 = vmatprep.mubr.f32.mxu1 %v6081_v57  ;;  %4166 = vmatpush3.bf16.msra.mxu1 %v4165_v16  ;;  %v4183_v16 = vpack.c.bf16 %v1901_v36, %v1900_v27  ;;  %v1907_v27 = vld [vmem:[#allocation5 + $0x428] sm:$0xff] }
 0x367   : > { %4168 = vmatprep.subr.bf16.mxu1 %v4167_v6  ;;  %v1884_v6 = vld [vmem:[#allocation5 + $0x370] sm:$0xff]  ;;  %v4195_v36 = vpack.c.bf16 %v1907_v27, %v1906_v30  ;;  %v6246_v27 = vld [vmem:[#allocation3 + $0xe8] sm:$0x3] }
 0x368   : > { %v4185_v62 = vpack.c.bf16 %v1885_v10, %v1884_v6  ;;  %v1911_v10 = vld [vmem:[#allocation5 + $0x448] sm:$0xff] }
 0x369   : > { %2465 = vmatmul.mubr.f32.gmra.mrb[90].mxu1 %v5958_v34 }
 0x36a   : > { %2469 = vmatprep.mubr.f32.mxu1 %v6088_v48  ;;  %4170 = vmatpush3.bf16.msra.mxu1 %v4169_v46  ;;  %v4187_v46 = vpack.c.bf16 %v1903_v39, %v1902_v49  ;;  %v1913_v49 = vld [vmem:[#allocation5 + $0x458] sm:$0xff]  ;;  %v1915_v39 = vld [vmem:[#allocation5 + $0x468] sm:$0xff] }
 0x36b   : > { %4172 = vmatprep.subr.bf16.mxu1 %v4171_v41  ;;  %v2065_v41 = vrot.slane %v6137_v19, 2 }
 0x36d   : > { %2470 = vmatmul.mubr.f32.gmra.mrb[92].mxu1 %v5967_v42 }
 0x36e   : > { %2474 = vmatprep.mubr.f32.mxu1 %v6094_v37  ;;  %4174 = vmatpush3.bf16.msra.mxu1 %v4173_v8  ;;  %v6185_v8 = vsel %vm733_vm1, %v2065_v41, %v2066_v53 }
 0x36f   : > { %4176 = vmatprep.subr.bf16.mxu1 %v4175_v14  ;;  %v2068_v14 = vrot.slane %v1770_v32, 2 }
 0x371   : > { %2475 = vmatmul.mubr.f32.gmra.mrb[94].mxu1 %v5977_v20  ;;  %v6193_v35 = vsel %vm733_vm1, %v2066_v53, %v2068_v14 }
 0x372   : > { %2479 = vmatprep.mubr.f32.mxu1 %v6101_v60  ;;  %4178 = vmatpush3.bf16.msra.mxu1 %v4177_v26  ;;  %v1904_v26 = vld [vmem:[#allocation5 + $0x410] sm:$0xff] }
 0x373   : > { %4180 = vmatprep.subr.bf16.mxu1 %v4179_v18  ;;  %v1905_v18 = vld [vmem:[#allocation5 + $0x418] sm:$0xff] }
 0x374   : > { %v4191_v3 = vpack.c.bf16 %v1905_v18, %v1904_v26  ;;  %v6236_v18 = vld [vmem:[#allocation3 + $0xd8] sm:$0xff] }
 0x375   : > { %2480 = vmatmul.mubr.f32.gmra.mrb[96].mxu1 %v5986_v11 }
 0x376   : > { %2484 = vmatprep.mubr.f32.mxu1 %v6107_v9  ;;  %4182 = vmatpush3.bf16.msra.mxu1 %v4181_v13  ;;  %v1908_v13 = vld [vmem:[#allocation5 + $0x430] sm:$0xff] }
 0x377   : > { %4184 = vmatprep.subr.bf16.mxu1 %v4183_v16  ;;  %v1909_v16 = vld [vmem:[#allocation5 + $0x438] sm:$0xff] }
 0x378   : > { %v4199_v6 = vpack.c.bf16 %v1909_v16, %v1908_v13  ;;  %v2078_v13 = vrot.slane %v6246_v27, 1 }
 0x379   : > { %2485 = vmatmul.mubr.f32.gmra.mrb[98].mxu1 %v5996_v12 }
 0x37a   : > { %2489 = vmatprep.mubr.f32.mxu1 %v6114_v1  ;;  %4186 = vmatpush3.bf16.msra.mxu1 %v4185_v62  ;;  %v1916_v62 = vld [vmem:[#allocation5 + $0x470] sm:$0xff] }
 0x37b   : > { %4188 = vmatprep.subr.bf16.mxu1 %v4187_v46 }
 0x37d   : > { %2490 = vmatmul.mubr.f32.gmra.mrb[100].mxu1 %v6005_v52 }
 0x37e   : > { %2494 = vmatprep.mubr.f32.mxu1 %v6120_v24 }
 0x381   : > { %2495 = vmatmul.mubr.f32.gmra.mrb[102].mxu1 %v6015_v44 }
 0x382   : > { %2499 = vmatprep.mubr.f32.mxu1 %v6127_v0 }
 0x385   : > { %2500 = vmatmul.mubr.f32.gmra.mrb[104].mxu1 %v6024_v50 }
 0x386   : > { %2504 = vmatprep.mubr.f32.mxu1 %v6133_v25 }
 0x389   : > { %2505 = vmatmul.mubr.f32.gmra.mrb[106].mxu1 %v6034_v23 }
 0x38a   : > { %2509 = vmatprep.mubr.f32.mxu1 %v6142_v51 }
 0x38d   : > { %2510 = vmatmul.mubr.f32.gmra.mrb[108].mxu1 %v6043_v28 }
 0x38e   : > { %2514 = vmatprep.mubr.f32.mxu1 %v6150_v33 }
 0x391   : > { %2515 = vmatmul.mubr.f32.gmra.mrb[110].mxu1 %v6049_v40 }
 0x392   : > { %2519 = vmatprep.mubr.f32.mxu1 %v6185_v8 }
 0x395   : > { %2520 = vmatmul.mubr.f32.gmra.mrb[112].mxu1 %v6190_v17 }
 0x396   : > { %2524 = vmatprep.mubr.f32.mxu1 %v6193_v35 }
 0x399   : > { %2525 = vmatmul.mubr.f32.gmra.mrb[114].mxu1 %v6198_v15 }
 0x39a   : > { %2594 = vmatprep.mubr.f32.mxu1 %v5948_v31  ;;  %v1910_v31 = vld [vmem:[#allocation5 + $0x440] sm:$0xff] }
 0x39d   : > { %2595 = vmatmul.mubr.f32.vlgmr.msra.gmra.mrb[116].mxu1 %v5932_v38  ;;  %v4203_v38 = vpack.c.bf16 %v1911_v10, %v1910_v31 }
 0x39e   : > { %4190 = vmatpush3.bf16.msra.mxu1 %v4187_v46  ;;  %2599 = vmatprep.mubr.f32.mxu1 %v5958_v34  ;;  %v1912_v34 = vld [vmem:[#allocation5 + $0x450] sm:$0xff]  ;;  %v1917_v46 = vld [vmem:[#allocation5 + $0x478] sm:$0xff] }
 0x39f   : > { %4192 = vmatprep.subr.bf16.mxu1 %v4191_v3 }
 0x3a1   : > { %2600 = vmatmul.mubr.f32.gmra.mrb[118].mxu1 %v5934_v4  ;;  %v4207_v4 = vpack.c.bf16 %v1913_v49, %v1912_v34 }
 0x3a2   : > { %2604 = vmatprep.mubr.f32.mxu1 %v5967_v42  ;;  %4194 = vmatpush3.bf16.msra.mxu1 %v4191_v3  ;;  %v1914_v42 = vld [vmem:[#allocation5 + $0x460] sm:$0xff] }
 0x3a3   : > { %4196 = vmatprep.subr.bf16.mxu1 %v4195_v36 }
 0x3a5   : > { %2605 = vmatmul.mubr.f32.gmra.mrb[120].mxu1 %v5951_v58  ;;  %v4211_v58 = vpack.c.bf16 %v1915_v39, %v1914_v42 }
 0x3a6   : > { %2609 = vmatprep.mubr.f32.mxu1 %v5977_v20  ;;  %4198 = vmatpush3.bf16.msra.mxu1 %v4195_v36 }
 0x3a7   : > { %4200 = vmatprep.subr.bf16.mxu1 %v4199_v6 }
 0x3a9   : > { %2610 = vmatmul.mubr.f32.gmra.mrb[122].mxu1 %v5953_v54 }
 0x3aa   : > { %2614 = vmatprep.mubr.f32.mxu1 %v5986_v11  ;;  %4202 = vmatpush3.bf16.msra.mxu1 %v4199_v6  ;;  %v4215_v11 = vpack.c.bf16 %v1917_v46, %v1916_v62 }
 0x3ab   : > { %4204 = vmatprep.subr.bf16.mxu1 %v4203_v38 }
 0x3ad   : > { %2615 = vmatmul.mubr.f32.gmra.mrb[124].mxu1 %v5970_v5 }
 0x3ae   : > { %2619 = vmatprep.mubr.f32.mxu1 %v5996_v12  ;;  %4206 = vmatpush3.bf16.msra.mxu1 %v4203_v38 }
 0x3af   : > { %4208 = vmatprep.subr.bf16.mxu1 %v4207_v4 }
 0x3b0   : > { %v3397_v20 = vpop.f32.mrb[20].mxu1 }
 0x3b1   : > { %v3398_v41 = vpop.f32.mrb[21].mxu1  ;;  %2620 = vmatmul.mubr.f32.gmra.mrb[126].mxu1 %v5972_v63 }
 0x3b2   : > { %v6213_v54 = vadd.f32 %v3398_v41, %v3397_v20  ;;  %2624 = vmatprep.mubr.f32.mxu1 %v6005_v52  ;;  %4210 = vmatpush3.bf16.msra.mxu1 %v4207_v4 }
 0x3b3   : > { %4212 = vmatprep.subr.bf16.mxu1 %v4211_v58 }
 0x3b4   : > { %v3400_v53 = vpop.f32.mrb[22].mxu1 }
 0x3b5   : > { %v3401_v5 = vpop.f32.mrb[23].mxu1  ;;  %2625 = vmatmul.mubr.f32.gmra.mrb[128].mxu1 %v5989_v47 }
 0x3b6   : > { %v6217_v12 = vadd.f32 %v3401_v5, %v3400_v53  ;;  %2629 = vmatprep.mubr.f32.mxu1 %v6015_v44  ;;  %4214 = vmatpush3.bf16.msra.mxu1 %v4211_v58 }
 0x3b7   : > { %4216 = vmatprep.subr.bf16.mxu1 %v4215_v11 }
 0x3b8   : > { %v3403_v32 = vpop.f32.mrb[24].mxu1 }
 0x3b9   : > { %v3404_v56 = vpop.f32.mrb[25].mxu1  ;;  %2630 = vmatmul.mubr.f32.gmra.mrb[130].mxu1 %v5991_v55 }
 0x3ba   : > { %v6221_v63 = vadd.f32 %v3404_v56, %v3403_v32  ;;  %2634 = vmatprep.mubr.f32.mxu1 %v6024_v50  ;;  %4218 = vmatpush3.bf16.msra.mxu1 %v4215_v11 }
 0x3bc   : > { %v3406_v52 = vpop.f32.mrb[26].mxu1 }
 0x3bd   : > { %v3407_v59 = vpop.f32.mrb[27].mxu1  ;;  %2635 = vmatmul.mubr.f32.gmra.mrb[132].mxu1 %v6008_v45 }
 0x3be   : > { %v6225_v47 = vadd.f32 %v3407_v59, %v3406_v52  ;;  %2639 = vmatprep.mubr.f32.mxu1 %v6034_v23  ;;  %v6238_v23 = vld [vmem:[#allocation3 + $0xe0] sm:$0xff] }
 0x3c0   : > { %v3409_v44 = vpop.f32.mrb[28].mxu1 }
 0x3c1   : > { %v3410_v14 = vpop.f32.mrb[29].mxu1  ;;  %2640 = vmatmul.mubr.f32.gmra.mrb[134].mxu1 %v6010_v7 }
 0x3c2   : > { %v6229_v21 = vadd.f32 %v3410_v14, %v3409_v44  ;;  %2644 = vmatprep.mubr.f32.mxu1 %v6043_v28  ;;  %v2075_v28 = vrot.slane %v6236_v18, 1 }
 0x3c4   : > { %v3412_v55 = vpop.f32.mrb[30].mxu1 }
 0x3c5   : > { %v3413_v26 = vpop.f32.mrb[31].mxu1  ;;  %2645 = vmatmul.mubr.f32.gmra.mrb[136].mxu1 %v6027_v29  ;;  %v2076_v29 = vrot.slane %v6238_v23, 1 }
 0x3c6   : > { %v6233_v50 = vadd.f32 %v3413_v26, %v3412_v55  ;;  %2649 = vmatprep.mubr.f32.mxu1 %v6049_v40 }
 0x3c7   : > { %v2079_v31 = vsel %vm662_vm0, %v2076_v29, %v2078_v13 }
 0x3c8   : > { %v3415_v45 = vpop.f32.mrb[32].mxu1 }
 0x3c9   : > { %v3416_v3 = vpop.f32.mrb[33].mxu1  ;;  %2650 = vmatmul.mubr.f32.gmra.mrb[138].mxu1 %v6029_v22  ;;  %v2077_v22 = vsel %vm662_vm0, %v2075_v28, %v2076_v29 }
 0x3ca   : > { %v6241_v7 = vadd.f32 %v3416_v3, %v3415_v45  ;;  %2654 = vmatprep.mubr.f32.mxu1 %v6190_v17 }
 0x3cc   : > { %v3418_v30 = vpop.f32.mrb[34].mxu1 }
 0x3cd   : > { %v3419_v40 = vpop.f32.mrb[35].mxu1  ;;  %2655 = vmatmul.mubr.f32.gmra.mrb[140].mxu1 %v6137_v19 }
 0x3ce   : > { %v6249_v36 = vadd.f32 %v3419_v40, %v3418_v30  ;;  %2659 = vmatprep.mubr.f32.mxu1 %v6198_v15 }
 0x3d0   : > { %v3421_v16 = vpop.f32.mrb[36].mxu1 }
 0x3d1   : > { %v3422_v17 = vpop.f32.mrb[37].mxu1  ;;  %2660 = vmatmul.mubr.f32.gmra.mrb[142].mxu1 %v6145_v43 }
 0x3d2   : > { %v6255_v6 = vadd.f32 %v3422_v17, %v3421_v16  ;;  %2664 = vmatprep.mubr.f32.mxu1 %v2077_v22 }
 0x3d4   : > { %v3424_v10 = vpop.f32.mrb[38].mxu1 }
 0x3d5   : > { %v3425_v38 = vpop.f32.mrb[39].mxu1  ;;  %2665 = vmatmul.mubr.f32.gmra.mrb[144].mxu1 %v6236_v18 }
 0x3d6   : > { %v6259_v19 = vadd.f32 %v3425_v38, %v3424_v10  ;;  %2669 = vmatprep.mubr.f32.mxu1 %v2079_v31 }
 0x3d8   : > { %v3427_v15 = vpop.f32.mrb[40].mxu1 }
 0x3d9   : > { %v3428_v34 = vpop.f32.mrb[41].mxu1  ;;  %2670 = vmatmul.mubr.f32.gmra.mrb[146].mxu1 %v6238_v23 }
 0x3da   : > { %v6262_v49 = vadd.f32 %v3428_v34, %v3427_v15  ;;  %3811 = vmatprep.mubr.f32.mxu1 %v6075_v2 }
 0x3dc   : > { %v3430_v43 = vpop.f32.mrb[42].mxu1 }
 0x3dd   : > { %v3431_v4 = vpop.f32.mrb[43].mxu1  ;;  %3812 = vmatmul.mubr.f32.vlgmr.msra.gmra.mrb[148].mxu1 %v6081_v57 }
 0x3de   : > { %v6266_v42 = vadd.f32 %v3431_v4, %v3430_v43  ;;  %3814 = vmatprep.mubr.f32.mxu1 %v6088_v48 }
 0x3e0   : > { %v3433_v39 = vpop.f32.mrb[44].mxu1 }
 0x3e1   : > { %v3434_v58 = vpop.f32.mrb[45].mxu1  ;;  %3815 = vmatmul.mubr.f32.gmra.mrb[150].mxu1 %v6094_v37 }
 0x3e2   : > { %v6270_v20 = vadd.f32 %v3434_v58, %v3433_v39  ;;  %3817 = vmatprep.mubr.f32.mxu1 %v6101_v60 }
 0x3e4   : > { %v3436_v62 = vpop.f32.mrb[46].mxu1 }
 0x3e5   : > { %v3437_v46 = vpop.f32.mrb[47].mxu1  ;;  %3818 = vmatmul.mubr.f32.gmra.mrb[152].mxu1 %v6107_v9  ;;  %v6288_v9 = vld [vmem:[%s6742_s4] ss:$0 sm:$0xff] }
 0x3e6   : > { %v6274_v2 = vadd.f32 %v3437_v46, %v3436_v62  ;;  %3820 = vmatprep.mubr.f32.mxu1 %v6114_v1  ;;  %v2082_v1 = vrot.slane %v6236_v18, 2  ;;  %v2167_v44 = vadd.f32 %v6217_v12, %v6288_v9  ;;  %v2172_v26 = vadd.f32 %v6221_v63, %v6288_v9 }
 0x3e7   : > { %v2177_v12 = vadd.f32 %v6225_v47, %v6288_v9  ;;  %v2187_v16 = vadd.f32 %v6233_v50, %v6288_v9  ;;  %v2192_v38 = vadd.f32 %v6241_v7, %v6288_v9  ;;  %v2197_v4 = vadd.f32 %v6249_v36, %v6288_v9 }
 0x3e8   : > { %v3439_v57 = vpop.f32.mrb[48].mxu1  ;;  %v2202_v46 = vadd.f32 %v6255_v6, %v6288_v9 }
 0x3e9   : > { %v3440_v41 = vpop.f32.mrb[49].mxu1  ;;  %3821 = vmatmul.mubr.f32.gmra.mrb[154].mxu1 %v6120_v24  ;;  %v2083_v24 = vrot.slane %v6238_v23, 2 }
 0x3ea   : > { %v6278_v48 = vadd.f32 %v3440_v41, %v3439_v57  ;;  %3823 = vmatprep.mubr.f32.mxu1 %v6127_v0  ;;  %v2162_v0 = vadd.f32 %v6213_v54, %v6288_v9 }
 0x3eb   : > { %v2084_v32 = vsel %vm733_vm1, %v2082_v1, %v2083_v24 }
 0x3ec   : > { %v3442_v37 = vpop.f32.mrb[50].mxu1 }
 0x3ed   : > { %v3443_v11 = vpop.f32.mrb[51].mxu1  ;;  %3824 = vmatmul.mubr.f32.gmra.mrb[156].mxu1 %v6133_v25 }
 0x3ee   : > { %v6282_v60 = vadd.f32 %v3443_v11, %v3442_v37  ;;  %3826 = vmatprep.mubr.f32.mxu1 %v6142_v51  ;;  %v2085_v51 = vrot.slane %v6246_v27, 2  ;;  %v2182_v27 = vadd.f32 %v6229_v21, %v6288_v9  ;;  %v2207_v11 = vadd.f32 %v6259_v19, %v6288_v9 }
 0x3f0   : > { %v3477_v53 = vpop.f32.mrb[52].mxu1  ;;  %v2086_v54 = vsel %vm733_vm1, %v2083_v24, %v2085_v51 }
 0x3f1   : > { %v3478_v5 = vpop.f32.mrb[53].mxu1  ;;  %3827 = vmatmul.mubr.f32.gmra.mrb[158].mxu1 %v6150_v33 }
 0x3f2   : > { %v3479_v25 = vadd.f32 %v3478_v5, %v3477_v53  ;;  %3829 = vmatprep.mubr.f32.mxu1 %v6185_v8  ;;  %v2212_v5 = vadd.f32 %v6262_v49, %v6288_v9 }
 0x3f4   : > { %v6298_v56 = vadd.f32 %v3479_v25, %v2162_v0  ;;  %v3480_v52 = vpop.f32.mrb[54].mxu1 }
 0x3f5   : > { %v3481_v59 = vpop.f32.mrb[55].mxu1  ;;  %3830 = vmatmul.mubr.f32.gmra.mrb[160].mxu1 %v6193_v35 }
 0x3f6   : > { %v3482_v33 = vadd.f32 %v3481_v59, %v3480_v52  ;;  %3832 = vmatprep.mubr.f32.mxu1 %v2084_v32  ;;  %v2217_v32 = vadd.f32 %v6266_v42, %v6288_v9 }
 0x3f8   : > { %v6304_v14 = vadd.f32 %v3482_v33, %v2167_v44  ;;  %v3483_v8 = vpop.f32.mrb[56].mxu1  ;;  %v2222_v33 = vadd.f32 %v6270_v20, %v6288_v9 }
 0x3f9   : > { %v3484_v55 = vpop.f32.mrb[57].mxu1  ;;  %3833 = vmatmul.mubr.f32.gmra.mrb[162].mxu1 %v2086_v54 }
 0x3fa   : > { %v3485_v45 = vadd.f32 %v3484_v55, %v3483_v8 }
 0x3fc   : > { %v6308_v18 = vadd.f32 %v3485_v45, %v2172_v26  ;;  %v3486_v23 = vpop.f32.mrb[58].mxu1  ;;  %v2227_v26 = vadd.f32 %v6274_v2, %v6288_v9 }
 0x3fd   : > { %v3487_v35 = vpop.f32.mrb[59].mxu1 }
 0x3fe   : > { %v3488_v3 = vadd.f32 %v3487_v35, %v3486_v23 }
 0x400   : > { %v6312_v28 = vadd.f32 %v3488_v3, %v2177_v12  ;;  %v3489_v29 = vpop.f32.mrb[60].mxu1  ;;  %v2232_v12 = vadd.f32 %v6278_v48, %v6288_v9 }
 0x401   : > { %v3490_v30 = vpop.f32.mrb[61].mxu1 }
 0x402   : > { %v3491_v40 = vadd.f32 %v3490_v30, %v3489_v29 }
 0x404   : > { %v6316_v22 = vadd.f32 %v3491_v40, %v2182_v27  ;;  %v3492_v63 = vpop.f32.mrb[62].mxu1  ;;  %v2237_v27 = vadd.f32 %v6282_v60, %v6288_v9 }
 0x405   : > { %v3493_v13 = vpop.f32.mrb[63].mxu1 }
 0x406   : > { %v3494_v17 = vadd.f32 %v3493_v13, %v3492_v63 }
 0x408   : > { %v6320_v31 = vadd.f32 %v3494_v17, %v2187_v16  ;;  %v3495_v47 = vpop.f32.mrb[64].mxu1 }
 0x409   : > { %v3496_v10 = vpop.f32.mrb[65].mxu1 }
 0x40a   : > { %v3497_v15 = vadd.f32 %v3496_v10, %v3495_v47 }
 0x40c   : > { %v6324_v34 = vadd.f32 %v3497_v15, %v2192_v38  ;;  %v3498_v21 = vpop.f32.mrb[66].mxu1 }
 0x40d   : > { %v3499_v43 = vpop.f32.mrb[67].mxu1 }
 0x40e   : > { %v3500_v39 = vadd.f32 %v3499_v43, %v3498_v21 }
 0x410   : > { %v6328_v58 = vadd.f32 %v3500_v39, %v2197_v4  ;;  %v3501_v50 = vpop.f32.mrb[68].mxu1 }
 0x411   : > { %v3502_v62 = vpop.f32.mrb[69].mxu1 }
 0x412   : > { %v3503_v57 = vadd.f32 %v3502_v62, %v3501_v50 }
 0x414   : > { %v6332_v41 = vadd.f32 %v3503_v57, %v2202_v46  ;;  %v3504_v7 = vpop.f32.mrb[70].mxu1 }
 0x415   : > { %v3505_v37 = vpop.f32.mrb[71].mxu1 }
 0x416   : > { %v3506_v1 = vadd.f32 %v3505_v37, %v3504_v7 }
 0x418   : > { %v6336_v24 = vadd.f32 %v3506_v1, %v2207_v11  ;;  %v3507_v36 = vpop.f32.mrb[72].mxu1 }
 0x419   : > { %v3508_v53 = vpop.f32.mrb[73].mxu1 }
 0x41a   : > { %v3509_v0 = vadd.f32 %v3508_v53, %v3507_v36 }
 0x41c   : > { %v6340_v25 = vadd.f32 %v3509_v0, %v2212_v5  ;;  %v3510_v6 = vpop.f32.mrb[74].mxu1 }
 0x41d   : > { %v3511_v51 = vpop.f32.mrb[75].mxu1 }
 0x41e   : > { %v3512_v52 = vadd.f32 %v3511_v51, %v3510_v6 }
 0x420   : > { %v6344_v59 = vadd.f32 %v3512_v52, %v2217_v32  ;;  %v3513_v19 = vpop.f32.mrb[76].mxu1 }
 0x421   : > { %v3514_v44 = vpop.f32.mrb[77].mxu1 }
 0x422   : > { %v3515_v54 = vadd.f32 %v3514_v44, %v3513_v19 }
 0x424   : > { %v6348_v8 = vadd.f32 %v3515_v54, %v2222_v33  ;;  %v3516_v49 = vpop.f32.mrb[78].mxu1 }
 0x425   : > { %v3517_v55 = vpop.f32.mrb[79].mxu1 }
 0x426   : > { %v3518_v45 = vadd.f32 %v3517_v55, %v3516_v49 }
 0x428   : > { %v6352_v23 = vadd.f32 %v3518_v45, %v2227_v26  ;;  %v3519_v42 = vpop.f32.mrb[80].mxu1 }
 0x429   : > { %v3520_v35 = vpop.f32.mrb[81].mxu1 }
 0x42a   : > { %v3521_v3 = vadd.f32 %v3520_v35, %v3519_v42 }
 0x42c   : > { %v6356_v29 = vadd.f32 %v3521_v3, %v2232_v12  ;;  %v3522_v20 = vpop.f32.mrb[82].mxu1 }
 0x42d   : > { %v3523_v30 = vpop.f32.mrb[83].mxu1 }
 0x42e   : > { %v3524_v40 = vadd.f32 %v3523_v30, %v3522_v20 }
 0x430   : > { %v6360_v63 = vadd.f32 %v3524_v40, %v2237_v27  ;;  %v3557_v2 = vpop.f32.mrb[84].mxu1 }
 0x431   : > { %v3558_v13 = vpop.f32.mrb[85].mxu1 }
 0x432   : > { %v3559_v16 = vadd.f32 %v3558_v13, %v3557_v2 }
 0x434   : > { %v6363_v17 = vadd.f32 %v3559_v16, %v6298_v56  ;;  %v3560_v47 = vpop.f32.mrb[86].mxu1 }
 0x435   : > { %v3561_v10 = vpop.f32.mrb[87].mxu1 }
 0x436   : > { %v3562_v48 = vadd.f32 %v3561_v10, %v3560_v47 }
 0x438   : > { %v6366_v38 = vadd.f32 %v3562_v48, %v6304_v14  ;;  %v3563_v15 = vpop.f32.mrb[88].mxu1 }
 0x439   : > { %v3564_v21 = vpop.f32.mrb[89].mxu1 }
 0x43a   : > { %v3565_v43 = vadd.f32 %v3564_v21, %v3563_v15 }
 0x43c   : > { %v6369_v60 = vadd.f32 %v3565_v43, %v6308_v18  ;;  %v3566_v9 = vpop.f32.mrb[90].mxu1 }
 0x43d   : > { %v3567_v4 = vpop.f32.mrb[91].mxu1 }
 0x43e   : > { %v3568_v39 = vadd.f32 %v3567_v4, %v3566_v9 }
 0x440   : > { %v6372_v50 = vadd.f32 %v3568_v39, %v6312_v28  ;;  %v3569_v56 = vpop.f32.mrb[92].mxu1 }
 0x441   : > { %v3570_v62 = vpop.f32.mrb[93].mxu1 }
 0x442   : > { %v3571_v46 = vadd.f32 %v3570_v62, %v3569_v56 }
 0x444   : > { %v6375_v57 = vadd.f32 %v3571_v46, %v6316_v22  ;;  %v3572_v14 = vpop.f32.mrb[94].mxu1 }
 0x445   : > { %v3573_v7 = vpop.f32.mrb[95].mxu1 }
 0x446   : > { %v3574_v37 = vadd.f32 %v3573_v7, %v3572_v14 }
 0x448   : > { %v6378_v11 = vadd.f32 %v3574_v37, %v6320_v31  ;;  %v3575_v18 = vpop.f32.mrb[96].mxu1 }
 0x449   : > { %v3576_v1 = vpop.f32.mrb[97].mxu1 }
 0x44a   : > { %v3577_v36 = vadd.f32 %v3576_v1, %v3575_v18 }
 0x44c   : > { %v6381_v53 = vadd.f32 %v3577_v36, %v6324_v34  ;;  %v3578_v28 = vpop.f32.mrb[98].mxu1 }
 0x44d   : > { %v3579_v5 = vpop.f32.mrb[99].mxu1 }
 0x44e   : > { %v3580_v0 = vadd.f32 %v3579_v5, %v3578_v28 }
 0x450   : > { %v6384_v6 = vadd.f32 %v3580_v0, %v6328_v58  ;;  %v3581_v22 = vpop.f32.mrb[100].mxu1 }
 0x451   : > { %v3582_v51 = vpop.f32.mrb[101].mxu1 }
 0x452   : > { %v3583_v32 = vadd.f32 %v3582_v51, %v3581_v22 }
 0x454   : > { %v6387_v52 = vadd.f32 %v3583_v32, %v6332_v41  ;;  %v3584_v31 = vpop.f32.mrb[102].mxu1 }
 0x455   : > { %v3585_v19 = vpop.f32.mrb[103].mxu1 }
 0x456   : > { %v3586_v44 = vadd.f32 %v3585_v19, %v3584_v31 }
 0x458   : > { %v6390_v33 = vadd.f32 %v3586_v44, %v6336_v24  ;;  %v3587_v34 = vpop.f32.mrb[104].mxu1 }
 0x459   : > { %v3588_v54 = vpop.f32.mrb[105].mxu1 }
 0x45a   : > { %v3589_v49 = vadd.f32 %v3588_v54, %v3587_v34 }
 0x45c   : > { %v6393_v55 = vadd.f32 %v3589_v49, %v6340_v25  ;;  %v3590_v58 = vpop.f32.mrb[106].mxu1 }
 0x45d   : > { %v3591_v26 = vpop.f32.mrb[107].mxu1 }
 0x45e   : > { %v3592_v45 = vadd.f32 %v3591_v26, %v3590_v58 }
 0x460   : > { %v6396_v42 = vadd.f32 %v3592_v45, %v6344_v59  ;;  %v3593_v41 = vpop.f32.mrb[108].mxu1 }
 0x461   : > { %v3594_v35 = vpop.f32.mrb[109].mxu1 }
 0x462   : > { %v3595_v12 = vadd.f32 %v3594_v35, %v3593_v41 }
 0x464   : > { %v6399_v3 = vadd.f32 %v3595_v12, %v6348_v8  ;;  %v3596_v24 = vpop.f32.mrb[110].mxu1 }
 0x465   : > { %v3597_v20 = vpop.f32.mrb[111].mxu1 }
 0x466   : > { %v3598_v30 = vadd.f32 %v3597_v20, %v3596_v24 }
 0x468   : > { %v6402_v27 = vadd.f32 %v3598_v30, %v6352_v23  ;;  %v3599_v25 = vpop.f32.mrb[112].mxu1 }
 0x469   : > { %v3600_v40 = vpop.f32.mrb[113].mxu1 }
 0x46a   : > { %v3601_v2 = vadd.f32 %v3600_v40, %v3599_v25 }
 0x46c   : > { %v6405_v13 = vadd.f32 %v3601_v2, %v6356_v29  ;;  %v3602_v59 = vpop.f32.mrb[114].mxu1 }
 0x46d   : > { %v3603_v16 = vpop.f32.mrb[115].mxu1 }
 0x46e   : > { %v3604_v47 = vadd.f32 %v3603_v16, %v3602_v59 }
 0x470   : > { %v6408_v10 = vadd.f32 %v3604_v47, %v6360_v63  ;;  %v3637_v8 = vpop.f32.mrb[116].mxu1 }
 0x471   : > { %v3638_v48 = vpop.f32.mrb[117].mxu1 }
 0x472   : > { %v3639_v15 = vadd.f32 %v3638_v48, %v3637_v8 }
 0x474   : > { %v3640_v21 = vpop.f32.mrb[118].mxu1  ;;  %v6411_v43 = vadd.f32 %v3639_v15, %v6363_v17 }
 0x475   : > { %v3641_v23 = vpop.f32.mrb[119].mxu1 }
 0x476   : > { %v3642_v9 = vadd.f32 %v3641_v23, %v3640_v21 }
 0x478   : > { %v3643_v4 = vpop.f32.mrb[120].mxu1  ;;  %v2602_v39 = vadd.f32 %v3642_v9, %v6366_v38 }
 0x479   : > { %v3644_v29 = vpop.f32.mrb[121].mxu1 }
 0x47a   : > { %v3645_v56 = vadd.f32 %v3644_v29, %v3643_v4 }
 0x47c   : > { %v3646_v62 = vpop.f32.mrb[122].mxu1  ;;  %v2607_v46 = vadd.f32 %v3645_v56, %v6369_v60 }
 0x47d   : > { %v3647_v14 = vpop.f32.mrb[123].mxu1 }
 0x47e   : > { %v3648_v63 = vadd.f32 %v3647_v14, %v3646_v62 }
 0x480   : > { %v3649_v7 = vpop.f32.mrb[124].mxu1  ;;  %v2612_v37 = vadd.f32 %v3648_v63, %v6372_v50 }
 0x481   : > { %v3650_v18 = vpop.f32.mrb[125].mxu1 }
 0x482   : > { %v3651_v1 = vadd.f32 %v3650_v18, %v3649_v7 }
 0x484   : > { %v3652_v36 = vpop.f32.mrb[126].mxu1  ;;  %v2617_v17 = vadd.f32 %v3651_v1, %v6375_v57 }
 0x485   : > { %v3653_v28 = vpop.f32.mrb[127].mxu1 }
 0x486   : > { %v3654_v5 = vadd.f32 %v3653_v28, %v3652_v36 }
 0x488   : > { %v3655_v0 = vpop.f32.mrb[128].mxu1  ;;  %v2622_v38 = vadd.f32 %v3654_v5, %v6378_v11 }
 0x489   : > { %v3656_v22 = vpop.f32.mrb[129].mxu1 }
 0x48a   : > { %v3657_v51 = vadd.f32 %v3656_v22, %v3655_v0 }
 0x48c   : > { %v3658_v32 = vpop.f32.mrb[130].mxu1  ;;  %v2627_v60 = vadd.f32 %v3657_v51, %v6381_v53 }
 0x48d   : > { %v3659_v31 = vpop.f32.mrb[131].mxu1 }
 0x48e   : > { %v3660_v19 = vadd.f32 %v3659_v31, %v3658_v32 }
 0x490   : > { %v3661_v44 = vpop.f32.mrb[132].mxu1  ;;  %v2632_v50 = vadd.f32 %v3660_v19, %v6384_v6 }
 0x491   : > { %v3662_v34 = vpop.f32.mrb[133].mxu1 }
 0x492   : > { %v3663_v54 = vadd.f32 %v3662_v34, %v3661_v44  ;;  %v2820_v34 = vlaneseq }
 0x494   : > { %v3664_v49 = vpop.f32.mrb[134].mxu1  ;;  %v2637_v57 = vadd.f32 %v3663_v54, %v6387_v52  ;;  %v6465_v54 = vand.u32 127, %v2820_v34 }
 0x495   : > { %v3665_v58 = vpop.f32.mrb[135].mxu1 }
 0x496   : > { %v3666_v26 = vadd.f32 %v3665_v58, %v3664_v49  ;;  %vm2822_vm2 = vcmp.lt.s32.totalorder %v6465_v54, 4 }
 0x498   : > { %v3667_v45 = vpop.f32.mrb[136].mxu1  ;;  %v2642_v11 = vadd.f32 %v3666_v26, %v6390_v33 }
 0x499   : > { %v3668_v41 = vpop.f32.mrb[137].mxu1 }
 0x49a   : > { %v3669_v35 = vadd.f32 %v3668_v41, %v3667_v45 }
 0x49c   : > { %v3670_v12 = vpop.f32.mrb[138].mxu1  ;;  %v2647_v53 = vadd.f32 %v3669_v35, %v6393_v55 }
 0x49d   : > { %v3671_v24 = vpop.f32.mrb[139].mxu1 }
 0x49e   : > { %v3672_v20 = vadd.f32 %v3671_v24, %v3670_v12 }
 0x4a0   : > { %v3673_v30 = vpop.f32.mrb[140].mxu1  ;;  %v2652_v6 = vadd.f32 %v3672_v20, %v6396_v42 }
 0x4a1   : > { %v3674_v25 = vpop.f32.mrb[141].mxu1 }
 0x4a2   : > { %v3675_v40 = vadd.f32 %v3674_v25, %v3673_v30 }
 0x4a4   : > { %v3676_v2 = vpop.f32.mrb[142].mxu1  ;;  %v2657_v52 = vadd.f32 %v3675_v40, %v6399_v3 }
 0x4a5   : > { %v3677_v59 = vpop.f32.mrb[143].mxu1 }
 0x4a6   : > { %v3678_v16 = vadd.f32 %v3677_v59, %v3676_v2 }
 0x4a8   : > { %v3679_v47 = vpop.f32.mrb[144].mxu1  ;;  %v2662_v33 = vadd.f32 %v3678_v16, %v6402_v27 }
 0x4a9   : > { %v3680_v8 = vpop.f32.mrb[145].mxu1 }
 0x4aa   : > { %v3681_v48 = vadd.f32 %v3680_v8, %v3679_v47 }
 0x4ac   : > { %v3682_v15 = vpop.f32.mrb[146].mxu1  ;;  %v2667_v55 = vadd.f32 %v3681_v48, %v6405_v13 }
 0x4ad   : > { %v3683_v21 = vpop.f32.mrb[147].mxu1 }
 0x4ae   : > { %v3684_v23 = vadd.f32 %v3683_v21, %v3682_v15 }
 0x4b0   : > { %v3813_v9 = vpop.f32.mrb[148].mxu1  ;;  %v2672_v42 = vadd.f32 %v3684_v23, %v6408_v10 }
 0x4b1   : > { %v2747_v4 = vadd.f32 %v3813_v9, %v2602_v39  ;;  %v2741_v29 = vpop.f32.mrb[149].mxu1 }
 0x4b2   : > { %v2742_v56 = vadd.f32 %v2741_v29, %v6411_v43 }
 0x4b3   : > { %2825 = vadd.xlane.f32.xlu0 %v2747_v4 }
 0x4b4   : > { %v3816_v3 = vpop.f32.mrb[150].mxu1 }
 0x4b5   : > { %v2757_v62 = vadd.f32 %v3816_v3, %v2612_v37  ;;  %v2751_v14 = vpop.f32.mrb[151].mxu1 }
 0x4b6   : > { %v6429_v63 = vadd.f32 %v2751_v14, %v2607_v46 }
 0x4b7   : > { %2829 = vadd.xlane.f32.xlu1 %v2757_v62  ;;  %2823 = vadd.xlane.f32.xlu0 %v2742_v56 }
 0x4b8   : > { %v3819_v27 = vpop.f32.mrb[152].mxu1 }
 0x4b9   : > { %v6431_v7 = vadd.f32 %v3819_v27, %v2622_v38  ;;  %v2761_v13 = vpop.f32.mrb[153].mxu1 }
 0x4ba   : > { %v2762_v18 = vadd.f32 %v2761_v13, %v2617_v17 }
 0x4bb   : > { %2827 = vadd.xlane.f32.xlu1 %v6429_v63 }
 0x4bc   : > { %v3822_v10 = vpop.f32.mrb[154].mxu1  ;;  %2831 = vadd.xlane.f32.xlu0 %v2762_v18 }
 0x4bd   : > { %v6434_v39 = vadd.f32 %v3822_v10, %v2632_v50  ;;  %v2771_v43 = vpop.f32.mrb[155].mxu1 }
 0x4be   : > { %v6436_v1 = vadd.f32 %v2771_v43, %v2627_v60 }
 0x4bf   : > { %2833 = vadd.xlane.f32.xlu1 %v6431_v7 }
 0x4c0   : > { %v3825_v46 = vpop.f32.mrb[156].mxu1  ;;  %2835 = vadd.xlane.f32.xlu0 %v6436_v1 }
 0x4c1   : > { %v6440_v37 = vadd.f32 %v3825_v46, %v2642_v11  ;;  %v2781_v36 = vpop.f32.mrb[157].mxu1 }
 0x4c2   : > { %v6442_v28 = vadd.f32 %v2781_v36, %v2637_v57 }
 0x4c3   : > { %2837 = vadd.xlane.f32.xlu1 %v6434_v39 }
 0x4c4   : > { %v3828_v17 = vpop.f32.mrb[158].mxu1  ;;  %2839 = vadd.xlane.f32.xlu0 %v6442_v28 }
 0x4c5   : > { %v6446_v5 = vadd.f32 %v3828_v17, %v2652_v6  ;;  %v2791_v0 = vpop.f32.mrb[159].mxu1 }
 0x4c6   : > { %v6448_v38 = vadd.f32 %v2791_v0, %v2647_v53 }
 0x4c7   : > { %2841 = vadd.xlane.f32.xlu1 %v6440_v37 }
 0x4c8   : > { %v3831_v22 = vpop.f32.mrb[160].mxu1  ;;  %2843 = vadd.xlane.f32.xlu0 %v6448_v38 }
 0x4c9   : > { %v6452_v51 = vadd.f32 %v3831_v22, %v2662_v33  ;;  %v2801_v32 = vpop.f32.mrb[161].mxu1 }
 0x4ca   : > { %v6454_v60 = vadd.f32 %v2801_v32, %v2657_v52 }
 0x4cb   : > { %2845 = vadd.xlane.f32.xlu1 %v6446_v5 }
 0x4cc   : > { %v3834_v31 = vpop.f32.mrb[162].mxu1  ;;  %2847 = vadd.xlane.f32.xlu0 %v6454_v60 }
 0x4cd   : > { %v6458_v19 = vadd.f32 %v3834_v31, %v2672_v42  ;;  %v2811_v44 = vpop.f32.mrb[163].mxu1 }
 0x4ce   : > { %v6460_v50 = vadd.f32 %v2811_v44, %v2667_v55 }
 0x4cf   : > { %2849 = vadd.xlane.f32.xlu1 %v6452_v51 }
 0x4d0   : > { %2851 = vadd.xlane.f32.xlu0 %v6460_v50 }
 0x4d3   : > { %2853 = vadd.xlane.f32.xlu1 %v6458_v19 }
 0x540   : > { %v2826_v49 = vpop.xlane.xlu0 %2825 }
 0x541   : > { %v2856_v57 = vmul.f32 0.25, %v2826_v49 }
 0x543   : > { %v6468_v58 = vsub.f32 %v2747_v4, %v2856_v57 }
 0x544   : > { %v2830_v26 = vpop.xlane.xlu1 %2829  ;;  %v2824_v45 = vpop.xlane.xlu0 %2823 }
 0x545   : > { %v2858_v11 = vmul.f32 0.25, %v2830_v26  ;;  %v2855_v41 = vmul.f32 0.25, %v2824_v45  ;;  %v2890_v35 = vsel %vm2822_vm2, %v6468_v58, 0.0 }
 0x546   : > { %v2906_v12 = vmul.f32 %v2890_v35, %v2890_v35 }
 0x547   : > { %v6473_v53 = vsub.f32 %v2757_v62, %v2858_v11  ;;  %v6475_v24 = vsub.f32 %v2742_v56, %v2855_v41 }
 0x548   : > { %v2828_v20 = vpop.xlane.xlu1 %2827  ;;  %2923 = vadd.xlane.f32.xlu1 %v2906_v12 }
 0x549   : > { %v2857_v30 = vmul.f32 0.25, %v2828_v20  ;;  %v2832_v6 = vpop.xlane.xlu0 %2831  ;;  %v2892_v25 = vsel %vm2822_vm2, %v6473_v53, 0.0  ;;  %v2889_v40 = vsel %vm2822_vm2, %v6475_v24, 0.0 }
 0x54a   : > { %v2859_v2 = vmul.f32 0.25, %v2832_v6  ;;  %v2908_v52 = vmul.f32 %v2892_v25, %v2892_v25  ;;  %v2905_v59 = vmul.f32 %v2889_v40, %v2889_v40 }
 0x54b   : > { %v6484_v16 = vsub.f32 %v6429_v63, %v2857_v30 }
 0x54c   : > { %v6486_v47 = vsub.f32 %v2762_v18, %v2859_v2  ;;  %v2834_v33 = vpop.xlane.xlu1 %2833  ;;  %2927 = vadd.xlane.f32.xlu1 %v2908_v52  ;;  %2921 = vadd.xlane.f32.xlu0 %v2905_v59 }
 0x54d   : > { %v2860_v8 = vmul.f32 0.25, %v2834_v33  ;;  %v2836_v48 = vpop.xlane.xlu0 %2835  ;;  %v2891_v15 = vsel %vm2822_vm2, %v6484_v16, 0.0 }
 0x54e   : > { %v2861_v55 = vmul.f32 0.25, %v2836_v48  ;;  %v2907_v21 = vmul.f32 %v2891_v15, %v2891_v15  ;;  %v2893_v9 = vsel %vm2822_vm2, %v6486_v47, 0.0 }
 0x54f   : > { %v6492_v23 = vsub.f32 %v6431_v7, %v2860_v8  ;;  %v2909_v63 = vmul.f32 %v2893_v9, %v2893_v9 }
 0x550   : > { %v6498_v42 = vsub.f32 %v6436_v1, %v2861_v55  ;;  %v2838_v4 = vpop.xlane.xlu1 %2837  ;;  %2925 = vadd.xlane.f32.xlu0 %v2907_v21 }
 0x551   : > { %v2862_v29 = vmul.f32 0.25, %v2838_v4  ;;  %v2840_v56 = vpop.xlane.xlu0 %2839  ;;  %v2894_v3 = vsel %vm2822_vm2, %v6492_v23, 0.0 }
 0x552   : > { %v2863_v62 = vmul.f32 0.25, %v2840_v56  ;;  %v2910_v14 = vmul.f32 %v2894_v3, %v2894_v3  ;;  %v2895_v7 = vsel %vm2822_vm2, %v6498_v42, 0.0 }
 0x553   : > { %v6504_v27 = vsub.f32 %v6434_v39, %v2862_v29  ;;  %v2911_v39 = vmul.f32 %v2895_v7, %v2895_v7 }
 0x554   : > { %v6510_v13 = vsub.f32 %v6442_v28, %v2863_v62  ;;  %v2842_v18 = vpop.xlane.xlu1 %2841  ;;  %2931 = vadd.xlane.f32.xlu1 %v2910_v14  ;;  %2929 = vadd.xlane.f32.xlu0 %v2909_v63 }
 0x555   : > { %v2864_v10 = vmul.f32 0.25, %v2842_v18  ;;  %v2844_v43 = vpop.xlane.xlu0 %2843  ;;  %v2896_v1 = vsel %vm2822_vm2, %v6504_v27, 0.0 }
 0x556   : > { %v2865_v46 = vmul.f32 0.25, %v2844_v43  ;;  %v2912_v36 = vmul.f32 %v2896_v1, %v2896_v1  ;;  %v2897_v28 = vsel %vm2822_vm2, %v6510_v13, 0.0  ;;  %v6563_v1 = vld [vmem:[%s6743_s5] ss:$0 sm:$0xff] }
 0x557   : > { %v6516_v17 = vsub.f32 %v6440_v37, %v2864_v10  ;;  %v2913_v37 = vmul.f32 %v2897_v28, %v2897_v28 }
 0x558   : > { %v6522_v0 = vsub.f32 %v6448_v38, %v2865_v46  ;;  %v2846_v22 = vpop.xlane.xlu1 %2845  ;;  %2935 = vadd.xlane.f32.xlu1 %v2912_v36  ;;  %2933 = vadd.xlane.f32.xlu0 %v2911_v39 }
 0x559   : > { %v2866_v32 = vmul.f32 0.25, %v2846_v22  ;;  %v2848_v31 = vpop.xlane.xlu0 %2847  ;;  %v2898_v44 = vsel %vm2822_vm2, %v6516_v17, 0.0 }
 0x55a   : > { %v2867_v34 = vmul.f32 0.25, %v2848_v31  ;;  %v2914_v49 = vmul.f32 %v2898_v44, %v2898_v44  ;;  %v2899_v38 = vsel %vm2822_vm2, %v6522_v0, 0.0 }
 0x55b   : > { %v6528_v57 = vsub.f32 %v6446_v5, %v2866_v32  ;;  %v2915_v5 = vmul.f32 %v2899_v38, %v2899_v38  ;;  %v6569_v32 = vld [vmem:[%s6744_s6] ss:$0 sm:$0xff] }
 0x55c   : > { %v6534_v26 = vsub.f32 %v6454_v60, %v2867_v34  ;;  %v2850_v45 = vpop.xlane.xlu1 %2849  ;;  %2939 = vadd.xlane.f32.xlu1 %v2914_v49  ;;  %2937 = vadd.xlane.f32.xlu0 %v2913_v37 }
 0x55d   : > { %v2868_v11 = vmul.f32 0.25, %v2850_v45  ;;  %v2852_v41 = vpop.xlane.xlu0 %2851  ;;  %v2900_v35 = vsel %vm2822_vm2, %v6528_v57, 0.0 }
 0x55e   : > { %v2869_v12 = vmul.f32 0.25, %v2852_v41  ;;  %v2916_v20 = vmul.f32 %v2900_v35, %v2900_v35  ;;  %v2901_v60 = vsel %vm2822_vm2, %v6534_v26, 0.0 }
 0x55f   : > { %v6540_v30 = vsub.f32 %v6452_v51, %v2868_v11  ;;  %v2917_v59 = vmul.f32 %v2901_v60, %v2901_v60 }
 0x560   : > { %v6546_v6 = vsub.f32 %v6460_v50, %v2869_v12  ;;  %v2854_v25 = vpop.xlane.xlu1 %2853  ;;  %2943 = vadd.xlane.f32.xlu1 %v2916_v20  ;;  %2941 = vadd.xlane.f32.xlu0 %v2915_v5 }
 0x561   : > { %v2870_v40 = vmul.f32 0.25, %v2854_v25  ;;  %v2902_v2 = vsel %vm2822_vm2, %v6540_v30, 0.0 }
 0x562   : > { %v2918_v52 = vmul.f32 %v2902_v2, %v2902_v2  ;;  %v2903_v33 = vsel %vm2822_vm2, %v6546_v6, 0.0 }
 0x563   : > { %v6552_v51 = vsub.f32 %v6458_v19, %v2870_v40  ;;  %v2919_v48 = vmul.f32 %v2903_v33, %v2903_v33  ;;  %v6841_v33 = vld [vmem:[#allocation17_spill] sm:$0xff] }
 0x564   : > { %2947 = vadd.xlane.f32.xlu1 %v2918_v52  ;;  %2945 = vadd.xlane.f32.xlu0 %v2917_v59 }
 0x565   : > { %v2904_v50 = vsel %vm2822_vm2, %v6552_v51, 0.0 }
 0x566   : > { %v2920_v8 = vmul.f32 %v2904_v50, %v2904_v50 }
 0x568   : > { %2951 = vadd.xlane.f32.xlu1 %v2920_v8  ;;  %2949 = vadd.xlane.f32.xlu0 %v2919_v48 }
 0x5d5   : > { %v2924_v15 = vpop.xlane.xlu1 %2923 }
 0x5d6   : > { %v2954_v55 = vmul.f32 0.25, %v2924_v15 }
 0x5d8   : > { %v2970_v21 = vadd.f32 1e-05, %v2954_v55 }
 0x5d9   : > { %v2928_v9 = vpop.xlane.xlu1 %2927  ;;  %v2922_v19 = vpop.xlane.xlu0 %2921 }
 0x5da   : > { %4449 = vrsqrt.f32 %v2970_v21  ;;  %v2956_v4 = vmul.f32 0.25, %v2928_v9  ;;  %v2953_v29 = vmul.f32 0.25, %v2922_v19 }
 0x5dc   : > { %v2972_v56 = vadd.f32 1e-05, %v2956_v4  ;;  %v2969_v3 = vadd.f32 1e-05, %v2953_v29 }
 0x5dd   : > { %v2926_v62 = vpop.xlane.xlu0 %2925 }
 0x5de   : > { %4451 = vrsqrt.f32 %v2972_v56  ;;  %v2955_v14 = vmul.f32 0.25, %v2926_v62 }
 0x5df   : > { %4453 = vrsqrt.f32 %v2969_v3 }
 0x5e0   : > { %v2971_v54 = vadd.f32 1e-05, %v2955_v14 }
 0x5e1   : > { %v2932_v63 = vpop.xlane.xlu1 %2931  ;;  %v2930_v7 = vpop.xlane.xlu0 %2929 }
 0x5e2   : > { %4455 = vrsqrt.f32 %v2971_v54  ;;  %v2958_v18 = vmul.f32 0.25, %v2932_v63  ;;  %v2957_v10 = vmul.f32 0.25, %v2930_v7 }
 0x5e4   : > { %v4450_v43 = vpop.eup %4449  ;;  %v2974_v46 = vadd.f32 1e-05, %v2958_v18  ;;  %v2973_v36 = vadd.f32 1e-05, %v2957_v10 }
 0x5e5   : > { %v3002_v39 = vmul.f32 %v4450_v43, %v6468_v58  ;;  %v2936_v28 = vpop.xlane.xlu1 %2935  ;;  %v2934_v22 = vpop.xlane.xlu0 %2933  ;;  %v6843_v43 = vld [vmem:[#allocation15_spill] sm:$0xff] }
 0x5e6   : > { %4457 = vrsqrt.f32 %v2974_v46  ;;  %v2960_v31 = vmul.f32 0.25, %v2936_v28  ;;  %v2959_v44 = vmul.f32 0.25, %v2934_v22 }
 0x5e7   : > { %v3025_v34 = vmul.f32 %v6563_v1, %v3002_v39  ;;  %4459 = vrsqrt.f32 %v2973_v36  ;;  %v6844_v39 = vld [vmem:[#allocation16_spill] sm:$0xff] }
 0x5e8   : > { %v4452_v49 = vpop.eup %4451  ;;  %v2976_v37 = vadd.f32 1e-05, %v2960_v31  ;;  %v2975_v38 = vadd.f32 1e-05, %v2959_v44 }
 0x5e9   : > { %v4454_v45 = vpop.eup %4453  ;;  %v3048_v11 = vadd.f32 %v6569_v32, %v3025_v34  ;;  %v3004_v58 = vmul.f32 %v4452_v49, %v6473_v53  ;;  %v2940_v41 = vpop.xlane.xlu1 %2939 }
 0x5ea   : > { %v2938_v35 = vpop.xlane.xlu0 %2937  ;;  %v3001_v12 = vmul.f32 %v4454_v45, %v6475_v24  ;;  %4461 = vrsqrt.f32 %v2976_v37  ;;  %v2962_v20 = vmul.f32 0.25, %v2940_v41 }
 0x5eb   : > { %v2961_v5 = vmul.f32 0.25, %v2938_v35  ;;  %v3081_v60 = vrot.slane %v3048_v11, 7  ;;  %v3027_v25 = vmul.f32 %v6563_v1, %v3004_v58  ;;  %4463 = vrsqrt.f32 %v2975_v38 }
 0x5ec   : > { %v4456_v40 = vpop.eup %4455  ;;  %v3024_v2 = vmul.f32 %v6563_v1, %v3001_v12  ;;  %v2978_v52 = vadd.f32 1e-05, %v2962_v20  ;;  %v6846_v12 = vld [vmem:[#allocation19_spill] sm:$0xff] }
 0x5ed   : > { %v2977_v59 = vadd.f32 1e-05, %v2961_v5  ;;  %v3130_v50 = vadd.f32 %v3081_v60, %v6841_v33  ;;  %v3050_v53 = vadd.f32 %v6569_v32, %v3027_v25  ;;  %v3003_v8 = vmul.f32 %v4456_v40, %v6484_v16  ;;  %v2944_v24 = vpop.xlane.xlu1 %2943  ;;  %v6842_v16 = vld [vmem:[#allocation20_spill] sm:$0xff] }
 0x5ee   : > { %v2942_v48 = vpop.xlane.xlu0 %2941  ;;  %v3047_v15 = vadd.f32 %v6569_v32, %v3024_v2  ;;  %4465 = vrsqrt.f32 %v2978_v52  ;;  %v2964_v55 = vmul.f32 0.25, %v2944_v24  ;;  %v6847_v24 = vld [vmem:[#allocation23_spill] sm:$0xff] }
 0x5ef   : > { %v2963_v21 = vmul.f32 0.25, %v2942_v48  ;;  %3154 = vst [vmem:[%s4819_s20 + $0xf] sm:$0x1] %v3130_v50  ;;  %v3084_v9 = vrot.slane %v3050_v53, 7  ;;  %v3026_v19 = vmul.f32 %v6563_v1, %v3003_v8  ;;  %4467 = vrsqrt.f32 %v2977_v59 }
 0x5f0   : > { %v4458_v4 = vpop.eup %4457  ;;  %v3080_v29 = vrot.slane %v3047_v15, 7  ;;  %v2980_v56 = vadd.f32 1e-05, %v2964_v55 }
 0x5f1   : > { %v2979_v3 = vadd.f32 1e-05, %v2963_v21  ;;  %v4460_v62 = vpop.eup %4459  ;;  %v3133_v14 = vadd.f32 %v3084_v9, %v6842_v16  ;;  %v3049_v54 = vadd.f32 %v6569_v32, %v3026_v19  ;;  %v3006_v63 = vmul.f32 %v4458_v4, %v6492_v23  ;;  %v2948_v7 = vpop.xlane.xlu1 %2947  ;;  %v6848_v21 = vld [vmem:[#allocation21_spill] sm:$0xff] }
 0x5f2   : > { %v2946_v18 = vpop.xlane.xlu0 %2945  ;;  %v3082_v10 = vsel %vm3079_vm3, %v3080_v29, %v3081_v60  ;;  %v3128_v46 = vadd.f32 %v3080_v29, %v6843_v43  ;;  %v3005_v36 = vmul.f32 %v4460_v62, %v6486_v47  ;;  %4469 = vrsqrt.f32 %v2980_v56  ;;  %v6845_v47 = vld [vmem:[#allocation18_spill] sm:$0xff] }
 0x5f3   : > { %3157 = vst [vmem:[%s4819_s20 + $0x1f] sm:$0x1] %v3133_v14  ;;  %v3129_v28 = vadd.f32 %v3082_v10, %v6844_v39  ;;  %v3083_v22 = vrot.slane %v3049_v54, 7  ;;  %v3029_v31 = vmul.f32 %v6563_v1, %v3006_v63  ;;  %4471 = vrsqrt.f32 %v2979_v3  ;;  %v6849_v29 = vld [vmem:[#allocation22_spill] sm:$0xff] }
 0x5f4   : > { %v4462_v44 = vpop.eup %4461  ;;  %3152 = vst [vmem:[%s4819_s20 - $0x1] sm:$0xfe] %v3128_v46  ;;  %v3028_v23 = vmul.f32 %v6563_v1, %v3005_v36  ;;  %v2966_v34 = vmul.f32 0.25, %v2948_v7  ;;  %v2965_v49 = vmul.f32 0.25, %v2946_v18  ;;  %v6850_v18 = vld [vmem:[#allocation26_spill] sm:$0xff]  ;;  %v6851_v36 = vld [vmem:[#allocation24_spill] sm:$0xff] }
 0x5f5   : > { %v4464_v37 = vpop.eup %4463  ;;  %3153 = vst [vmem:[%s4819_s20 + $0x7] sm:$0xff] %v3129_v28  ;;  %v3085_v38 = vsel %vm3079_vm3, %v3083_v22, %v3084_v9  ;;  %v3131_v45 = vadd.f32 %v3083_v22, %v6845_v47  ;;  %v3052_v11 = vadd.f32 %v6569_v32, %v3029_v31  ;;  %v3008_v58 = vmul.f32 %v4462_v44, %v6504_v27  ;;  %v2952_v41 = vpop.xlane.xlu1 %2951  ;;  %v6852_v31 = vld [vmem:[#allocation25_spill] sm:$0xff] }
 0x5f6   : > { %v2950_v35 = vpop.xlane.xlu0 %2949  ;;  %v3132_v20 = vadd.f32 %v3085_v38, %v6846_v12  ;;  %v3051_v5 = vadd.f32 %v6569_v32, %v3028_v23  ;;  %v3007_v60 = vmul.f32 %v4464_v37, %v6498_v42  ;;  %v2982_v25 = vadd.f32 1e-05, %v2966_v34  ;;  %v6853_v37 = vld [vmem:[#allocation31_spill] sm:$0xff]  ;;  %v6855_v12 = vld [vmem:[#allocation28_spill] sm:$0xff] }
 0x5f7   : > { %3155 = vst [vmem:[%s4819_s20 + $0xf] sm:$0xfe] %v3131_v45  ;;  %v3087_v40 = vrot.slane %v3052_v11, 7  ;;  %v3031_v2 = vmul.f32 %v6563_v1, %v3008_v58  ;;  %v2981_v52 = vadd.f32 1e-05, %v2965_v49  ;;  %v2968_v59 = vmul.f32 0.25, %v2952_v41 }
 0x5f8   : > { %v4466_v33 = vpop.eup %4465  ;;  %3156 = vst [vmem:[%s4819_s20 + $0x17] sm:$0xff] %v3132_v20  ;;  %v3086_v50 = vrot.slane %v3051_v5, 7  ;;  %v3030_v27 = vmul.f32 %v6563_v1, %v3007_v60  ;;  %4473 = vrsqrt.f32 %v2982_v25  ;;  %v2967_v53 = vmul.f32 0.25, %v2950_v35  ;;  %v6854_v11 = vld [vmem:[#allocation27_spill] sm:$0xff] }
 0x5f9   : > { %v4468_v8 = vpop.eup %4467  ;;  %v3136_v48 = vadd.f32 %v3087_v40, %v6847_v24  ;;  %v3054_v42 = vadd.f32 %v6569_v32, %v3031_v2  ;;  %v3010_v15 = vmul.f32 %v4466_v33, %v6516_v17  ;;  %4475 = vrsqrt.f32 %v2981_v52  ;;  %v6856_v2 = vld [vmem:[#allocation36_spill] sm:$0xff] }
 0x5fa   : > { %v3088_v55 = vsel %vm3079_vm3, %v3086_v50, %v3087_v40  ;;  %v3134_v9 = vadd.f32 %v3086_v50, %v6848_v21  ;;  %v3053_v19 = vadd.f32 %v6569_v32, %v3030_v27  ;;  %v3009_v4 = vmul.f32 %v4468_v8, %v6510_v13  ;;  %v6857_v50 = vld [vmem:[#allocation32_spill] sm:$0xff] }
 0x5fb   : > { %3160 = vst [vmem:[%s4819_s20 + $0x2f] sm:$0x1] %v3136_v48  ;;  %v3135_v56 = vadd.f32 %v3088_v55, %v6849_v29  ;;  %v3090_v3 = vrot.slane %v3054_v42, 7  ;;  %v3033_v62 = vmul.f32 %v6563_v1, %v3010_v15  ;;  %v2984_v16 = vadd.f32 1e-05, %v2968_v59 }
 0x5fc   : > { %v4470_v14 = vpop.eup %4469  ;;  %3158 = vst [vmem:[%s4819_s20 + $0x1f] sm:$0xfe] %v3134_v9  ;;  %v3089_v17 = vrot.slane %v3053_v19, 7  ;;  %v3032_v54 = vmul.f32 %v6563_v1, %v3009_v4  ;;  %v2983_v63 = vadd.f32 1e-05, %v2967_v53  ;;  %v6859_v4 = vld [vmem:[#allocation40_spill] sm:$0xff] }
 0x5fd   : > { %v4472_v7 = vpop.eup %4471  ;;  %3159 = vst [vmem:[%s4819_s20 + $0x27] sm:$0xff] %v3135_v56  ;;  %v3139_v10 = vadd.f32 %v3090_v3, %v6850_v18  ;;  %v3056_v13 = vadd.f32 %v6569_v32, %v3033_v62  ;;  %v3012_v43 = vmul.f32 %v4470_v14, %v6528_v57  ;;  %4477 = vrsqrt.f32 %v2984_v16  ;;  %v6861_v14 = vld [vmem:[#allocation38_spill] sm:$0xff]  ;;  %v6862_v18 = vld [vmem:[#allocation41_spill] sm:$0xff] }
 0x5fe   : > { %v3091_v46 = vsel %vm3079_vm3, %v3089_v17, %v3090_v3  ;;  %v3137_v39 = vadd.f32 %v3089_v17, %v6851_v36  ;;  %v3055_v28 = vadd.f32 %v6569_v32, %v3032_v54  ;;  %v3011_v22 = vmul.f32 %v4472_v7, %v6522_v0  ;;  %v6860_v3 = vld [vmem:[#allocation37_spill] sm:$0xff] }
 0x5ff   : > { %3163 = vst [vmem:[%s4819_s20 + $0x3f] sm:$0x1] %v3139_v10  ;;  %v3138_v44 = vadd.f32 %v3091_v46, %v6852_v31  ;;  %v3093_v23 = vrot.slane %v3056_v13, 7  ;;  %v3035_v34 = vmul.f32 %v6563_v1, %v3012_v43  ;;  %4479 = vrsqrt.f32 %v2983_v63 }
 0x600   : > { %3161 = vst [vmem:[%s4819_s20 + $0x2f] sm:$0xfe] %v3137_v39  ;;  %v3092_v57 = vrot.slane %v3055_v28, 7  ;;  %v3034_v49 = vmul.f32 %v6563_v1, %v3011_v22 }
 0x601   : > { %3162 = vst [vmem:[%s4819_s20 + $0x37] sm:$0xff] %v3138_v44  ;;  %v3142_v38 = vadd.f32 %v3093_v23, %v6853_v37  ;;  %v3058_v47 = vadd.f32 %v6569_v32, %v3035_v34 }
 0x602   : > { %v4474_v0 = vpop.eup %4473  ;;  %v3094_v45 = vsel %vm3079_vm3, %v3092_v57, %v3093_v23  ;;  %v3140_v58 = vadd.f32 %v3092_v57, %v6854_v11  ;;  %v3057_v41 = vadd.f32 %v6569_v32, %v3034_v49 }
 0x603   : > { %v4476_v35 = vpop.eup %4475  ;;  %3166 = vst [vmem:[%s4819_s20 + $0x4f] sm:$0x1] %v3142_v38  ;;  %v3141_v20 = vadd.f32 %v3094_v45, %v6855_v12  ;;  %v3096_v5 = vrot.slane %v3058_v47, 7  ;;  %v3014_v60 = vmul.f32 %v4474_v0, %v6540_v30  ;;  %v6858_v30 = vld [vmem:[#allocation33_spill] sm:$0xff] }
 0x604   : > { %3164 = vst [vmem:[%s4819_s20 + $0x3f] sm:$0xfe] %v3140_v58  ;;  %v3095_v25 = vrot.slane %v3057_v41, 7  ;;  %v3013_v40 = vmul.f32 %v4476_v35, %v6534_v26 }
 0x605   : > { %3165 = vst [vmem:[%s4819_s20 + $0x47] sm:$0xff] %v3141_v20  ;;  %v3145_v52 = vadd.f32 %v3096_v5, %v6856_v2  ;;  %v3037_v59 = vmul.f32 %v6563_v1, %v3014_v60 }
 0x606   : > { %v3097_v33 = vsel %vm3079_vm3, %v3095_v25, %v3096_v5  ;;  %v3143_v27 = vadd.f32 %v3095_v25, %v6857_v50  ;;  %v3036_v53 = vmul.f32 %v6563_v1, %v3013_v40 }
 0x607   : > { %v4478_v8 = vpop.eup %4477  ;;  %3169 = vst [vmem:[%s4819_s20 + $0x5f] sm:$0x1] %v3145_v52  ;;  %v3144_v24 = vadd.f32 %v3097_v33, %v6858_v30  ;;  %v3060_v48 = vadd.f32 %v6569_v32, %v3037_v59 }
 0x608   : > { %3167 = vst [vmem:[%s4819_s20 + $0x4f] sm:$0xfe] %v3143_v27  ;;  %v3059_v26 = vadd.f32 %v6569_v32, %v3036_v53  ;;  %v3016_v42 = vmul.f32 %v4478_v8, %v6552_v51 }
 0x609   : > { %v4480_v15 = vpop.eup %4479  ;;  %3168 = vst [vmem:[%s4819_s20 + $0x57] sm:$0xff] %v3144_v24  ;;  %v3099_v55 = vrot.slane %v3060_v48, 7 }
 0x60a   : > { %v3098_v21 = vrot.slane %v3059_v26, 7  ;;  %v3039_v9 = vmul.f32 %v6563_v1, %v3016_v42  ;;  %v3015_v19 = vmul.f32 %v4480_v15, %v6546_v6 }
 0x60b   : > { %v3148_v29 = vadd.f32 %v3099_v55, %v6859_v4 }
 0x60c   : > { %v3100_v56 = vsel %vm3079_vm3, %v3098_v21, %v3099_v55  ;;  %v3146_v51 = vadd.f32 %v3098_v21, %v6860_v3  ;;  %v3062_v62 = vadd.f32 %v6569_v32, %v3039_v9  ;;  %v3038_v16 = vmul.f32 %v6563_v1, %v3015_v19 }
 0x60d   : > { %3172 = vst [vmem:[%s4819_s20 + $0x6f] sm:$0x1] %v3148_v29  ;;  %v3147_v17 = vadd.f32 %v3100_v56, %v6861_v14 }
 0x60e   : > { %3170 = vst [vmem:[%s4819_s20 + $0x5f] sm:$0xfe] %v3146_v51  ;;  %v3102_v6 = vrot.slane %v3062_v62, 7  ;;  %v3061_v54 = vadd.f32 %v6569_v32, %v3038_v16  ;;  %v6863_v32 = vld [vmem:[#allocation42_spill] sm:$0xff] }
 0x60f   : > { %3171 = vst [vmem:[%s4819_s20 + $0x67] sm:$0xff] %v3147_v17 }
 0x610   : > { %v3151_v63 = vadd.f32 %v3102_v6, %v5290_v61  ;;  %v3101_v7 = vrot.slane %v3061_v54, 7 }
 0x612   : > { %3175 = vst [vmem:[%s4819_s20 + $0x7f] sm:$0x1] %v3151_v63  ;;  %v3103_v1 = vsel %vm3079_vm3, %v3101_v7, %v3102_v6  ;;  %v3149_v10 = vadd.f32 %v3101_v7, %v6862_v18 }
 0x613   : > { %v3150_v13 = vadd.f32 %v3103_v1, %v6863_v32 }
 0x614   : > { %3173 = vst [vmem:[%s4819_s20 + $0x6f] sm:$0xfe] %v3149_v10 }
 0x615   : > { %3174 = vst [vmem:[%s4819_s20 + $0x77] sm:$0xff] %v3150_v13 }
 0x616   : > { %4522 = shalt.err (!%p4519_p9)
}
 0x617   : > { %s4523_s11 = scalar_lea.hbm %s6677_s17, 2048  ;;  %s4527_s27 = scalar_lea.hbm %s6745_s7, 8192 }
 0x618   : > { %p4524_p11 = scmp.ne.s32.totalorder %s6677_s17, %s4523_s11  ;;  %p4528_p4 = scmp.lt.u32.totalorder %s6677_s17, %s6745_s7 }
 0x619   : > { %p4529_p3 = scmp.lt.u32.totalorder %s4527_s27, %s4523_s11  ;;  %p4531_p10 = scmp.lt.u32.totalorder %s4523_s11, %s6677_s17 }
 0x61a   : > { %p4525_p13 = pnand %p4524_p11, %p6864_p12 }
 0x61b   : > { %p4530_p8 = por %p4529_p3, %p4528_p4 }
 0x61c   : > { %p4526_p1 = pneg %p4525_p13 }
 0x61d   : > { %p4532_p0 = por %p4531_p10, %p4530_p8 }
 0x61f   : > { %p4533_p2 = pnand %p4532_p0, %p4526_p1 }
 0x621   : > { %4536 = shalt.err (!%p4533_p2)
}
 0x622   : > { %s4619_s14 = smov 128   ;;  %s4620_s9 = smov 8  }
 0x623   : > { %4363 = dma.vmem_to_hbm [thread:$0]  (%p6864_p12), %s6679_s19, 2048, %s6677_s17, %s6686_s18, %s4619_s14, %s4619_s14, %s4620_s9  }
 0x624 PF: > { %p4375_p5 = scmp.ge.s32.totalorder %s4609_s8, 2  ;;  %s3208_s10 = sand.u32 1, %s4581_s24  }
 0x625   : > { %p6865_p6 = scmp.ne.s32.totalorder %s6793_s16, 0  ;;  %s3209_s13 = scalar_lea.sflag [#allocation7], %s3208_s10 }
 0x627   : > { %p4370_p7 = pnand %p4375_p5, %p6865_p6 }
 0x629   : > { %4576 = dma.done.wait (!%p4370_p7), %s3209_s13, 2048  }
 0x62a   : > { %4578 = vsyncadd (!%p4370_p7), %s3209_s13, 4294965248  ;;  %s21_s8 = sadd.s32 1, %s4609_s8   ;;  %s6866_s15 = sld [smem:[#allocation13_spill]] }
 0x62b   : > { %p18_p9 = scmp.ge.s32.totalorder %s21_s8, 6   ;;  %s6867_s19 = sld [smem:[#allocation14_spill]] }
 0x62c   : > { %s6868_s24 = smov %s4585_s25  ;;  %s6869_s25 = smov %s4589_s26 }
 0x62d   : > { %s6870_s26 = smov %s4740_s21  ;;  %s6871_s27 = smov %s4601_s29 }
 0x62e   : > { %s6872_s28 = smov %s4605_s30  ;;  %20 = sbr.rel (!%p18_p9) target bundleno = 6 (0x6), region = 142 }
 0x630   : > { %s6873_s29 = smov %s6866_s15 }
 0x631   : > { %s6874_s30 = smov %s6867_s19 }
 0x635   :  { %3214 = vsyncpa [#allocation6], 1 }
 0x636   :  { %3216 = vsyncpa [#allocation6 + $0x1], 1 }
 0x637   :  { %3217 = vsyncpa [#allocation7], 1 }
 0x638   :  { %3219 = vsyncpa [#allocation7 + $0x1], 1 }
 0x639   :  { %3220 = vsyncmov [#allocation4] }
 0x63c   :  { %s3221_s16 = vpop.sfrf %3220 }
 0x63d   :  { %p3327_p12 = scmp.ne.s32.totalorder %s3221_s16, 0 }
 0x63f   :  { %3225 = shalt.err (%p3327_p12)  }

</bundles_post_ra>
